<compile_context>
chip_gen: v5e
topology: v5e:2x2
jax: 0.10.0
libtpu: 0.0.40
codegen_flags: <defaults>
</compile_context>

<pallas_src>
import jax
import jax.numpy as jnp
from jax.experimental import pallas as pl
from jax.experimental.pallas import tpu as pltpu


# MXU operand dtype; accumulation and epilogues are always f32.
COMPUTE_DTYPE = jnp.bfloat16


def _round_up(x, m):
    return (x + m - 1) // m * m


def _pick_tile(total, target, quantum):
    """Largest multiple of `quantum` dividing `total` and <= max(target, quantum)."""
    assert total % quantum == 0
    best = quantum
    for mult in range(1, total // quantum + 1):
        cand = mult * quantum
        if total % cand == 0 and cand <= max(target, quantum):
            best = cand
    return best


# ----------------------------------------------------------------------------
# Kernel 1: fused conv trunk — three (conv3x3 pad=1 [+BN] + bias + ReLU +
#           maxpool 2x2/2) stages, one image per grid step, VMEM-resident
#           intermediates, one MXU matmul per stage.
# ----------------------------------------------------------------------------
def _conv_trunk_kernel(x_ref, w1_ref, b1_ref, w2_ref, b2_ref, w3_ref, b3_ref,
                       o_ref, xp1_ref, xp2_ref, xp3_ref):

    def stage(xp_ref, src, w_ref, b_ref):
        """conv3x3(pad=1) + bias + ReLU + maxpool2x2 for one stage.

        src:    (h, w, cin) activation value (lives in VMEM).
        xp_ref: (h+2, w+2, cin) f32 scratch; its zero border IS the conv pad.
        w_ref:  (9*cin, cout) bf16 — the 9 taps folded into the contraction dim.
        b_ref:  (1, cout) f32 (BN already folded in for stage 1).
        """
        h, w, cin = src.shape
        cout = w_ref.shape[-1]

        # In-kernel halo: zero border, write interior (no external jnp.pad op).
        xp_ref[...] = jnp.zeros_like(xp_ref)
        xp_ref[1:h + 1, 1:w + 1, :] = src.astype(xp_ref.dtype)

        # Fold the 9 taps into K: one (h*w, 9*cin) slab -> ONE MXU matmul
        # (instead of 9 K=cin matmuls + VPU accumulate-adds).
        cols = jnp.concatenate(
            [xp_ref[ky:ky + h, kx:kx + w, :]
             for ky in range(3) for kx in range(3)], axis=-1)
        cols = cols.reshape(h * w, 9 * cin).astype(w_ref.dtype)   # bf16 operand
        acc = jnp.dot(cols, w_ref[...], preferred_element_type=jnp.float32)

        # Epilogue in f32: bias (+ pre-folded BN) and ReLU.
        y = jnp.maximum(acc + b_ref[...], 0.0)

        # 2x2 / stride-2 max-pool.  Row pairs via a leading-dim split
        # (layout-free); column pairs via one small sublane regroup on the
        # already row-pooled tensor.  Channels stay on the lane dim throughout.
        y = y.reshape(h // 2, 2, w, cout)
        y = jnp.maximum(y[:, 0], y[:, 1])
        y = y.reshape(h // 2, w // 2, 2, cout)
        y = jnp.maximum(y[:, :, 0], y[:, :, 1])
        return y                                    # (h/2, w/2, cout) f32, VMEM

    a1 = stage(xp1_ref, x_ref[0], w1_ref, b1_ref)   # (H/2, W/2, 32)
    a2 = stage(xp2_ref, a1, w2_ref, b2_ref)         # (H/4, W/4, 64)
    a3 = stage(xp3_ref, a2, w3_ref, b3_ref)         # (H/8, W/8, 128)

    # Single lane-dense (128-wide) bf16 store in NHWC-flatten row order; fc1's
    # weight rows are permuted offline to match, so no runtime NCHW transpose.
    o_ref[0] = a3.reshape(-1, 128).astype(o_ref.dtype)


def conv_trunk(x_nhwc, cw1, cb1, cw2, cb2, cw3, cb3):
    """Fused conv trunk.  x_nhwc: (N, H, W, 3).  Returns (N, (H/8)*(W/8), 128) bf16."""
    n, h, w, cin = x_nhwc.shape
    assert h % 8 == 0 and w % 8 == 0 and cin == cw1.shape[0] // 9
    ho, wo = h // 8, w // 8

    return pl.pallas_call(
        _conv_trunk_kernel,
        grid=(n,),
        in_specs=[
            pl.BlockSpec((1, h, w, cin), lambda i: (i, 0, 0, 0)),
            pl.BlockSpec(cw1.shape, lambda i: (0, 0)),
            pl.BlockSpec(cb1.shape, lambda i: (0, 0)),
            pl.BlockSpec(cw2.shape, lambda i: (0, 0)),
            pl.BlockSpec(cb2.shape, lambda i: (0, 0)),
            pl.BlockSpec(cw3.shape, lambda i: (0, 0)),
            pl.BlockSpec(cb3.shape, lambda i: (0, 0)),
        ],
        out_specs=pl.BlockSpec((1, ho * wo, 128), lambda i: (i, 0, 0)),
        out_shape=jax.ShapeDtypeStruct((n, ho * wo, 128), COMPUTE_DTYPE),
        scratch_shapes=[
            pltpu.VMEM((h + 2, w + 2, cin), jnp.float32),
            pltpu.VMEM((h // 2 + 2, w // 2 + 2, 32), jnp.float32),
            pltpu.VMEM((h // 4 + 2, w // 4 + 2, 64), jnp.float32),
        ],
        compiler_params=pltpu.CompilerParams(dimension_semantics=("parallel",)),
    )(x_nhwc, cw1, cb1, cw2, cb2, cw3, cb3)


# ----------------------------------------------------------------------------
# Kernel 2: fused fc1 + ReLU + fc2 head, M/K-tiled with a f32 VMEM accumulator
# ----------------------------------------------------------------------------
def _fc_head_kernel(x_ref, w1_ref, b1_ref, w2t_ref, b2_ref, o_ref, acc_ref):
    """out = relu(x @ W1 + b1) @ W2 + b2, K-reduction across the grid."""
    kk = pl.program_id(1)

    @pl.when(kk == 0)
    def _():
        acc_ref[...] = jnp.zeros_like(acc_ref)

    acc_ref[...] += jnp.dot(x_ref[...], w1_ref[...],
                            preferred_element_type=jnp.float32)

    @pl.when(kk == pl.num_programs(1) - 1)
    def _():
        h = jnp.maximum(acc_ref[...] + b1_ref[...], 0.0)         # fc1 bias + ReLU (f32)
        y = jnp.sum(h * w2t_ref[...], axis=-1, keepdims=True)    # fc2 as lane reduction
        o_ref[...] = (y + b2_ref[...]).astype(o_ref.dtype)


def fc_head(x, w1, b1, w2, b2, *, tm_target=256, tk_target=2048):
    """relu(x @ w1 + b1) @ w2 + b2 as a single tiled Pallas call (bf16 MXU operands)."""
    m, k = x.shape
    k2, n1 = w1.shape
    assert k2 == k and w2.shape == (n1, 1) and n1 % 128 == 0

    mp, kp = _round_up(m, 8), _round_up(k, 128)
    tm = _pick_tile(mp, tm_target, 8)
    tk = _pick_tile(kp, tk_target, 128)

    xp = jnp.pad(x.astype(COMPUTE_DTYPE), ((0, mp - m), (0, kp - k)))
    w1p = jnp.pad(w1.astype(COMPUTE_DTYPE), ((0, kp - k), (0, 0)))
    b1r = b1.reshape(1, n1).astype(jnp.float32)
    w2t = w2.reshape(1, n1).astype(jnp.float32)
    b2r = b2.reshape(1, 1).astype(jnp.float32)

    out = pl.pallas_call(
        _fc_head_kernel,
        grid=(mp // tm, kp // tk),
        in_specs=[
            pl.BlockSpec((tm, tk), lambda i, kk: (i, kk)),
            pl.BlockSpec((tk, n1), lambda i, kk: (kk, 0)),
            pl.BlockSpec((1, n1), lambda i, kk: (0, 0)),
            pl.BlockSpec((1, n1), lambda i, kk: (0, 0)),
            pl.BlockSpec((1, 1), lambda i, kk: (0, 0)),
        ],
        out_specs=pl.BlockSpec((tm, 1), lambda i, kk: (i, 0)),
        out_shape=jax.ShapeDtypeStruct((mp, 1), jnp.float32),
        scratch_shapes=[pltpu.VMEM((tm, n1), jnp.float32)],
        compiler_params=pltpu.CompilerParams(
            dimension_semantics=("parallel", "arbitrary")),
    )(xp, w1p, b1r, w2t, b2r)
    # Padded batch rows hold relu(b1)@w2+b2 garbage — must be sliced off.
    return out[:m]


# ----------------------------------------------------------------------------
# Parameters (deterministic, synthetic) and one-time offline preparation
# ----------------------------------------------------------------------------
def init_params(key, spatial):
    ks = jax.random.split(key, 10)
    fc1_in = 128 * (spatial // 8) * (spatial // 8)

    def nrm(k, shape, scale=0.05):
        return (scale * jax.random.normal(k, shape)).astype(jnp.float32)

    return {
        "w1": nrm(ks[0], (32, 3, 3, 3)), "b1": nrm(ks[1], (32,)),
        # BatchNorm2d(32) default init, eval-mode running stats
        "bn_gamma": jnp.ones((32,), jnp.float32),
        "bn_beta": jnp.zeros((32,), jnp.float32),
        "bn_mean": jnp.zeros((32,), jnp.float32),
        "bn_var": jnp.ones((32,), jnp.float32),
        "w2": nrm(ks[2], (64, 32, 3, 3)), "b2": nrm(ks[3], (64,)),
        "w3": nrm(ks[4], (128, 64, 3, 3)), "b3": nrm(ks[5], (128,)),
        "fw1": nrm(ks[6], (fc1_in, 256), scale=0.02), "fb1": nrm(ks[7], (256,)),
        "fw2": nrm(ks[8], (256, 1), scale=0.02), "fb2": nrm(ks[9], (1,)),
    }


def prepare_params(params, spatial):
    """One-time, offline parameter transforms (BN fold, tap fold, fc1 permute, bf16)."""
    eps = 1e-5
    scale = params["bn_gamma"] / jnp.sqrt(params["bn_var"] + eps)
    shift = params["bn_beta"] - params["bn_mean"] * scale

    def conv_mat(w_oihw, b, s=None, sh=None):
        cout, cin, kh, kw = w_oihw.shape
        if s is not None:                               # fold BN into conv weights/bias
            w_oihw = w_oihw * s[:, None, None, None]
            b = b * s + sh
        # (O, I, 3, 3) -> (9*I, O), tap-major, matching the in-kernel concat order.
        w_mat = jnp.transpose(w_oihw, (2, 3, 1, 0)).reshape(kh * kw * cin, cout)
        return w_mat.astype(COMPUTE_DTYPE), b.reshape(1, cout).astype(jnp.float32)

    cw1, cb1 = conv_mat(params["w1"], params["b1"], scale, shift)
    cw2, cb2 = conv_mat(params["w2"], params["b2"])
    cw3, cb3 = conv_mat(params["w3"], params["b3"])

    # Permute fc1 rows from PyTorch NCHW-flatten order to NHWC-flatten order so
    # the conv output flattens with a plain (free) reshape at runtime.
    hs = ws = spatial // 8
    fw1 = params["fw1"].reshape(128, hs, ws, -1).transpose(1, 2, 0, 3)
    fw1 = fw1.reshape(128 * hs * ws, -1).astype(COMPUTE_DTYPE)

    return {
        "cw1": cw1, "cb1": cb1, "cw2": cw2, "cb2": cb2, "cw3": cw3, "cb3": cb3,
        "fw1": fw1, "fb1": params["fb1"].astype(jnp.float32),
        "fw2": params["fw2"].astype(jnp.float32),
        "fb2": params["fb2"].astype(jnp.float32),
    }


# ----------------------------------------------------------------------------
# Forward pass (semantics of Detection_net.Net.forward, eval mode)
# ----------------------------------------------------------------------------
def detection_net_forward(prep, x_nchw):
    # PyTorch NCHW -> NHWC (channels on the lane dim), bf16 MXU operand.
    x = jnp.transpose(x_nchw, (0, 2, 3, 1)).astype(COMPUTE_DTYPE)

    feats = conv_trunk(x, prep["cw1"], prep["cb1"], prep["cw2"], prep["cb2"],
                       prep["cw3"], prep["cb3"])       # (N, (H/8)*(W/8), 128) bf16
    flat = feats.reshape(feats.shape[0], -1)           # plain reshape; fw1 pre-permuted

    # TODO(synk): nn.Dropout(p=0.1) is an eval-mode identity (inference only).
    return fc_head(flat, prep["fw1"], prep["fb1"], prep["fw2"], prep["fb2"])


# ----------------------------------------------------------------------------
# Pure-JAX reference (correctness check only; raw f32 params, NCHW flatten)
# ----------------------------------------------------------------------------
def _reference_forward(params, x_nchw):
    x = jnp.transpose(x_nchw, (0, 2, 3, 1)).astype(jnp.float32)
    eps = 1e-5
    scale = params["bn_gamma"] / jnp.sqrt(params["bn_var"] + eps)
    shift = params["bn_beta"] - params["bn_mean"] * scale

    def conv(z, w_oihw, b):
        w_hwio = jnp.transpose(w_oihw, (2, 3, 1, 0))
        y = jax.lax.conv_general_dilated(
            z, w_hwio, window_strides=(1, 1), padding=((1, 1), (1, 1)),
            dimension_numbers=("NHWC", "HWIO", "NHWC"))
        return y + b

    def pool(z):
        n, h, w, c = z.shape
        return z.reshape(n, h // 2, 2, w // 2, 2, c).max(axis=(2, 4))

    y = conv(x, params["w1"], params["b1"])
    y = pool(jnp.maximum(y * scale + shift, 0.0))
    y = pool(jnp.maximum(conv(y, params["w2"], params["b2"]), 0.0))
    y = pool(jnp.maximum(conv(y, params["w3"], params["b3"]), 0.0))
    n = y.shape[0]
    y = jnp.transpose(y, (0, 3, 1, 2)).reshape(n, -1)
    y = jnp.maximum(y @ params["fw1"] + params["fb1"], 0.0)
    return y @ params["fw2"] + params["fb2"]


# ----------------------------------------------------------------------------
if __name__ == "__main__":
    key = jax.random.PRNGKey(0)
    k_x, k_p = jax.random.split(key)

    batch, chans, spatial = 2, 3, 16
    x = jax.random.normal(k_x, (batch, chans, spatial, spatial), dtype=jnp.float32)
    params = init_params(k_p, spatial)
    prep = prepare_params(params, spatial)           # one-time offline transform

    fwd = jax.jit(detection_net_forward)
    out = jax.block_until_ready(fwd(prep, x))
    assert out.shape == (batch, 1), out.shape

    ref = jax.block_until_ready(jax.jit(_reference_forward)(params, x))
    max_diff = float(jnp.max(jnp.abs(out - ref)))
    # bf16 MXU operands (with f32 accumulation) vs. the pure-f32 reference.
    assert max_diff < 2e-2, f"mismatch vs reference: max|diff|={max_diff}"

    print("KERNEL_OK")
</pallas_src>

<mosaic_0001>
module attributes {stable_mosaic.version = 11 : i64} {
  func.func @_conv_trunk_kernel(%arg0: i32, %arg1: memref<1x16x16x3xbf16, #tpu.memory_space<vmem>>, %arg2: memref<27x32xbf16, #tpu.memory_space<vmem>>, %arg3: memref<1x32xf32, #tpu.memory_space<vmem>>, %arg4: memref<288x64xbf16, #tpu.memory_space<vmem>>, %arg5: memref<1x64xf32, #tpu.memory_space<vmem>>, %arg6: memref<576x128xbf16, #tpu.memory_space<vmem>>, %arg7: memref<1x128xf32, #tpu.memory_space<vmem>>, %arg8: memref<1x4x128xbf16, #tpu.memory_space<vmem>>, %arg9: memref<18x18x3xf32, #tpu.memory_space<vmem>>, %arg10: memref<10x10x32xf32, #tpu.memory_space<vmem>>, %arg11: memref<6x6x64xf32, #tpu.memory_space<vmem>>) attributes {dimension_semantics = [#tpu.dimension_semantics<parallel>], iteration_bounds = array<i64: 2>, scalar_prefetch = 0 : i64, scratch_operands = 3 : i64, tpu.core_type = #tpu.core_type<tc>, window_params = [{transform_indices = @transform_0, window_bounds = array<i64: 1, 16, 16, 3>}, {pipeline_mode = #tpu.pipeline_mode<synchronous>, transform_indices = @transform_1, window_bounds = array<i64: 27, 32>}, {pipeline_mode = #tpu.pipeline_mode<synchronous>, transform_indices = @transform_2, window_bounds = array<i64: 1, 32>}, {pipeline_mode = #tpu.pipeline_mode<synchronous>, transform_indices = @transform_3, window_bounds = array<i64: 288, 64>}, {pipeline_mode = #tpu.pipeline_mode<synchronous>, transform_indices = @transform_4, window_bounds = array<i64: 1, 64>}, {pipeline_mode = #tpu.pipeline_mode<synchronous>, transform_indices = @transform_5, window_bounds = array<i64: 576, 128>}, {pipeline_mode = #tpu.pipeline_mode<synchronous>, transform_indices = @transform_6, window_bounds = array<i64: 1, 128>}, {transform_indices = @transform_7, window_bounds = array<i64: 1, 4, 128>}]} {
    %c0 = arith.constant 0 : index
    %c0_0 = arith.constant 0 : index
    %c0_1 = arith.constant 0 : index
    %c0_2 = arith.constant 0 : index
    %0 = vector.load %arg1[%c0, %c0_0, %c0_1, %c0_2] : memref<1x16x16x3xbf16, #tpu.memory_space<vmem>>, vector<1x16x16x3xbf16>
    %1 = vector.shape_cast %0 : vector<1x16x16x3xbf16> to vector<16x16x3xbf16>
    %cst = arith.constant 0.000000e+00 : f32
    %2 = vector.broadcast %cst : f32 to vector<18x18x3xf32>
    %c0_3 = arith.constant 0 : index
    %c0_4 = arith.constant 0 : index
    %c0_5 = arith.constant 0 : index
    %3 = vector.load %arg9[%c0_3, %c0_4, %c0_5] : memref<18x18x3xf32, #tpu.memory_space<vmem>>, vector<18x18x3xf32>
    tpu.vector_store %arg9[%c0_3, %c0_4, %c0_5], %2 {strides = array<i32>} : memref<18x18x3xf32, #tpu.memory_space<vmem>>, vector<18x18x3xf32>,
    %4 = arith.extf %1 : vector<16x16x3xbf16> to vector<16x16x3xf32>
    %c1 = arith.constant 1 : index
    %c1_6 = arith.constant 1 : index
    %c0_7 = arith.constant 0 : index
    %5 = vector.load %arg9[%c1, %c1_6, %c0_7] : memref<18x18x3xf32, #tpu.memory_space<vmem>>, vector<16x16x3xf32>
    tpu.vector_store %arg9[%c1, %c1_6, %c0_7], %4 {strides = array<i32>} : memref<18x18x3xf32, #tpu.memory_space<vmem>>, vector<16x16x3xf32>,
    %c0_8 = arith.constant 0 : index
    %c0_9 = arith.constant 0 : index
    %c0_10 = arith.constant 0 : index
    %6 = vector.load %arg9[%c0_8, %c0_9, %c0_10] : memref<18x18x3xf32, #tpu.memory_space<vmem>>, vector<16x16x3xf32>
    %c0_11 = arith.constant 0 : index
    %c1_12 = arith.constant 1 : index
    %c0_13 = arith.constant 0 : index
    %7 = vector.load %arg9[%c0_11, %c1_12, %c0_13] : memref<18x18x3xf32, #tpu.memory_space<vmem>>, vector<16x16x3xf32>
    %c0_14 = arith.constant 0 : index
    %c2 = arith.constant 2 : index
    %c0_15 = arith.constant 0 : index
    %8 = vector.load %arg9[%c0_14, %c2, %c0_15] : memref<18x18x3xf32, #tpu.memory_space<vmem>>, vector<16x16x3xf32>
    %c1_16 = arith.constant 1 : index
    %c0_17 = arith.constant 0 : index
    %c0_18 = arith.constant 0 : index
    %9 = vector.load %arg9[%c1_16, %c0_17, %c0_18] : memref<18x18x3xf32, #tpu.memory_space<vmem>>, vector<16x16x3xf32>
    %c1_19 = arith.constant 1 : index
    %c1_20 = arith.constant 1 : index
    %c0_21 = arith.constant 0 : index
    %10 = vector.load %arg9[%c1_19, %c1_20, %c0_21] : memref<18x18x3xf32, #tpu.memory_space<vmem>>, vector<16x16x3xf32>
    %c1_22 = arith.constant 1 : index
    %c2_23 = arith.constant 2 : index
    %c0_24 = arith.constant 0 : index
    %11 = vector.load %arg9[%c1_22, %c2_23, %c0_24] : memref<18x18x3xf32, #tpu.memory_space<vmem>>, vector<16x16x3xf32>
    %c2_25 = arith.constant 2 : index
    %c0_26 = arith.constant 0 : index
    %c0_27 = arith.constant 0 : index
    %12 = vector.load %arg9[%c2_25, %c0_26, %c0_27] : memref<18x18x3xf32, #tpu.memory_space<vmem>>, vector<16x16x3xf32>
    %c2_28 = arith.constant 2 : index
    %c1_29 = arith.constant 1 : index
    %c0_30 = arith.constant 0 : index
    %13 = vector.load %arg9[%c2_28, %c1_29, %c0_30] : memref<18x18x3xf32, #tpu.memory_space<vmem>>, vector<16x16x3xf32>
    %c2_31 = arith.constant 2 : index
    %c2_32 = arith.constant 2 : index
    %c0_33 = arith.constant 0 : index
    %14 = vector.load %arg9[%c2_31, %c2_32, %c0_33] : memref<18x18x3xf32, #tpu.memory_space<vmem>>, vector<16x16x3xf32>
    %15 = tpu.concatenate %6, %7, %8, %9, %10, %11, %12, %13, %14 in 2 : vector<16x16x3xf32>, vector<16x16x3xf32>, vector<16x16x3xf32>, vector<16x16x3xf32>, vector<16x16x3xf32>, vector<16x16x3xf32>, vector<16x16x3xf32>, vector<16x16x3xf32>, vector<16x16x3xf32> -> vector<16x16x27xf32>
    %16 = vector.shape_cast %15 : vector<16x16x27xf32> to vector<256x27xf32>
    %17 = arith.truncf %16 : vector<256x27xf32> to vector<256x27xbf16>
    %c0_34 = arith.constant 0 : index
    %c0_35 = arith.constant 0 : index
    %18 = vector.load %arg2[%c0_34, %c0_35] : memref<27x32xbf16, #tpu.memory_space<vmem>>, vector<27x32xbf16>
    %cst_36 = arith.constant dense<0.000000e+00> : vector<256x32xf32>
    %19 = tpu.matmul %17, %18, %cst_36 {dimension_numbers = #tpu.dot_dimension_numbers<[1], [0], [0], [1], [0, 0, 1, 1], [], []>} : vector<256x27xbf16>, vector<27x32xbf16>, vector<256x32xf32> -> vector<256x32xf32>
    %c0_37 = arith.constant 0 : index
    %c0_38 = arith.constant 0 : index
    %20 = vector.load %arg3[%c0_37, %c0_38] : memref<1x32xf32, #tpu.memory_space<vmem>>, vector<1x32xf32>
    %21 = vector.broadcast %20 : vector<1x32xf32> to vector<256x32xf32>
    %22 = arith.addf %19, %21 : vector<256x32xf32>
    %cst_39 = arith.constant 0.000000e+00 : f32
    %23 = vector.broadcast %cst_39 : f32 to vector<256x32xf32>
    %24 = arith.maximumf %22, %23 : vector<256x32xf32>
    %25 = vector.shape_cast %24 : vector<256x32xf32> to vector<8x2x16x32xf32>
    %26 = vector.extract_strided_slice %25 {offsets = [0, 0, 0, 0], sizes = [8, 1, 16, 32], strides = [1, 1, 1, 1]} : vector<8x2x16x32xf32> to vector<8x1x16x32xf32>
    %27 = vector.shape_cast %26 : vector<8x1x16x32xf32> to vector<8x16x32xf32>
    %28 = vector.extract_strided_slice %25 {offsets = [0, 1, 0, 0], sizes = [8, 1, 16, 32], strides = [1, 1, 1, 1]} : vector<8x2x16x32xf32> to vector<8x1x16x32xf32>
    %29 = vector.shape_cast %28 : vector<8x1x16x32xf32> to vector<8x16x32xf32>
    %30 = arith.maximumf %27, %29 : vector<8x16x32xf32>
    %31 = vector.shape_cast %30 : vector<8x16x32xf32> to vector<8x8x2x32xf32>
    %32 = vector.extract_strided_slice %31 {offsets = [0, 0, 0, 0], sizes = [8, 8, 1, 32], strides = [1, 1, 1, 1]} : vector<8x8x2x32xf32> to vector<8x8x1x32xf32>
    %33 = vector.shape_cast %32 : vector<8x8x1x32xf32> to vector<8x8x32xf32>
    %34 = vector.extract_strided_slice %31 {offsets = [0, 0, 1, 0], sizes = [8, 8, 1, 32], strides = [1, 1, 1, 1]} : vector<8x8x2x32xf32> to vector<8x8x1x32xf32>
    %35 = vector.shape_cast %34 : vector<8x8x1x32xf32> to vector<8x8x32xf32>
    %36 = arith.maximumf %33, %35 : vector<8x8x32xf32>
    %cst_40 = arith.constant 0.000000e+00 : f32
    %37 = vector.broadcast %cst_40 : f32 to vector<10x10x32xf32>
    %c0_41 = arith.constant 0 : index
    %c0_42 = arith.constant 0 : index
    %c0_43 = arith.constant 0 : index
    %38 = vector.load %arg10[%c0_41, %c0_42, %c0_43] : memref<10x10x32xf32, #tpu.memory_space<vmem>>, vector<10x10x32xf32>
    tpu.vector_store %arg10[%c0_41, %c0_42, %c0_43], %37 {strides = array<i32>} : memref<10x10x32xf32, #tpu.memory_space<vmem>>, vector<10x10x32xf32>,
    %c1_44 = arith.constant 1 : index
    %c1_45 = arith.constant 1 : index
    %c0_46 = arith.constant 0 : index
    %39 = vector.load %arg10[%c1_44, %c1_45, %c0_46] : memref<10x10x32xf32, #tpu.memory_space<vmem>>, vector<8x8x32xf32>
    tpu.vector_store %arg10[%c1_44, %c1_45, %c0_46], %36 {strides = array<i32>} : memref<10x10x32xf32, #tpu.memory_space<vmem>>, vector<8x8x32xf32>,
    %c0_47 = arith.constant 0 : index
    %c0_48 = arith.constant 0 : index
    %c0_49 = arith.constant 0 : index
    %40 = vector.load %arg10[%c0_47, %c0_48, %c0_49] : memref<10x10x32xf32, #tpu.memory_space<vmem>>, vector<8x8x32xf32>
    %c0_50 = arith.constant 0 : index
    %c1_51 = arith.constant 1 : index
    %c0_52 = arith.constant 0 : index
    %41 = vector.load %arg10[%c0_50, %c1_51, %c0_52] : memref<10x10x32xf32, #tpu.memory_space<vmem>>, vector<8x8x32xf32>
    %c0_53 = arith.constant 0 : index
    %c2_54 = arith.constant 2 : index
    %c0_55 = arith.constant 0 : index
    %42 = vector.load %arg10[%c0_53, %c2_54, %c0_55] : memref<10x10x32xf32, #tpu.memory_space<vmem>>, vector<8x8x32xf32>
    %c1_56 = arith.constant 1 : index
    %c0_57 = arith.constant 0 : index
    %c0_58 = arith.constant 0 : index
    %43 = vector.load %arg10[%c1_56, %c0_57, %c0_58] : memref<10x10x32xf32, #tpu.memory_space<vmem>>, vector<8x8x32xf32>
    %c1_59 = arith.constant 1 : index
    %c1_60 = arith.constant 1 : index
    %c0_61 = arith.constant 0 : index
    %44 = vector.load %arg10[%c1_59, %c1_60, %c0_61] : memref<10x10x32xf32, #tpu.memory_space<vmem>>, vector<8x8x32xf32>
    %c1_62 = arith.constant 1 : index
    %c2_63 = arith.constant 2 : index
    %c0_64 = arith.constant 0 : index
    %45 = vector.load %arg10[%c1_62, %c2_63, %c0_64] : memref<10x10x32xf32, #tpu.memory_space<vmem>>, vector<8x8x32xf32>
    %c2_65 = arith.constant 2 : index
    %c0_66 = arith.constant 0 : index
    %c0_67 = arith.constant 0 : index
    %46 = vector.load %arg10[%c2_65, %c0_66, %c0_67] : memref<10x10x32xf32, #tpu.memory_space<vmem>>, vector<8x8x32xf32>
    %c2_68 = arith.constant 2 : index
    %c1_69 = arith.constant 1 : index
    %c0_70 = arith.constant 0 : index
    %47 = vector.load %arg10[%c2_68, %c1_69, %c0_70] : memref<10x10x32xf32, #tpu.memory_space<vmem>>, vector<8x8x32xf32>
    %c2_71 = arith.constant 2 : index
    %c2_72 = arith.constant 2 : index
    %c0_73 = arith.constant 0 : index
    %48 = vector.load %arg10[%c2_71, %c2_72, %c0_73] : memref<10x10x32xf32, #tpu.memory_space<vmem>>, vector<8x8x32xf32>
    %49 = tpu.concatenate %40, %41, %42, %43, %44, %45, %46, %47, %48 in 2 : vector<8x8x32xf32>, vector<8x8x32xf32>, vector<8x8x32xf32>, vector<8x8x32xf32>, vector<8x8x32xf32>, vector<8x8x32xf32>, vector<8x8x32xf32>, vector<8x8x32xf32>, vector<8x8x32xf32> -> vector<8x8x288xf32>
    %50 = vector.shape_cast %49 : vector<8x8x288xf32> to vector<64x288xf32>
    %51 = arith.truncf %50 : vector<64x288xf32> to vector<64x288xbf16>
    %c0_74 = arith.constant 0 : index
    %c0_75 = arith.constant 0 : index
    %52 = vector.load %arg4[%c0_74, %c0_75] : memref<288x64xbf16, #tpu.memory_space<vmem>>, vector<288x64xbf16>
    %cst_76 = arith.constant dense<0.000000e+00> : vector<64x64xf32>
    %53 = tpu.matmul %51, %52, %cst_76 {dimension_numbers = #tpu.dot_dimension_numbers<[1], [0], [0], [1], [0, 0, 1, 1], [], []>} : vector<64x288xbf16>, vector<288x64xbf16>, vector<64x64xf32> -> vector<64x64xf32>
    %c0_77 = arith.constant 0 : index
    %c0_78 = arith.constant 0 : index
    %54 = vector.load %arg5[%c0_77, %c0_78] : memref<1x64xf32, #tpu.memory_space<vmem>>, vector<1x64xf32>
    %55 = vector.broadcast %54 : vector<1x64xf32> to vector<64x64xf32>
    %56 = arith.addf %53, %55 : vector<64x64xf32>
    %cst_79 = arith.constant 0.000000e+00 : f32
    %57 = vector.broadcast %cst_79 : f32 to vector<64x64xf32>
    %58 = arith.maximumf %56, %57 : vector<64x64xf32>
    %59 = vector.shape_cast %58 : vector<64x64xf32> to vector<4x2x8x64xf32>
    %60 = vector.extract_strided_slice %59 {offsets = [0, 0, 0, 0], sizes = [4, 1, 8, 64], strides = [1, 1, 1, 1]} : vector<4x2x8x64xf32> to vector<4x1x8x64xf32>
    %61 = vector.shape_cast %60 : vector<4x1x8x64xf32> to vector<4x8x64xf32>
    %62 = vector.extract_strided_slice %59 {offsets = [0, 1, 0, 0], sizes = [4, 1, 8, 64], strides = [1, 1, 1, 1]} : vector<4x2x8x64xf32> to vector<4x1x8x64xf32>
    %63 = vector.shape_cast %62 : vector<4x1x8x64xf32> to vector<4x8x64xf32>
    %64 = arith.maximumf %61, %63 : vector<4x8x64xf32>
    %65 = vector.shape_cast %64 : vector<4x8x64xf32> to vector<4x4x2x64xf32>
    %66 = vector.extract_strided_slice %65 {offsets = [0, 0, 0, 0], sizes = [4, 4, 1, 64], strides = [1, 1, 1, 1]} : vector<4x4x2x64xf32> to vector<4x4x1x64xf32>
    %67 = vector.shape_cast %66 : vector<4x4x1x64xf32> to vector<4x4x64xf32>
    %68 = vector.extract_strided_slice %65 {offsets = [0, 0, 1, 0], sizes = [4, 4, 1, 64], strides = [1, 1, 1, 1]} : vector<4x4x2x64xf32> to vector<4x4x1x64xf32>
    %69 = vector.shape_cast %68 : vector<4x4x1x64xf32> to vector<4x4x64xf32>
    %70 = arith.maximumf %67, %69 : vector<4x4x64xf32>
    %cst_80 = arith.constant 0.000000e+00 : f32
    %71 = vector.broadcast %cst_80 : f32 to vector<6x6x64xf32>
    %c0_81 = arith.constant 0 : index
    %c0_82 = arith.constant 0 : index
    %c0_83 = arith.constant 0 : index
    %72 = vector.load %arg11[%c0_81, %c0_82, %c0_83] : memref<6x6x64xf32, #tpu.memory_space<vmem>>, vector<6x6x64xf32>
    tpu.vector_store %arg11[%c0_81, %c0_82, %c0_83], %71 {strides = array<i32>} : memref<6x6x64xf32, #tpu.memory_space<vmem>>, vector<6x6x64xf32>,
    %c1_84 = arith.constant 1 : index
    %c1_85 = arith.constant 1 : index
    %c0_86 = arith.constant 0 : index
    %73 = vector.load %arg11[%c1_84, %c1_85, %c0_86] : memref<6x6x64xf32, #tpu.memory_space<vmem>>, vector<4x4x64xf32>
    tpu.vector_store %arg11[%c1_84, %c1_85, %c0_86], %70 {strides = array<i32>} : memref<6x6x64xf32, #tpu.memory_space<vmem>>, vector<4x4x64xf32>,
    %c0_87 = arith.constant 0 : index
    %c0_88 = arith.constant 0 : index
    %c0_89 = arith.constant 0 : index
    %74 = vector.load %arg11[%c0_87, %c0_88, %c0_89] : memref<6x6x64xf32, #tpu.memory_space<vmem>>, vector<4x4x64xf32>
    %c0_90 = arith.constant 0 : index
    %c1_91 = arith.constant 1 : index
    %c0_92 = arith.constant 0 : index
    %75 = vector.load %arg11[%c0_90, %c1_91, %c0_92] : memref<6x6x64xf32, #tpu.memory_space<vmem>>, vector<4x4x64xf32>
    %c0_93 = arith.constant 0 : index
    %c2_94 = arith.constant 2 : index
    %c0_95 = arith.constant 0 : index
    %76 = vector.load %arg11[%c0_93, %c2_94, %c0_95] : memref<6x6x64xf32, #tpu.memory_space<vmem>>, vector<4x4x64xf32>
    %c1_96 = arith.constant 1 : index
    %c0_97 = arith.constant 0 : index
    %c0_98 = arith.constant 0 : index
    %77 = vector.load %arg11[%c1_96, %c0_97, %c0_98] : memref<6x6x64xf32, #tpu.memory_space<vmem>>, vector<4x4x64xf32>
    %c1_99 = arith.constant 1 : index
    %c1_100 = arith.constant 1 : index
    %c0_101 = arith.constant 0 : index
    %78 = vector.load %arg11[%c1_99, %c1_100, %c0_101] : memref<6x6x64xf32, #tpu.memory_space<vmem>>, vector<4x4x64xf32>
    %c1_102 = arith.constant 1 : index
    %c2_103 = arith.constant 2 : index
    %c0_104 = arith.constant 0 : index
    %79 = vector.load %arg11[%c1_102, %c2_103, %c0_104] : memref<6x6x64xf32, #tpu.memory_space<vmem>>, vector<4x4x64xf32>
    %c2_105 = arith.constant 2 : index
    %c0_106 = arith.constant 0 : index
    %c0_107 = arith.constant 0 : index
    %80 = vector.load %arg11[%c2_105, %c0_106, %c0_107] : memref<6x6x64xf32, #tpu.memory_space<vmem>>, vector<4x4x64xf32>
    %c2_108 = arith.constant 2 : index
    %c1_109 = arith.constant 1 : index
    %c0_110 = arith.constant 0 : index
    %81 = vector.load %arg11[%c2_108, %c1_109, %c0_110] : memref<6x6x64xf32, #tpu.memory_space<vmem>>, vector<4x4x64xf32>
    %c2_111 = arith.constant 2 : index
    %c2_112 = arith.constant 2 : index
    %c0_113 = arith.constant 0 : index
    %82 = vector.load %arg11[%c2_111, %c2_112, %c0_113] : memref<6x6x64xf32, #tpu.memory_space<vmem>>, vector<4x4x64xf32>
    %83 = tpu.concatenate %74, %75, %76, %77, %78, %79, %80, %81, %82 in 2 : vector<4x4x64xf32>, vector<4x4x64xf32>, vector<4x4x64xf32>, vector<4x4x64xf32>, vector<4x4x64xf32>, vector<4x4x64xf32>, vector<4x4x64xf32>, vector<4x4x64xf32>, vector<4x4x64xf32> -> vector<4x4x576xf32>
    %84 = vector.shape_cast %83 : vector<4x4x576xf32> to vector<16x576xf32>
    %85 = arith.truncf %84 : vector<16x576xf32> to vector<16x576xbf16>
    %c0_114 = arith.constant 0 : index
    %c0_115 = arith.constant 0 : index
    %86 = vector.load %arg6[%c0_114, %c0_115] : memref<576x128xbf16, #tpu.memory_space<vmem>>, vector<576x128xbf16>
    %cst_116 = arith.constant dense<0.000000e+00> : vector<16x128xf32>
    %87 = tpu.matmul %85, %86, %cst_116 {dimension_numbers = #tpu.dot_dimension_numbers<[1], [0], [0], [1], [0, 0, 1, 1], [], []>} : vector<16x576xbf16>, vector<576x128xbf16>, vector<16x128xf32> -> vector<16x128xf32>
    %c0_117 = arith.constant 0 : index
    %c0_118 = arith.constant 0 : index
    %88 = vector.load %arg7[%c0_117, %c0_118] : memref<1x128xf32, #tpu.memory_space<vmem>>, vector<1x128xf32>
    %89 = vector.broadcast %88 : vector<1x128xf32> to vector<16x128xf32>
    %90 = arith.addf %87, %89 : vector<16x128xf32>
    %cst_119 = arith.constant 0.000000e+00 : f32
    %91 = vector.broadcast %cst_119 : f32 to vector<16x128xf32>
    %92 = arith.maximumf %90, %91 : vector<16x128xf32>
    %93 = vector.shape_cast %92 : vector<16x128xf32> to vector<2x2x4x128xf32>
    %94 = vector.extract_strided_slice %93 {offsets = [0, 0, 0, 0], sizes = [2, 1, 4, 128], strides = [1, 1, 1, 1]} : vector<2x2x4x128xf32> to vector<2x1x4x128xf32>
    %95 = vector.shape_cast %94 : vector<2x1x4x128xf32> to vector<2x4x128xf32>
    %96 = vector.extract_strided_slice %93 {offsets = [0, 1, 0, 0], sizes = [2, 1, 4, 128], strides = [1, 1, 1, 1]} : vector<2x2x4x128xf32> to vector<2x1x4x128xf32>
    %97 = vector.shape_cast %96 : vector<2x1x4x128xf32> to vector<2x4x128xf32>
    %98 = arith.maximumf %95, %97 : vector<2x4x128xf32>
    %99 = vector.shape_cast %98 : vector<2x4x128xf32> to vector<2x2x2x128xf32>
    %100 = vector.extract_strided_slice %99 {offsets = [0, 0, 0, 0], sizes = [2, 2, 1, 128], strides = [1, 1, 1, 1]} : vector<2x2x2x128xf32> to vector<2x2x1x128xf32>
    %101 = vector.shape_cast %100 : vector<2x2x1x128xf32> to vector<2x2x128xf32>
    %102 = vector.extract_strided_slice %99 {offsets = [0, 0, 1, 0], sizes = [2, 2, 1, 128], strides = [1, 1, 1, 1]} : vector<2x2x2x128xf32> to vector<2x2x1x128xf32>
    %103 = vector.shape_cast %102 : vector<2x2x1x128xf32> to vector<2x2x128xf32>
    %104 = arith.maximumf %101, %103 : vector<2x2x128xf32>
    %105 = vector.shape_cast %104 : vector<2x2x128xf32> to vector<4x128xf32>
    %106 = arith.truncf %105 : vector<4x128xf32> to vector<4x128xbf16>
    %c0_120 = arith.constant 0 : index
    %c0_121 = arith.constant 0 : index
    %c0_122 = arith.constant 0 : index
    %107 = vector.load %arg8[%c0_120, %c0_121, %c0_122] : memref<1x4x128xbf16, #tpu.memory_space<vmem>>, vector<1x4x128xbf16>
    %108 = vector.shape_cast %107 : vector<1x4x128xbf16> to vector<4x128xbf16>
    %109 = vector.shape_cast %106 : vector<4x128xbf16> to vector<1x4x128xbf16>
    tpu.vector_store %arg8[%c0_120, %c0_121, %c0_122], %109 {strides = array<i32>} : memref<1x4x128xbf16, #tpu.memory_space<vmem>>, vector<1x4x128xbf16>,
    return
  }
  func.func @transform_0(%arg0: i32) -> (i32, i32, i32, i32) {
    %c0_i32 = arith.constant 0 : i32
    %c0_i32_0 = arith.constant 0 : i32
    %c0_i32_1 = arith.constant 0 : i32
    %c0_i32_2 = arith.constant 0 : i32
    return %arg0, %c0_i32, %c0_i32_0, %c0_i32_1 : i32, i32, i32, i32
  }
  func.func @transform_1(%arg0: i32) -> (i32, i32) {
    %c0_i32 = arith.constant 0 : i32
    %c0_i32_0 = arith.constant 0 : i32
    %c0_i32_1 = arith.constant 0 : i32
    return %c0_i32, %c0_i32_0 : i32, i32
  }
  func.func @transform_2(%arg0: i32) -> (i32, i32) {
    %c0_i32 = arith.constant 0 : i32
    %c0_i32_0 = arith.constant 0 : i32
    %c0_i32_1 = arith.constant 0 : i32
    return %c0_i32, %c0_i32_0 : i32, i32
  }
  func.func @transform_3(%arg0: i32) -> (i32, i32) {
    %c0_i32 = arith.constant 0 : i32
    %c0_i32_0 = arith.constant 0 : i32
    %c0_i32_1 = arith.constant 0 : i32
    return %c0_i32, %c0_i32_0 : i32, i32
  }
  func.func @transform_4(%arg0: i32) -> (i32, i32) {
    %c0_i32 = arith.constant 0 : i32
    %c0_i32_0 = arith.constant 0 : i32
    %c0_i32_1 = arith.constant 0 : i32
    return %c0_i32, %c0_i32_0 : i32, i32
  }
  func.func @transform_5(%arg0: i32) -> (i32, i32) {
    %c0_i32 = arith.constant 0 : i32
    %c0_i32_0 = arith.constant 0 : i32
    %c0_i32_1 = arith.constant 0 : i32
    return %c0_i32, %c0_i32_0 : i32, i32
  }
  func.func @transform_6(%arg0: i32) -> (i32, i32) {
    %c0_i32 = arith.constant 0 : i32
    %c0_i32_0 = arith.constant 0 : i32
    %c0_i32_1 = arith.constant 0 : i32
    return %c0_i32, %c0_i32_0 : i32, i32
  }
  func.func @transform_7(%arg0: i32) -> (i32, i32, i32) {
    %c0_i32 = arith.constant 0 : i32
    %c0_i32_0 = arith.constant 0 : i32
    %c0_i32_1 = arith.constant 0 : i32
    return %arg0, %c0_i32, %c0_i32_0 : i32, i32, i32
  }
}

module attributes {stable_mosaic.version = 11 : i64} {
  func.func @_fc_head_kernel(%arg0: i32, %arg1: i32, %arg2: memref<8x512xbf16, #tpu.memory_space<vmem>>, %arg3: memref<512x256xbf16, #tpu.memory_space<vmem>>, %arg4: memref<1x256xf32, #tpu.memory_space<vmem>>, %arg5: memref<1x256xf32, #tpu.memory_space<vmem>>, %arg6: memref<1x1xf32, #tpu.memory_space<vmem>>, %arg7: memref<8x1xf32, #tpu.memory_space<vmem>>, %arg8: memref<8x256xf32, #tpu.memory_space<vmem>>) attributes {dimension_semantics = [#tpu.dimension_semantics<parallel>, #tpu.dimension_semantics<arbitrary>], iteration_bounds = array<i64: 1, 1>, scalar_prefetch = 0 : i64, scratch_operands = 1 : i64, tpu.core_type = #tpu.core_type<tc>, window_params = [{transform_indices = @transform_0, window_bounds = array<i64: 8, 512>}, {transform_indices = @transform_1, window_bounds = array<i64: 512, 256>}, {pipeline_mode = #tpu.pipeline_mode<synchronous>, transform_indices = @transform_2, window_bounds = array<i64: 1, 256>}, {pipeline_mode = #tpu.pipeline_mode<synchronous>, transform_indices = @transform_3, window_bounds = array<i64: 1, 256>}, {pipeline_mode = #tpu.pipeline_mode<synchronous>, transform_indices = @transform_4, window_bounds = array<i64: 1, 1>}, {transform_indices = @transform_5, window_bounds = array<i64: 8, 1>}]} {
    %c0_i32 = arith.constant 0 : i32
    %0 = arith.cmpi eq, %arg1, %c0_i32 : i32
    %1 = arith.extui %0 : i1 to i32
    %c0_i32_0 = arith.constant 0 : i32
    %2 = arith.cmpi ne, %1, %c0_i32_0 : i32
    scf.if %2 {
      %cst_10 = arith.constant 0.000000e+00 : f32
      %12 = vector.broadcast %cst_10 : f32 to vector<8x256xf32>
      %c0_11 = arith.constant 0 : index
      %c0_12 = arith.constant 0 : index
      %13 = vector.load %arg8[%c0_11, %c0_12] : memref<8x256xf32, #tpu.memory_space<vmem>>, vector<8x256xf32>
      tpu.vector_store %arg8[%c0_11, %c0_12], %12 {strides = array<i32>} : memref<8x256xf32, #tpu.memory_space<vmem>>, vector<8x256xf32>,
    } else {
    }
    %c0 = arith.constant 0 : index
    %c0_1 = arith.constant 0 : index
    %3 = vector.load %arg8[%c0, %c0_1] : memref<8x256xf32, #tpu.memory_space<vmem>>, vector<8x256xf32>
    %c0_2 = arith.constant 0 : index
    %c0_3 = arith.constant 0 : index
    %4 = vector.load %arg2[%c0_2, %c0_3] : memref<8x512xbf16, #tpu.memory_space<vmem>>, vector<8x512xbf16>
    %c0_4 = arith.constant 0 : index
    %c0_5 = arith.constant 0 : index
    %5 = vector.load %arg3[%c0_4, %c0_5] : memref<512x256xbf16, #tpu.memory_space<vmem>>, vector<512x256xbf16>
    %cst = arith.constant dense<0.000000e+00> : vector<8x256xf32>
    %6 = tpu.matmul %4, %5, %cst {dimension_numbers = #tpu.dot_dimension_numbers<[1], [0], [0], [1], [0, 0, 1, 1], [], []>} : vector<8x512xbf16>, vector<512x256xbf16>, vector<8x256xf32> -> vector<8x256xf32>
    %7 = arith.addf %3, %6 : vector<8x256xf32>
    %c0_6 = arith.constant 0 : index
    %c0_7 = arith.constant 0 : index
    %8 = vector.load %arg8[%c0_6, %c0_7] : memref<8x256xf32, #tpu.memory_space<vmem>>, vector<8x256xf32>
    tpu.vector_store %arg8[%c0_6, %c0_7], %7 {strides = array<i32>} : memref<8x256xf32, #tpu.memory_space<vmem>>, vector<8x256xf32>,
    %c0_i32_8 = arith.constant 0 : i32
    %9 = arith.cmpi eq, %arg1, %c0_i32_8 : i32
    %10 = arith.extui %9 : i1 to i32
    %c0_i32_9 = arith.constant 0 : i32
    %11 = arith.cmpi ne, %10, %c0_i32_9 : i32
    scf.if %11 {
      %c0_10 = arith.constant 0 : index
      %c0_11 = arith.constant 0 : index
      %12 = vector.load %arg8[%c0_10, %c0_11] : memref<8x256xf32, #tpu.memory_space<vmem>>, vector<8x256xf32>
      %c0_12 = arith.constant 0 : index
      %c0_13 = arith.constant 0 : index
      %13 = vector.load %arg4[%c0_12, %c0_13] : memref<1x256xf32, #tpu.memory_space<vmem>>, vector<1x256xf32>
      %14 = vector.broadcast %13 : vector<1x256xf32> to vector<8x256xf32>
      %15 = arith.addf %12, %14 : vector<8x256xf32>
      %cst_14 = arith.constant 0.000000e+00 : f32
      %16 = vector.broadcast %cst_14 : f32 to vector<8x256xf32>
      %17 = arith.maximumf %15, %16 : vector<8x256xf32>
      %c0_15 = arith.constant 0 : index
      %c0_16 = arith.constant 0 : index
      %18 = vector.load %arg5[%c0_15, %c0_16] : memref<1x256xf32, #tpu.memory_space<vmem>>, vector<1x256xf32>
      %19 = vector.broadcast %18 : vector<1x256xf32> to vector<8x256xf32>
      %20 = arith.mulf %17, %19 : vector<8x256xf32>
      %cst_17 = arith.constant dense<0.000000e+00> : vector<8xf32>
      %21 = vector.multi_reduction <add>, %20, %cst_17 [1] : vector<8x256xf32> to vector<8xf32>
      %22 = vector.shape_cast %21 : vector<8xf32> to vector<8x1xf32>
      %c0_18 = arith.constant 0 : index
      %c0_19 = arith.constant 0 : index
      %23 = vector.load %arg6[%c0_18, %c0_19] : memref<1x1xf32, #tpu.memory_space<vmem>>, vector<1x1xf32>
      %24 = vector.broadcast %23 : vector<1x1xf32> to vector<8x1xf32>
      %25 = arith.addf %22, %24 : vector<8x1xf32>
      %c0_20 = arith.constant 0 : index
      %c0_21 = arith.constant 0 : index
      %26 = vector.load %arg7[%c0_20, %c0_21] : memref<8x1xf32, #tpu.memory_space<vmem>>, vector<8x1xf32>
      tpu.vector_store %arg7[%c0_20, %c0_21], %25 {strides = array<i32>} : memref<8x1xf32, #tpu.memory_space<vmem>>, vector<8x1xf32>,
    } else {
    }
    return
  }
  func.func @transform_0(%arg0: i32, %arg1: i32) -> (i32, i32) {
    %c0_i32 = arith.constant 0 : i32
    return %arg0, %arg1 : i32, i32
  }
  func.func @transform_1(%arg0: i32, %arg1: i32) -> (i32, i32) {
    %c0_i32 = arith.constant 0 : i32
    %c0_i32_0 = arith.constant 0 : i32
    return %arg1, %c0_i32 : i32, i32
  }
  func.func @transform_2(%arg0: i32, %arg1: i32) -> (i32, i32) {
    %c0_i32 = arith.constant 0 : i32
    %c0_i32_0 = arith.constant 0 : i32
    %c0_i32_1 = arith.constant 0 : i32
    return %c0_i32, %c0_i32_0 : i32, i32
  }
  func.func @transform_3(%arg0: i32, %arg1: i32) -> (i32, i32) {
    %c0_i32 = arith.constant 0 : i32
    %c0_i32_0 = arith.constant 0 : i32
    %c0_i32_1 = arith.constant 0 : i32
    return %c0_i32, %c0_i32_0 : i32, i32
  }
  func.func @transform_4(%arg0: i32, %arg1: i32) -> (i32, i32) {
    %c0_i32 = arith.constant 0 : i32
    %c0_i32_0 = arith.constant 0 : i32
    %c0_i32_1 = arith.constant 0 : i32
    return %c0_i32, %c0_i32_0 : i32, i32
  }
  func.func @transform_5(%arg0: i32, %arg1: i32) -> (i32, i32) {
    %c0_i32 = arith.constant 0 : i32
    %c0_i32_0 = arith.constant 0 : i32
    return %arg0, %c0_i32 : i32, i32
  }
}

</mosaic_0001>

<bundles_post_ra>
// kernel: detection_net_forward.3
= control target key start
LH: loop header
LB: loop body
LE: loop exit
PB: predicated region body
PF: predicated region fallthrough
CT: control target
= control target key end

     0   :  { %s1012_s0 = inlined_call_operand.vmem [shape: bf16[8,512], index: 0, kind: input, shape index: {}]   ;;  %s1013_s1 = inlined_call_operand.hbm [shape: bf16[512,256], index: 1, kind: input, shape index: {}]   ;;  %s1014_s2 = inlined_call_operand.vmem [shape: f32[1,256], index: 2, kind: input, shape index: {}]   ;;  %s1015_s3 = inlined_call_operand.vmem [shape: f32[1,256], index: 3, kind: input, shape index: {}]   ;;  %s1016_s4 = inlined_call_operand.<no memory space> [shape: f32[1,1], index: 4, kind: input, shape index: {}]   ;;  %s1017_s5 = inlined_call_operand.vmem [shape: f32[8,1], index: 5, kind: output, shape index: {}]  }
   0x1   :  { %v10_v0 = vstv %s1016_s4 }
   0x2   :  { %11 = vst [vmem:[#allocation3] sm:$0x1] %v10_v0 }
   0x3   :  { %12 = vsyncpa [#allocation5], 0  ;;  %s19_s22 = sshll.u32 %s1013_s1, 4  ;;  %s942_s23 = smov [#allocation4]   ;;  %s20_s22 = int_to_ptr.hbm [resolvable:$true] %s19_s22 }
   0x4   :  { %s21_s24 = sshll.u32 %s942_s23, 4  ;;  %s943_s25 = smov 128   ;;  %s22_s24 = int_to_ptr.vmem [resolvable:$true] %s21_s24 }
   0x5   :  { %s944_s26 = smov 8  }
   0x6   :  { %27 = dma.hbm_to_vmem [thread:$0]  %s20_s22, 8192, %s22_s24, [#allocation5], %s943_s25, %s943_s25, %s944_s26  }
   0x7   :  { %940 = dma.done.wait [#allocation5], 8192  }
   0x8   :  { %941 = vsyncadd [#allocation5], 4294959104  ;;  %v650_v1 = vld [vmem:[#allocation4 + $0x70] sm:$0xf]  ;;  %v863_v2 = vld [vmem:[#allocation4 + $0x74] sm:$0xf0] }
   0x9   :  { %v714_v3 = vld [vmem:[#allocation4 + $0xf0] sm:$0xf]  ;;  %v651_v4 = vor.u32 %v863_v2, %v650_v1  ;;  %v879_v5 = vld [vmem:[#allocation4 + $0xf4] sm:$0xf0]  ;;  %v642_v12 = vld [vmem:[#allocation4 + $0x60] sm:$0xf] }
   0xa   :  { %v778_v6 = vld [vmem:[#allocation4 + $0x170] sm:$0xf]  ;;  %v895_v7 = vld [vmem:[#allocation4 + $0x174] sm:$0xf0]  ;;  %v715_v8 = vor.u32 %v879_v5, %v714_v3  ;;  %v861_v14 = vld [vmem:[#allocation4 + $0x64] sm:$0xf0] }
   0xb   :  { %v779_v9 = vor.u32 %v895_v7, %v778_v6  ;;  %v842_v10 = vld [vmem:[#allocation4 + $0x1f0] sm:$0xf]  ;;  %v911_v11 = vld [vmem:[#allocation4 + $0x1f4] sm:$0xf0]  ;;  %446 = vmatpush.bf16.msra.mxu0 %v651_v4  ;;  %v706_v15 = vld [vmem:[#allocation4 + $0xe0] sm:$0xf]  ;;  %v643_v17 = vor.u32 %v861_v14, %v642_v12 }
   0xc   :  { %v843_v13 = vor.u32 %v911_v11, %v842_v10  ;;  %v877_v16 = vld [vmem:[#allocation4 + $0xe4] sm:$0xf0]  ;;  %459 = vmatpush.bf16.msra.mxu1 %v715_v8  ;;  %v770_v19 = vld [vmem:[#allocation4 + $0x160] sm:$0xf]  ;;  %v634_v24 = vld [vmem:[#allocation4 + $0x50] sm:$0xf] }
   0xd   :  { %472 = vmatpush.bf16.msra.mxu2 %v779_v9  ;;  %v707_v18 = vor.u32 %v877_v16, %v706_v15  ;;  %v893_v20 = vld [vmem:[#allocation4 + $0x164] sm:$0xf0]  ;;  %v834_v21 = vld [vmem:[#allocation4 + $0x1e0] sm:$0xf]  ;;  %v859_v25 = vld [vmem:[#allocation4 + $0x54] sm:$0xf0] }
   0xe   :  { %485 = vmatpush.bf16.msra.mxu3 %v843_v13  ;;  %v771_v22 = vor.u32 %v893_v20, %v770_v19  ;;  %v909_v23 = vld [vmem:[#allocation4 + $0x1e4] sm:$0xf0]  ;;  %v698_v27 = vld [vmem:[#allocation4 + $0xd0] sm:$0xf]  ;;  %v875_v28 = vld [vmem:[#allocation4 + $0xd4] sm:$0xf0]  ;;  %v635_v30 = vor.u32 %v859_v25, %v634_v24 }
   0xf   :  { %v835_v26 = vor.u32 %v909_v23, %v834_v21  ;;  %v762_v29 = vld [vmem:[#allocation4 + $0x150] sm:$0xf]  ;;  %447 = vmatpush.bf16.msra.mxu0 %v643_v17  ;;  %v891_v31 = vld [vmem:[#allocation4 + $0x154] sm:$0xf0]  ;;  %v699_v34 = vor.u32 %v875_v28, %v698_v27  ;;  %v626_v36 = vld [vmem:[#allocation4 + $0x40] sm:$0xf] }
  0x10   :  { %v826_v32 = vld [vmem:[#allocation4 + $0x1d0] sm:$0xf]  ;;  %v907_v33 = vld [vmem:[#allocation4 + $0x1d4] sm:$0xf0]  ;;  %460 = vmatpush.bf16.msra.mxu1 %v707_v18  ;;  %v763_v35 = vor.u32 %v891_v31, %v762_v29  ;;  %v857_v37 = vld [vmem:[#allocation4 + $0x44] sm:$0xf0] }
  0x11   :  { %473 = vmatpush.bf16.msra.mxu2 %v771_v22  ;;  %v690_v38 = vld [vmem:[#allocation4 + $0xc0] sm:$0xf]  ;;  %v827_v39 = vor.u32 %v907_v33, %v826_v32  ;;  %v873_v40 = vld [vmem:[#allocation4 + $0xc4] sm:$0xf0]  ;;  %v627_v45 = vor.u32 %v857_v37, %v626_v36  ;;  %v618_v48 = vld [vmem:[#allocation4 + $0x30] sm:$0xf] }
  0x12   :  { %486 = vmatpush.bf16.msra.mxu3 %v835_v26  ;;  %v754_v41 = vld [vmem:[#allocation4 + $0x140] sm:$0xf]  ;;  %v889_v42 = vld [vmem:[#allocation4 + $0x144] sm:$0xf0]  ;;  %v691_v46 = vor.u32 %v873_v40, %v690_v38  ;;  %v855_v49 = vld [vmem:[#allocation4 + $0x34] sm:$0xf0] }
  0x13   :  { %v818_v43 = vld [vmem:[#allocation4 + $0x1c0] sm:$0xf]  ;;  %v905_v44 = vld [vmem:[#allocation4 + $0x1c4] sm:$0xf0]  ;;  %448 = vmatpush.bf16.msra.mxu0 %v635_v30  ;;  %v755_v47 = vor.u32 %v889_v42, %v754_v41  ;;  %v682_v50 = vld [vmem:[#allocation4 + $0xb0] sm:$0xf]  ;;  %v619_v57 = vor.u32 %v855_v49, %v618_v48 }
  0x14   :  { %461 = vmatpush.bf16.msra.mxu1 %v699_v34  ;;  %v819_v51 = vor.u32 %v905_v44, %v818_v43  ;;  %v871_v52 = vld [vmem:[#allocation4 + $0xb4] sm:$0xf0]  ;;  %v746_v53 = vld [vmem:[#allocation4 + $0x130] sm:$0xf]  ;;  %v610_v60 = vld [vmem:[#allocation4 + $0x20] sm:$0xf] }
  0x15   :  { %474 = vmatpush.bf16.msra.mxu2 %v763_v35  ;;  %v887_v54 = vld [vmem:[#allocation4 + $0x134] sm:$0xf0]  ;;  %v810_v55 = vld [vmem:[#allocation4 + $0x1b0] sm:$0xf]  ;;  %v683_v58 = vor.u32 %v871_v52, %v682_v50  ;;  %v853_v61 = vld [vmem:[#allocation4 + $0x24] sm:$0xf0] }
  0x16   :  { %487 = vmatpush.bf16.msra.mxu3 %v827_v39  ;;  %v903_v56 = vld [vmem:[#allocation4 + $0x1b4] sm:$0xf0]  ;;  %v747_v59 = vor.u32 %v887_v54, %v746_v53  ;;  %v674_v62 = vld [vmem:[#allocation4 + $0xa0] sm:$0xf]  ;;  %v869_v0 = vld [vmem:[#allocation4 + $0xa4] sm:$0xf0]  ;;  %v611_v5 = vor.u32 %v853_v61, %v610_v60 }
  0x17   :  { %449 = vmatpush.bf16.msra.mxu0 %v627_v45  ;;  %v811_v63 = vor.u32 %v903_v56, %v810_v55  ;;  %v738_v1 = vld [vmem:[#allocation4 + $0x120] sm:$0xf]  ;;  %v885_v2 = vld [vmem:[#allocation4 + $0x124] sm:$0xf0]  ;;  %v675_v6 = vor.u32 %v869_v0, %v674_v62  ;;  %v602_v8 = vld [vmem:[#allocation4 + $0x10] sm:$0xf] }
  0x18   :  { %462 = vmatpush.bf16.msra.mxu1 %v691_v46  ;;  %v802_v3 = vld [vmem:[#allocation4 + $0x1a0] sm:$0xf]  ;;  %v901_v4 = vld [vmem:[#allocation4 + $0x1a4] sm:$0xf0]  ;;  %v739_v7 = vor.u32 %v885_v2, %v738_v1  ;;  %v851_v9 = vld [vmem:[#allocation4 + $0x14] sm:$0xf0] }
  0x19   :  { %475 = vmatpush.bf16.msra.mxu2 %v755_v47  ;;  %v666_v10 = vld [vmem:[#allocation4 + $0x90] sm:$0xf]  ;;  %v803_v11 = vor.u32 %v901_v4, %v802_v3  ;;  %v867_v12 = vld [vmem:[#allocation4 + $0x94] sm:$0xf0]  ;;  %v603_v17 = vor.u32 %v851_v9, %v602_v8  ;;  %v594_v18 = vld [vmem:[#allocation4] sm:$0xf] }
  0x1a   :  { %488 = vmatpush.bf16.msra.mxu3 %v819_v51  ;;  %v730_v13 = vld [vmem:[#allocation4 + $0x110] sm:$0xf]  ;;  %v883_v14 = vld [vmem:[#allocation4 + $0x114] sm:$0xf0]  ;;  %v849_v19 = vld [vmem:[#allocation4 + $0x4] sm:$0xf0]  ;;  %v667_v21 = vor.u32 %v867_v12, %v666_v10 }
  0x1b   :  { %450 = vmatpush.bf16.msra.mxu0 %v619_v57  ;;  %v794_v15 = vld [vmem:[#allocation4 + $0x190] sm:$0xf]  ;;  %v899_v16 = vld [vmem:[#allocation4 + $0x194] sm:$0xf0]  ;;  %v658_v20 = vld [vmem:[#allocation4 + $0x80] sm:$0xf]  ;;  %v731_v22 = vor.u32 %v883_v14, %v730_v13  ;;  %v595_v33 = vor.u32 %v849_v19, %v594_v18 }
  0x1c   :  { %463 = vmatpush.bf16.msra.mxu1 %v683_v58  ;;  %v865_v23 = vld [vmem:[#allocation4 + $0x84] sm:$0xf0]  ;;  %v722_v24 = vld [vmem:[#allocation4 + $0x100] sm:$0xf]  ;;  %v795_v26 = vor.u32 %v899_v16, %v794_v15  ;;  %v862_v29 = vld [vmem:[#allocation4 + $0x74] sm:$0xf] }
  0x1d   :  { %476 = vmatpush.bf16.msra.mxu2 %v747_v59  ;;  %v881_v25 = vld [vmem:[#allocation4 + $0x104] sm:$0xf0]  ;;  %v786_v27 = vld [vmem:[#allocation4 + $0x180] sm:$0xf]  ;;  %v652_v30 = vld [vmem:[#allocation4 + $0x78] sm:$0xf0]  ;;  %v659_v38 = vor.u32 %v865_v23, %v658_v20 }
  0x1e   :  { %489 = vmatpush.bf16.msra.mxu3 %v811_v63  ;;  %v897_v28 = vld [vmem:[#allocation4 + $0x184] sm:$0xf0]  ;;  %v878_v31 = vld [vmem:[#allocation4 + $0xf4] sm:$0xf]  ;;  %v716_v34 = vld [vmem:[#allocation4 + $0xf8] sm:$0xf0]  ;;  %v723_v39 = vor.u32 %v881_v25, %v722_v24  ;;  %v655_v44 = vor.u32 %v862_v29, %v652_v30 }
  0x1f   :  { %451 = vmatpush.bf16.msra.mxu0 %v611_v5  ;;  %v47_v32 = vld [vmem:[%s1012_s0 + $0x8] sm:$0xff]  ;;  %v894_v35 = vld [vmem:[#allocation4 + $0x174] sm:$0xf]  ;;  %v780_v36 = vld [vmem:[#allocation4 + $0x178] sm:$0xf0]  ;;  %v787_v43 = vor.u32 %v897_v28, %v786_v27  ;;  %v719_v46 = vor.u32 %v878_v31, %v716_v34  ;;  %vm585_vm0 = vcmask 7168  }
  0x20   :  { %464 = vmatpush.bf16.msra.mxu1 %v675_v6  ;;  %v116_v37 = vunpack.c.l.b16 %v47_v32  ;;  %v910_v40 = vld [vmem:[#allocation4 + $0x1f4] sm:$0xf]  ;;  %v844_v41 = vld [vmem:[#allocation4 + $0x1f8] sm:$0xf0]  ;;  %v117_v42 = vunpack.c.h.b16 %v47_v32  ;;  %v783_v47 = vor.u32 %v894_v35, %v780_v36  ;;  %v860_v48 = vld [vmem:[#allocation4 + $0x64] sm:$0xf] }
  0x21   :  { %477 = vmatpush.bf16.msra.mxu2 %v739_v7  ;;  %v46_v45 = vld [vmem:[%s1012_s0] sm:$0xff]  ;;  %v644_v49 = vld [vmem:[#allocation4 + $0x68] sm:$0xf0]  ;;  %v847_v53 = vor.u32 %v910_v40, %v844_v41  ;;  %v858_v2 = vld [vmem:[#allocation4 + $0x54] sm:$0xf] }
  0x22   :  { %490 = vmatpush.bf16.msra.mxu3 %v803_v11  ;;  %v876_v50 = vld [vmem:[#allocation4 + $0xe4] sm:$0xf]  ;;  %v114_v51 = vunpack.c.l.b16 %v46_v45  ;;  %v115_v52 = vunpack.c.h.b16 %v46_v45  ;;  %v708_v54 = vld [vmem:[#allocation4 + $0xe8] sm:$0xf0]  ;;  %v987_v57 = vpack.c.b16 %v116_v37, %v116_v37  ;;  %v989_v60 = vpack.c.b16 %v117_v42, %v117_v42  ;;  %v636_v3 = vld [vmem:[#allocation4 + $0x58] sm:$0xf0] }
  0x23   :  { %452 = vmatpush.bf16.msra.mxu0 %v603_v17  ;;  %v892_v55 = vld [vmem:[#allocation4 + $0x164] sm:$0xf]  ;;  %v772_v56 = vld [vmem:[#allocation4 + $0x168] sm:$0xf0]  ;;  %v647_v62 = vor.u32 %v860_v48, %v644_v49  ;;  %v711_v0 = vor.u32 %v876_v50, %v708_v54  ;;  %v874_v4 = vld [vmem:[#allocation4 + $0xd4] sm:$0xf]  ;;  %v639_v11 = vor.u32 %v858_v2, %v636_v3 }
  0x24   :  { %465 = vmatpush.bf16.msra.mxu1 %v667_v21  ;;  %v908_v58 = vld [vmem:[#allocation4 + $0x1e4] sm:$0xf]  ;;  %v836_v59 = vld [vmem:[#allocation4 + $0x1e8] sm:$0xf0]  ;;  %v991_v61 = vpack.c.b16 %v114_v51, %v114_v51  ;;  %v993_v63 = vpack.c.b16 %v115_v52, %v115_v52  ;;  %v775_v1 = vor.u32 %v892_v55, %v772_v56  ;;  %v700_v6 = vld [vmem:[#allocation4 + $0xd8] sm:$0xf0] }
  0x25   :  { %478 = vmatpush.bf16.msra.mxu2 %v731_v22  ;;  %v839_v5 = vor.u32 %v908_v58, %v836_v59  ;;  %v890_v7 = vld [vmem:[#allocation4 + $0x154] sm:$0xf]  ;;  %v764_v8 = vld [vmem:[#allocation4 + $0x158] sm:$0xf0]  ;;  %v703_v12 = vor.u32 %v874_v4, %v700_v6  ;;  %v856_v14 = vld [vmem:[#allocation4 + $0x44] sm:$0xf] }
  0x26   :  { %491 = vmatpush.bf16.msra.mxu3 %v795_v26  ;;  %v906_v9 = vld [vmem:[#allocation4 + $0x1d4] sm:$0xf]  ;;  %v828_v10 = vld [vmem:[#allocation4 + $0x1d8] sm:$0xf0]  ;;  %v767_v13 = vor.u32 %v890_v7, %v764_v8  ;;  %v628_v15 = vld [vmem:[#allocation4 + $0x48] sm:$0xf0] }
  0x27   :  { %453 = vmatpush.bf16.msra.mxu0 %v595_v33  ;;  %v872_v16 = vld [vmem:[#allocation4 + $0xc4] sm:$0xf]  ;;  %v831_v17 = vor.u32 %v906_v9, %v828_v10  ;;  %v692_v18 = vld [vmem:[#allocation4 + $0xc8] sm:$0xf0]  ;;  %v631_v23 = vor.u32 %v856_v14, %v628_v15  ;;  %v854_v24 = vld [vmem:[#allocation4 + $0x34] sm:$0xf] }
  0x28   :  { %466 = vmatpush.bf16.msra.mxu1 %v659_v38  ;;  %v888_v19 = vld [vmem:[#allocation4 + $0x144] sm:$0xf]  ;;  %v756_v20 = vld [vmem:[#allocation4 + $0x148] sm:$0xf0]  ;;  %v695_v25 = vor.u32 %v872_v16, %v692_v18  ;;  %v620_v27 = vld [vmem:[#allocation4 + $0x38] sm:$0xf0] }
  0x29   :  { %479 = vmatpush.bf16.msra.mxu2 %v723_v39  ;;  %v904_v21 = vld [vmem:[#allocation4 + $0x1c4] sm:$0xf]  ;;  %v820_v22 = vld [vmem:[#allocation4 + $0x1c8] sm:$0xf0]  ;;  %v759_v26 = vor.u32 %v888_v19, %v756_v20  ;;  %v870_v28 = vld [vmem:[#allocation4 + $0xb4] sm:$0xf]  ;;  %v623_v35 = vor.u32 %v854_v24, %v620_v27 }
  0x2a   :  { %492 = vmatpush.bf16.msra.mxu3 %v787_v43  ;;  %454 = vmatmul.bf16.vlgmr.msra.gmra.mxu0 %v991_v61  ;;  %v684_v29 = vld [vmem:[#allocation4 + $0xb8] sm:$0xf0]  ;;  %v823_v30 = vor.u32 %v904_v21, %v820_v22  ;;  %v886_v31 = vld [vmem:[#allocation4 + $0x134] sm:$0xf]  ;;  %v852_v38 = vld [vmem:[#allocation4 + $0x24] sm:$0xf] }
  0x2b   :  { %498 = vmatpush.bf16.msrb.mxu0 %v655_v44  ;;  %467 = vmatmul.bf16.vlgmr.msra.gmra.mxu1 %v993_v63  ;;  %v748_v32 = vld [vmem:[#allocation4 + $0x138] sm:$0xf0]  ;;  %v902_v33 = vld [vmem:[#allocation4 + $0x1b4] sm:$0xf]  ;;  %v687_v36 = vor.u32 %v870_v28, %v684_v29  ;;  %v612_v39 = vld [vmem:[#allocation4 + $0x28] sm:$0xf0] }
  0x2c   :  { %511 = vmatpush.bf16.msrb.mxu1 %v719_v46  ;;  %480 = vmatmul.bf16.vlgmr.msra.gmra.mxu2 %v987_v57  ;;  %v812_v34 = vld [vmem:[#allocation4 + $0x1b8] sm:$0xf0]  ;;  %v751_v37 = vor.u32 %v886_v31, %v748_v32  ;;  %v868_v40 = vld [vmem:[#allocation4 + $0xa4] sm:$0xf]  ;;  %v676_v42 = vld [vmem:[#allocation4 + $0xa8] sm:$0xf0] }
  0x2d   :  { %524 = vmatpush.bf16.msrb.mxu2 %v783_v47  ;;  %493 = vmatmul.bf16.vlgmr.msra.gmra.mxu3 %v989_v60  ;;  %v815_v41 = vor.u32 %v902_v33, %v812_v34  ;;  %v884_v43 = vld [vmem:[#allocation4 + $0x124] sm:$0xf]  ;;  %v740_v44 = vld [vmem:[#allocation4 + $0x128] sm:$0xf0]  ;;  %v615_v47 = vor.u32 %v852_v38, %v612_v39  ;;  %v679_v48 = vor.u32 %v868_v40, %v676_v42  ;;  %v850_v50 = vld [vmem:[#allocation4 + $0x14] sm:$0xf] }
  0x2e   :  { %537 = vmatpush.bf16.msrb.mxu3 %v847_v53  ;;  %v900_v45 = vld [vmem:[#allocation4 + $0x1a4] sm:$0xf]  ;;  %v804_v46 = vld [vmem:[#allocation4 + $0x1a8] sm:$0xf0]  ;;  %v743_v49 = vor.u32 %v884_v43, %v740_v44  ;;  %v604_v51 = vld [vmem:[#allocation4 + $0x18] sm:$0xf0] }
  0x2f   :  { %499 = vmatpush.bf16.msrb.mxu0 %v647_v62  ;;  %v866_v52 = vld [vmem:[#allocation4 + $0x94] sm:$0xf]  ;;  %v807_v53 = vor.u32 %v900_v45, %v804_v46  ;;  %v668_v54 = vld [vmem:[#allocation4 + $0x98] sm:$0xf0]  ;;  %v607_v62 = vor.u32 %v850_v50, %v604_v51  ;;  %v848_v2 = vld [vmem:[#allocation4 + $0x4] sm:$0xf] }
  0x30   :  { %512 = vmatpush.bf16.msrb.mxu1 %v711_v0  ;;  %v882_v55 = vld [vmem:[#allocation4 + $0x114] sm:$0xf]  ;;  %v732_v56 = vld [vmem:[#allocation4 + $0x118] sm:$0xf0]  ;;  %v671_v0 = vor.u32 %v866_v52, %v668_v54  ;;  %v596_v3 = vld [vmem:[#allocation4 + $0x8] sm:$0xf0] }
  0x31   :  { %525 = vmatpush.bf16.msrb.mxu2 %v775_v1  ;;  %v898_v58 = vld [vmem:[#allocation4 + $0x194] sm:$0xf]  ;;  %v796_v59 = vld [vmem:[#allocation4 + $0x198] sm:$0xf0]  ;;  %v735_v1 = vor.u32 %v882_v55, %v732_v56  ;;  %v864_v4 = vld [vmem:[#allocation4 + $0x84] sm:$0xf] }
  0x32   :  { %538 = vmatpush.bf16.msrb.mxu3 %v839_v5  ;;  %v799_v5 = vor.u32 %v898_v58, %v796_v59  ;;  %v660_v6 = vld [vmem:[#allocation4 + $0x88] sm:$0xf0]  ;;  %v880_v7 = vld [vmem:[#allocation4 + $0x104] sm:$0xf]  ;;  %v569_v34 = vld [vmem:[%s1015_s3] sm:$0x3] }
  0x33   :  { %500 = vmatpush.bf16.msrb.mxu0 %v639_v11  ;;  %v724_v8 = vld [vmem:[#allocation4 + $0x108] sm:$0xf0]  ;;  %v896_v9 = vld [vmem:[#allocation4 + $0x184] sm:$0xf]  ;;  %v599_v11 = vor.u32 %v848_v2, %v596_v3  ;;  %v571_v38 = vperm.slane %v569_v34, 0  ;;  %v572_v39 = vperm.slane %v569_v34, 1 }
  0x34   :  { %513 = vmatpush.bf16.msrb.mxu1 %v703_v12  ;;  %v788_v10 = vld [vmem:[#allocation4 + $0x188] sm:$0xf0]  ;;  %v663_v12 = vor.u32 %v864_v4, %v660_v6  ;;  %v915_v46 = vld [vmem:[#allocation3] ss:$0 sm:$0xff] }
  0x35   :  { %526 = vmatpush.bf16.msrb.mxu2 %v767_v13  ;;  %v727_v13 = vor.u32 %v880_v7, %v724_v8  ;;  %v791_v14 = vor.u32 %v896_v9, %v788_v10 }
  0x36   :  { %539 = vmatpush.bf16.msrb.mxu3 %v831_v17 }
  0x37   :  { %501 = vmatpush.bf16.msrb.mxu0 %v631_v23 }
  0x38   :  { %514 = vmatpush.bf16.msrb.mxu1 %v695_v25 }
  0x39   :  { %527 = vmatpush.bf16.msrb.mxu2 %v759_v26 }
  0x3a   :  { %540 = vmatpush.bf16.msrb.mxu3 %v823_v30 }
  0x3b   :  { %502 = vmatpush.bf16.msrb.mxu0 %v623_v35 }
  0x3c   :  { %515 = vmatpush.bf16.msrb.mxu1 %v687_v36 }
  0x3d   :  { %528 = vmatpush.bf16.msrb.mxu2 %v751_v37 }
  0x3e   :  { %541 = vmatpush.bf16.msrb.mxu3 %v815_v41 }
  0x3f   :  { %503 = vmatpush.bf16.msrb.mxu0 %v615_v47 }
  0x40   :  { %516 = vmatpush.bf16.msrb.mxu1 %v679_v48 }
  0x41   :  { %529 = vmatpush.bf16.msrb.mxu2 %v743_v49 }
  0x42   :  { %542 = vmatpush.bf16.msrb.mxu3 %v807_v53 }
  0x43   :  { %504 = vmatpush.bf16.msrb.mxu0 %v607_v62 }
  0x44   :  { %517 = vmatpush.bf16.msrb.mxu1 %v671_v0 }
  0x45   :  { %530 = vmatpush.bf16.msrb.mxu2 %v735_v1 }
  0x46   :  { %543 = vmatpush.bf16.msrb.mxu3 %v799_v5 }
  0x47   :  { %505 = vmatpush.bf16.msrb.mxu0 %v599_v11 }
  0x48   :  { %518 = vmatpush.bf16.msrb.mxu1 %v663_v12 }
  0x49   :  { %531 = vmatpush.bf16.msrb.mxu2 %v727_v13 }
  0x4a   :  { %544 = vmatpush.bf16.msrb.mxu3 %v791_v14  ;;  %506 = vmatmul.bf16.vlgmr.msrb.gmra.mxu0 %v991_v61  ;;  %v559_v61 = vld [vmem:[%s1014_s2] sm:$0x3] }
  0x4b   :  { %519 = vmatmul.bf16.vlgmr.msrb.gmra.mxu1 %v993_v63  ;;  %v562_v31 = vperm.slane %v559_v61, 1 }
  0x4c   :  { %532 = vmatmul.bf16.vlgmr.msrb.gmra.mxu2 %v987_v57  ;;  %v561_v57 = vperm.slane %v559_v61, 0 }
  0x4d   :  { %545 = vmatmul.bf16.vlgmr.msrb.gmra.mxu3 %v989_v60 }
  0xa7   :  { %v455_v15 = vpop.f32.mrf.mxu0 }
  0xa8   :  { %v468_v16 = vpop.f32.mrf.mxu1 }
  0xa9   :  { %v469_v23 = vadd.f32 %v468_v16, %v455_v15 }
  0xaf   :  { %v481_v17 = vpop.f32.mrf.mxu2  ;;  %v457_v19 = vpop.f32.mrf.mxu0 }
  0xb0   :  { %v494_v18 = vpop.f32.mrf.mxu3  ;;  %v470_v20 = vpop.f32.mrf.mxu1  ;;  %v482_v24 = vadd.f32 %v481_v17, %v469_v23 }
  0xb2   :  { %v495_v26 = vadd.f32 %v494_v18, %v482_v24 }
  0xb4   :  { %v565_v28 = vadd.f32 %v561_v57, %v495_v26 }
  0xb6   :  { %v567_v36 = vmax.f32 %v565_v28, 0.0 }
  0xb7   :  { %v483_v21 = vpop.f32.mrf.mxu2 }
  0xb8   :  { %v496_v22 = vpop.f32.mrf.mxu3  ;;  %v575_v43 = vmul.f32 %v571_v38, %v567_v36 }
  0xc7   :  { %v507_v25 = vpop.f32.mrf.mxu0 }
  0xc8   :  { %v520_v63 = vpop.f32.mrf.mxu1 }
  0xc9   :  { %v521_v27 = vadd.f32 %v520_v63, %v507_v25 }
  0xcf   :  { %v533_v60 = vpop.f32.mrf.mxu2  ;;  %v509_v32 = vpop.f32.mrf.mxu0 }
  0xd0   :  { %v534_v29 = vadd.f32 %v533_v60, %v521_v27  ;;  %v546_v30 = vpop.f32.mrf.mxu3  ;;  %v522_v33 = vpop.f32.mrf.mxu1 }
  0xd2   :  { %v547_v35 = vadd.f32 %v546_v30, %v534_v29 }
  0xd4   :  { %v566_v37 = vadd.f32 %v562_v31, %v547_v35 }
  0xd6   :  { %v568_v40 = vmax.f32 %v566_v37, 0.0 }
  0xd7   :  { %v535_v41 = vpop.f32.mrf.mxu2 }
  0xd8   :  { %v548_v42 = vpop.f32.mrf.mxu3  ;;  %v576_v44 = vmul.f32 %v572_v39, %v568_v40 }
  0xda   :  { %v577_v45 = vadd.f32 %v576_v44, %v575_v43 }
  0xdc   :  { %578 = vadd.xlane.f32.xlu0 %v577_v45 }
 0x14f   :  { %v579_v47 = vpop.xlane.xlu0 %578 }
 0x150   :  { %v584_v48 = vadd.f32 %v915_v46, %v579_v47 }
 0x152   :  { %586 = vst.msk [vmem:[%s1017_s5] sm:$0xff] %vm585_vm0, %v584_v48 }
 0x153   :  { %591 = vsyncpa [#allocation5], 1 }

// kernel: detection_net_forward.2
= control target key start
LH: loop header
LB: loop body
LE: loop exit
PB: predicated region body
PF: predicated region fallthrough
CT: control target
= control target key end

     0   :  { %s5629_s24 = smov 0   ;;  %s7266_s0 = inlined_call_operand.vmem [shape: bf16[2,16,16,3], index: 0, kind: input, shape index: {}]   ;;  %s7267_s1 = inlined_call_operand.vmem [shape: bf16[27,32], index: 1, kind: input, shape index: {}]   ;;  %s7268_s2 = inlined_call_operand.vmem [shape: f32[1,32], index: 2, kind: input, shape index: {}]   ;;  %s7269_s3 = inlined_call_operand.vmem [shape: bf16[288,64], index: 3, kind: input, shape index: {}]   ;;  %s7270_s4 = inlined_call_operand.vmem [shape: f32[1,64], index: 4, kind: input, shape index: {}]   ;;  %s7271_s5 = inlined_call_operand.vmem [shape: bf16[576,128], index: 5, kind: input, shape index: {}]   ;;  %s7272_s6 = inlined_call_operand.vmem [shape: f32[1,128], index: 6, kind: input, shape index: {}]   ;;  %s7273_s7 = inlined_call_operand.vmem [shape: bf16[2,4,128], index: 7, kind: output, shape index: {}]  }
   0x1 LB: > { %s4286_s25 = sadd.s32 4294967295, %s5574_s24   ;;  %p4290_p0 = scmp.ge.s32.totalorder %s5574_s24, 1  ;;  %s5574_s24 = sphi %s5629_s24, %s17_s24  }
   0x2   : > { %p237_p1 = scmp.lt.s32.totalorder %s5574_s24, 3 }
   0x4   : > { %p238_p2 = pnand %p4290_p0, %p237_p1 }
   0x5   : > { %s5577_s26 = smov (!%p238_p2), 3   ;;  %p268_p3 = scmp.lt.s32.totalorder (!%p238_p2), %s4286_s25, 1 }
   0x6   : > { %241 = sbr.rel (%p238_p2) target bundleno = 1317 (0x525), region = 48  ;;  %s5578_s8 = smov (!%p238_p2), 6  }
   0x7   : > { %s5579_s9 = smov (!%p238_p2), 9   ;;  %s5580_s10 = smov (!%p238_p2), 12  }
   0x8   : > { %s5581_s11 = smov (!%p238_p2), 18   ;;  %s5582_s12 = smov (!%p238_p2), 15  }
   0x9   : > { %s5583_s13 = smov (!%p238_p2), 21   ;;  %s5584_s14 = smov (!%p238_p2), 24  }
   0xa   : > { %s5586_s23 = smov (!%p238_p2), 32  }
   0xb   : > { %vm310_vm0 = vcmask 23552   ;;  %vm313_vm1 = vcmask 17408   ;;  %v5576_v0 = vmov 0.0   ;;  %s7314_s25 = smov (!%p268_p3, %s4286_s25), 1  ;;  %vm2091_vm2 = vcmask 1044480  }
   0xc   : > { %311 = vst.msk [vmem:[#allocation2] sm:$0xff] %vm310_vm0, %v5576_v0  ;;  %s4625_s27 = sshll.u32 %s7314_s25, 7  ;;  %vm2092_vm3 = vcmask 1045504   ;;  %vm1776_vm4 = vcmask 48128   ;;  %vm1809_vm5 = vcmask 72704   ;;  %vm1842_vm6 = vcmask 97280  }
   0xd   : > { %312 = vst.msk [vmem:[#allocation2 + $0x8] sm:$0xff] %vm310_vm0, %v5576_v0  ;;  %s5738_s30 = scalar_lea.vmem %s7266_s0, %s4625_s27  ;;  %vm1875_vm7 = vcmask 121856   ;;  %vm1908_vm8 = vcmask 146432   ;;  %vm1941_vm9 = vcmask 171008   ;;  %vm7275_vm10 = vcmask 195584   ;;  %s5588_s27 = smov 64  }
   0xe   : > { %314 = vst.msk [vmem:[#allocation2 + $0x10] sm:$0x3] %vm313_vm1, %v5576_v0  ;;  %v4748_v4 = vld [vmem:[%s5738_s30 + $0x18] sm:$0xff]   ;;  %v4746_v5 = vld [vmem:[%s5738_s30 + $0x8] sm:$0xff]   ;;  %v4683_v8 = vld [vmem:[%s5738_s30] sm:$0xff]   ;;  %vm2042_vm11 = vcmask 220160  }
   0xf   : > { %315 = vst.msk [vmem:[#allocation2 + $0x18] sm:$0xff] %vm310_vm0, %v5576_v0  ;;  %v4696_v6 = vunpack.c.l.bf16 %v4748_v4  ;;  %v4697_v7 = vunpack.c.h.bf16 %v4748_v4  ;;  %v4688_v9 = vunpack.c.l.bf16 %v4746_v5  ;;  %v4689_v10 = vunpack.c.h.bf16 %v4746_v5  ;;  %v4749_v11 = vld [vmem:[%s5738_s30 + $0x20] sm:$0xff]   ;;  %v4747_v14 = vld [vmem:[%s5738_s30 + $0x10] sm:$0xff]   ;;  %v4750_v17 = vld [vmem:[%s5738_s30 + $0x28] sm:$0xff]   ;;  %s4293_s17 = sshll.u32 %s7314_s25, 1 }
  0x10   : > { %316 = vst.msk [vmem:[#allocation2 + $0x20] sm:$0xff] %vm310_vm0, %v5576_v0  ;;  %v4684_v12 = vunpack.c.l.bf16 %v4683_v8  ;;  %v4685_v13 = vunpack.c.h.bf16 %v4683_v8  ;;  %v4700_v15 = vunpack.c.l.bf16 %v4749_v11  ;;  %v4701_v16 = vunpack.c.h.bf16 %v4749_v11  ;;  %v4752_v20 = vld [vmem:[%s5738_s30 + $0x38] sm:$0xff]   ;;  %v4751_v24 = vld [vmem:[%s5738_s30 + $0x30] sm:$0xff]   ;;  %v4753_v30 = vld [vmem:[%s5738_s30 + $0x40] sm:$0xff]   ;;  %s276_s20 = scalar_lea.vmem %s7273_s7, %s4293_s17 }
  0x11   : > { %317 = vst.msk [vmem:[#allocation2 + $0x28] sm:$0x3] %vm313_vm1, %v5576_v0  ;;  %v4692_v18 = vunpack.c.l.bf16 %v4747_v14  ;;  %v4693_v19 = vunpack.c.h.bf16 %v4747_v14  ;;  %v4704_v21 = vunpack.c.l.bf16 %v4750_v17  ;;  %v4705_v23 = vunpack.c.h.bf16 %v4750_v17  ;;  %v4755_v36 = vld [vmem:[%s5738_s30 + $0x50] sm:$0xff]   ;;  %v4754_v42 = vld [vmem:[%s5738_s30 + $0x48] sm:$0xff]   ;;  %v4756_v48 = vld [vmem:[%s5738_s30 + $0x58] sm:$0xff]  }
  0x12   : > { %318 = vst.msk [vmem:[#allocation2 + $0x30] sm:$0xff] %vm310_vm0, %v5576_v0  ;;  %v4712_v26 = vunpack.c.l.bf16 %v4752_v20  ;;  %v4713_v29 = vunpack.c.h.bf16 %v4752_v20  ;;  %v4708_v32 = vunpack.c.l.bf16 %v4751_v24  ;;  %v4709_v35 = vunpack.c.h.bf16 %v4751_v24  ;;  %v4758_v54 = vld [vmem:[%s5738_s30 + $0x68] sm:$0xff]   ;;  %v4757_v59 = vld [vmem:[%s5738_s30 + $0x60] sm:$0xff]  }
  0x13   : > { %319 = vst.msk [vmem:[#allocation2 + $0x38] sm:$0xff] %vm310_vm0, %v5576_v0  ;;  %v4716_v38 = vunpack.c.l.bf16 %v4753_v30  ;;  %v4717_v41 = vunpack.c.h.bf16 %v4753_v30  ;;  %v4724_v44 = vunpack.c.l.bf16 %v4755_v36  ;;  %v4725_v47 = vunpack.c.h.bf16 %v4755_v36 }
  0x14   : > { %v463_v1 = vld [vmem:[#allocation2 + $0x1] sm:$0xff]  ;;  %320 = vst.msk [vmem:[#allocation2 + $0x40] sm:$0x3] %vm313_vm1, %v5576_v0  ;;  %v4720_v50 = vunpack.c.l.bf16 %v4754_v42  ;;  %v4721_v53 = vunpack.c.h.bf16 %v4754_v42  ;;  %v4728_v56 = vunpack.c.l.bf16 %v4756_v48  ;;  %v4729_v58 = vunpack.c.h.bf16 %v4756_v48 }
  0x15   : > { %v464_v2 = vld [vmem:[#allocation2 + $0x9] sm:$0xff]  ;;  %321 = vst.msk [vmem:[#allocation2 + $0x48] sm:$0xff] %vm310_vm0, %v5576_v0  ;;  %v4736_v62 = vunpack.c.l.bf16 %v4758_v54  ;;  %v4737_v63 = vunpack.c.h.bf16 %v4758_v54  ;;  %v4732_v4 = vunpack.c.l.bf16 %v4757_v59  ;;  %vm2603_vm12 = vcmask 261120  }
  0x16   : > { %v4788_v3 = vpack.i.bf16 %v464_v2, %v463_v1  ;;  %322 = vst.msk [vmem:[#allocation2 + $0x50] sm:$0xff] %vm310_vm0, %v5576_v0  ;;  %v4759_v1 = vld [vmem:[%s5738_s30 + $0x70] sm:$0xff]   ;;  %vm2605_vm13 = vcmask 254976   ;;  %vm7274_vm14 = vcmask 1041409   ;;  %vm7277_vm15 = vcmask 1042434  }
  0x17   : > { %323 = vst.msk [vmem:[#allocation2 + $0x58] sm:$0x3] %vm313_vm1, %v5576_v0  ;;  %v4741_v11 = vunpack.c.h.bf16 %v4759_v1  ;;  %v496_v36 = vld [vmem:[#allocation2 + $0xa] sm:$0xff] }
  0x18   : > { %4789 = vrot.lane.b32.xlu0 %v4788_v3, %s5577_s26  ;;  %324 = vst.msk [vmem:[#allocation2 + $0x60] sm:$0xff] %vm310_vm0, %v5576_v0 }
  0x19   : > { %325 = vst.msk [vmem:[#allocation2 + $0x68] sm:$0xff] %vm310_vm0, %v5576_v0 }
  0x1a   : > { %326 = vst.msk [vmem:[#allocation2 + $0x70] sm:$0x3] %vm313_vm1, %v5576_v0 }
  0x1b   : > { %327 = vst.msk [vmem:[#allocation2 + $0x78] sm:$0xff] %vm310_vm0, %v5576_v0 }
  0x1c   : > { %328 = vst.msk [vmem:[#allocation2 + $0x80] sm:$0xff] %vm310_vm0, %v5576_v0 }
  0x1d   : > { %329 = vst.msk [vmem:[#allocation2 + $0x88] sm:$0x3] %vm313_vm1, %v5576_v0 }
  0x1e   : > { %330 = vst.msk [vmem:[#allocation2 + $0x90] sm:$0xff] %vm310_vm0, %v5576_v0 }
  0x1f   : > { %331 = vst.msk [vmem:[#allocation2 + $0x98] sm:$0xff] %vm310_vm0, %v5576_v0 }
  0x20   : > { %332 = vst.msk [vmem:[#allocation2 + $0xa0] sm:$0x3] %vm313_vm1, %v5576_v0 }
  0x21   : > { %333 = vst.msk [vmem:[#allocation2 + $0xa8] sm:$0xff] %vm310_vm0, %v5576_v0 }
  0x22   : > { %334 = vst.msk [vmem:[#allocation2 + $0xb0] sm:$0xff] %vm310_vm0, %v5576_v0 }
  0x23   : > { %335 = vst.msk [vmem:[#allocation2 + $0xb8] sm:$0x3] %vm313_vm1, %v5576_v0 }
  0x24   : > { %336 = vst.msk [vmem:[#allocation2 + $0xc0] sm:$0xff] %vm310_vm0, %v5576_v0 }
  0x25   : > { %337 = vst.msk [vmem:[#allocation2 + $0xc8] sm:$0xff] %vm310_vm0, %v5576_v0 }
  0x26   : > { %338 = vst.msk [vmem:[#allocation2 + $0xd0] sm:$0x3] %vm313_vm1, %v5576_v0 }
  0x27   : > { %339 = vst.msk [vmem:[#allocation2 + $0xd8] sm:$0xff] %vm310_vm0, %v5576_v0 }
  0x28   : > { %340 = vst.msk [vmem:[#allocation2 + $0xe0] sm:$0xff] %vm310_vm0, %v5576_v0 }
  0x29   : > { %341 = vst.msk [vmem:[#allocation2 + $0xe8] sm:$0x3] %vm313_vm1, %v5576_v0 }
  0x2a   : > { %342 = vst.msk [vmem:[#allocation2 + $0xf0] sm:$0xff] %vm310_vm0, %v5576_v0 }
  0x2b   : > { %343 = vst.msk [vmem:[#allocation2 + $0xf8] sm:$0xff] %vm310_vm0, %v5576_v0 }
  0x2c   : > { %344 = vst.msk [vmem:[#allocation2 + $0x100] sm:$0x3] %vm313_vm1, %v5576_v0 }
  0x2d   : > { %345 = vst.msk [vmem:[#allocation2 + $0x108] sm:$0xff] %vm310_vm0, %v5576_v0 }
  0x2e   : > { %346 = vst.msk [vmem:[#allocation2 + $0x110] sm:$0xff] %vm310_vm0, %v5576_v0 }
  0x2f   : > { %347 = vst.msk [vmem:[#allocation2 + $0x118] sm:$0x3] %vm313_vm1, %v5576_v0 }
  0x30   : > { %348 = vst.msk [vmem:[#allocation2 + $0x120] sm:$0xff] %vm310_vm0, %v5576_v0 }
  0x31   : > { %349 = vst.msk [vmem:[#allocation2 + $0x128] sm:$0xff] %vm310_vm0, %v5576_v0 }
  0x32   : > { %350 = vst.msk [vmem:[#allocation2 + $0x130] sm:$0x3] %vm313_vm1, %v5576_v0 }
  0x33   : > { %351 = vst.msk [vmem:[#allocation2 + $0x138] sm:$0xff] %vm310_vm0, %v5576_v0 }
  0x34   : > { %352 = vst.msk [vmem:[#allocation2 + $0x140] sm:$0xff] %vm310_vm0, %v5576_v0 }
  0x35   : > { %353 = vst.msk [vmem:[#allocation2 + $0x148] sm:$0x3] %vm313_vm1, %v5576_v0 }
  0x36   : > { %354 = vst.msk [vmem:[#allocation2 + $0x150] sm:$0xff] %vm310_vm0, %v5576_v0 }
  0x37   : > { %355 = vst.msk [vmem:[#allocation2 + $0x158] sm:$0xff] %vm310_vm0, %v5576_v0 }
  0x38   : > { %356 = vst.msk [vmem:[#allocation2 + $0x160] sm:$0x3] %vm313_vm1, %v5576_v0 }
  0x39   : > { %357 = vst.msk [vmem:[#allocation2 + $0x168] sm:$0xff] %vm310_vm0, %v5576_v0 }
  0x3a   : > { %358 = vst.msk [vmem:[#allocation2 + $0x170] sm:$0xff] %vm310_vm0, %v5576_v0 }
  0x3b   : > { %359 = vst.msk [vmem:[#allocation2 + $0x178] sm:$0x3] %vm313_vm1, %v5576_v0 }
  0x3c   : > { %360 = vst.msk [vmem:[#allocation2 + $0x180] sm:$0xff] %vm310_vm0, %v5576_v0 }
  0x3d   : > { %361 = vst.msk [vmem:[#allocation2 + $0x188] sm:$0xff] %vm310_vm0, %v5576_v0 }
  0x3e   : > { %362 = vst.msk [vmem:[#allocation2 + $0x190] sm:$0x3] %vm313_vm1, %v5576_v0 }
  0x3f   : > { %363 = vst.msk [vmem:[#allocation2 + $0x198] sm:$0xff] %vm310_vm0, %v5576_v0 }
  0x40   : > { %364 = vst.msk [vmem:[#allocation2 + $0x1a0] sm:$0xff] %vm310_vm0, %v5576_v0 }
  0x41   : > { %365 = vst.msk [vmem:[#allocation2 + $0x1a8] sm:$0x3] %vm313_vm1, %v5576_v0  ;;  %vm2757_vm1 = vcmask 1043459  }
  0x42   : > { %405 = vst.msk [vmem:[#allocation2 + $0x61] sm:$0xff] %vm310_vm0, %v4696_v6  ;;  %v4733_v6 = vunpack.c.h.bf16 %v4757_v59 }
  0x43   : > { %406 = vst.msk [vmem:[#allocation2 + $0x69] sm:$0xff] %vm310_vm0, %v4697_v7 }
  0x44   : > { %401 = vst.msk [vmem:[#allocation2 + $0x31] sm:$0xff] %vm310_vm0, %v4688_v9  ;;  %v4740_v9 = vunpack.c.l.bf16 %v4759_v1 }
  0x45   : > { %402 = vst.msk [vmem:[#allocation2 + $0x39] sm:$0xff] %vm310_vm0, %v4689_v10 }
  0x46   : > { %399 = vst.msk [vmem:[#allocation2 + $0x19] sm:$0xff] %vm310_vm0, %v4684_v12 }
  0x47   : > { %400 = vst.msk [vmem:[#allocation2 + $0x21] sm:$0xff] %vm310_vm0, %v4685_v13 }
  0x48   : > { %407 = vst.msk [vmem:[#allocation2 + $0x79] sm:$0xff] %vm310_vm0, %v4700_v15 }
  0x49   : > { %v471_v22 = vld [vmem:[#allocation2 + $0x61] sm:$0xff]  ;;  %408 = vst.msk [vmem:[#allocation2 + $0x81] sm:$0xff] %vm310_vm0, %v4701_v16 }
  0x4a   : > { %v472_v25 = vld [vmem:[#allocation2 + $0x69] sm:$0xff]  ;;  %403 = vst.msk [vmem:[#allocation2 + $0x49] sm:$0xff] %vm310_vm0, %v4692_v18 }
  0x4b   : > { %v5775_v27 = vpack.i.bf16 %v472_v25, %v471_v22  ;;  %v467_v28 = vld [vmem:[#allocation2 + $0x31] sm:$0xff]  ;;  %404 = vst.msk [vmem:[#allocation2 + $0x51] sm:$0xff] %vm310_vm0, %v4693_v19 }
  0x4c   : > { %v468_v31 = vld [vmem:[#allocation2 + $0x39] sm:$0xff]  ;;  %409 = vst.msk [vmem:[#allocation2 + $0x91] sm:$0xff] %vm310_vm0, %v4704_v21 }
  0x4d   : > { %4809 = vrot.lane.b32.xlu2 %v5775_v27, %s5577_s26  ;;  %v5782_v33 = vpack.i.bf16 %v468_v31, %v467_v28  ;;  %v465_v34 = vld [vmem:[#allocation2 + $0x19] sm:$0xff]  ;;  %410 = vst.msk [vmem:[#allocation2 + $0x99] sm:$0xff] %vm310_vm0, %v4705_v23 }
  0x4e   : > { %v466_v37 = vld [vmem:[#allocation2 + $0x21] sm:$0xff]  ;;  %413 = vst.msk [vmem:[#allocation2 + $0xc1] sm:$0xff] %vm310_vm0, %v4712_v26  ;;  %v5854_v54 = vld [vmem:[#allocation2 + $0x18] sm:$0xff] }
  0x4f   : > { %4799 = vrot.lane.b32.xlu1 %v5782_v33, %s5577_s26  ;;  %v5789_v39 = vpack.i.bf16 %v466_v37, %v465_v34  ;;  %v473_v40 = vld [vmem:[#allocation2 + $0x79] sm:$0xff]  ;;  %414 = vst.msk [vmem:[#allocation2 + $0xc9] sm:$0xff] %vm310_vm0, %v4713_v29  ;;  %v498_v34 = vld [vmem:[#allocation2 + $0x22] sm:$0xff] }
  0x50   : > { %v474_v43 = vld [vmem:[#allocation2 + $0x81] sm:$0xff]  ;;  %411 = vst.msk [vmem:[#allocation2 + $0xa9] sm:$0xff] %vm310_vm0, %v4708_v32 }
  0x51   : > { %4794 = vrot.lane.b32.xlu0 %v5789_v39, %s5577_s26  ;;  %v5796_v45 = vpack.i.bf16 %v474_v43, %v473_v40  ;;  %v469_v46 = vld [vmem:[#allocation2 + $0x49] sm:$0xff]  ;;  %412 = vst.msk [vmem:[#allocation2 + $0xb1] sm:$0xff] %vm310_vm0, %v4709_v35  ;;  %v497_v32 = vld [vmem:[#allocation2 + $0x1a] sm:$0xff] }
  0x52   : > { %v470_v49 = vld [vmem:[#allocation2 + $0x51] sm:$0xff]  ;;  %415 = vst.msk [vmem:[#allocation2 + $0xd9] sm:$0xff] %vm310_vm0, %v4716_v38  ;;  %v495_v35 = vld [vmem:[#allocation2 + $0x2] sm:$0xff]  ;;  %v4873_v37 = vpack.i.bf16 %v498_v34, %v497_v32  ;;  %v500_v40 = vld [vmem:[#allocation2 + $0x3a] sm:$0xff] }
  0x53   : > { %v5801_v51 = vpack.i.bf16 %v470_v49, %v469_v46  ;;  %v475_v52 = vld [vmem:[#allocation2 + $0x91] sm:$0xff]  ;;  %416 = vst.msk [vmem:[#allocation2 + $0xe1] sm:$0xff] %vm310_vm0, %v4717_v41  ;;  %v4868_v41 = vpack.i.bf16 %v496_v36, %v495_v35  ;;  %v503_v43 = vld [vmem:[#allocation2 + $0x62] sm:$0xff]  ;;  %v505_v49 = vld [vmem:[#allocation2 + $0x7a] sm:$0xff] }
  0x54   : > { %v476_v55 = vld [vmem:[#allocation2 + $0x99] sm:$0xff]  ;;  %419 = vst.msk [vmem:[#allocation2 + $0x109] sm:$0xff] %vm310_vm0, %v4724_v44  ;;  %v504_v44 = vld [vmem:[#allocation2 + $0x6a] sm:$0xff] }
  0x55   : > { %4814 = vrot.lane.b32.xlu2 %v5796_v45, %s5577_s26  ;;  %v5808_v57 = vpack.i.bf16 %v476_v55, %v475_v52  ;;  %420 = vst.msk [vmem:[#allocation2 + $0x111] sm:$0xff] %vm310_vm0, %v4725_v47  ;;  %v479_v60 = vld [vmem:[#allocation2 + $0xc1] sm:$0xff]  ;;  %v499_v38 = vld [vmem:[#allocation2 + $0x32] sm:$0xff]  ;;  %v501_v46 = vld [vmem:[#allocation2 + $0x4a] sm:$0xff]  ;;  %v4888_v48 = vpack.i.bf16 %v504_v44, %v503_v43 }
  0x56   : > { %v480_v61 = vld [vmem:[#allocation2 + $0xc9] sm:$0xff]  ;;  %417 = vst.msk [vmem:[#allocation2 + $0xf1] sm:$0xff] %vm310_vm0, %v4720_v50  ;;  %v4878_v42 = vpack.i.bf16 %v500_v40, %v499_v38  ;;  %v502_v47 = vld [vmem:[#allocation2 + $0x52] sm:$0xff]  ;;  %v5856_v55 = vld [vmem:[#allocation2 + $0x20] sm:$0xff] }
  0x57   : > { %4804 = vrot.lane.b32.xlu1 %v5801_v51, %s5577_s26  ;;  %418 = vst.msk [vmem:[#allocation2 + $0xf9] sm:$0xff] %vm310_vm0, %v4721_v53  ;;  %v477_v2 = vld [vmem:[#allocation2 + $0xa9] sm:$0xff]  ;;  %v5820_v5 = vpack.i.bf16 %v480_v61, %v479_v60  ;;  %v4883_v52 = vpack.i.bf16 %v502_v47, %v501_v46  ;;  %v4903_v59 = vpack.i.bf16 %v5856_v55, %v5854_v54  ;;  %v4300_v38 = vld [vmem:[%s7267_s1 + $0x8] sm:$0xf]  ;;  %v4627_v40 = vld [vmem:[%s7267_s1 + $0x8] sm:$0x30] }
  0x58   : > { %v478_v3 = vld [vmem:[#allocation2 + $0xb1] sm:$0xff]  ;;  %421 = vst.msk [vmem:[#allocation2 + $0x121] sm:$0xff] %vm310_vm0, %v4728_v56  ;;  %v506_v50 = vld [vmem:[#allocation2 + $0x82] sm:$0xff]  ;;  %v5585_v46 = vmov 65535  }
  0x59   : > { %4819 = vrot.lane.b32.xlu0 %v5808_v57, %s5577_s26  ;;  %422 = vst.msk [vmem:[#allocation2 + $0x129] sm:$0xff] %vm310_vm0, %v4729_v58  ;;  %v481_v7 = vld [vmem:[#allocation2 + $0xd9] sm:$0xff]  ;;  %v5824_v10 = vpack.i.bf16 %v478_v3, %v477_v2  ;;  %v5852_v53 = vpack.i.bf16 %v506_v50, %v505_v49  ;;  %v5866_v61 = vld [vmem:[#allocation2 + $0x30] sm:$0xff]  ;;  %v5881_v1 = vld [vmem:[#allocation2 + $0x48] sm:$0xff]  ;;  %v2093_v47 = vsel %vm2091_vm2, 4294967295, %v5585_v46  ;;  %vm2759_vm2 = vcmask 1044484  }
  0x5a   : > { %v482_v8 = vld [vmem:[#allocation2 + $0xe1] sm:$0xff]  ;;  %425 = vst.msk [vmem:[#allocation2 + $0x151] sm:$0xff] %vm310_vm0, %v4736_v62  ;;  %v507_v56 = vld [vmem:[#allocation2 + $0x92] sm:$0xff]  ;;  %v698_v34 = vld [vmem:[#allocation2 + $0xaa] sm:$0xff]  ;;  %v2094_v50 = vsel %vm2092_vm3, %v2093_v47, 0  ;;  %vm7276_vm3 = vcmask 1045509  }
  0x5b   : > { %426 = vst.msk [vmem:[#allocation2 + $0x159] sm:$0xff] %vm310_vm0, %v4737_v63  ;;  %v4833_v12 = vpack.i.bf16 %v482_v8, %v481_v7  ;;  %v485_v13 = vld [vmem:[#allocation2 + $0x109] sm:$0xff]  ;;  %v508_v58 = vld [vmem:[#allocation2 + $0x9a] sm:$0xff]  ;;  %v699_v35 = vld [vmem:[#allocation2 + $0xb2] sm:$0xff] }
  0x5c   : > { %423 = vst.msk [vmem:[#allocation2 + $0x139] sm:$0xff] %vm310_vm0, %v4732_v4  ;;  %v486_v14 = vld [vmem:[#allocation2 + $0x111] sm:$0xff]  ;;  %v5863_v60 = vpack.i.bf16 %v508_v58, %v507_v56  ;;  %v5895_v3 = vld [vmem:[#allocation2 + $0x60] sm:$0xff]  ;;  %v5897_v4 = vld [vmem:[#allocation2 + $0x68] sm:$0xff] }
  0x5d   : > { %4829 = vrot.lane.b32.xlu2 %v5820_v5, %s5577_s26  ;;  %424 = vst.msk [vmem:[#allocation2 + $0x141] sm:$0xff] %vm310_vm0, %v4733_v6  ;;  %v483_v15 = vld [vmem:[#allocation2 + $0xf1] sm:$0xff]  ;;  %v4843_v17 = vpack.i.bf16 %v486_v14, %v485_v13  ;;  %v447_v43 = vld [vmem:[#allocation2 + $0xc0] sm:$0xff]  ;;  %v448_v44 = vld [vmem:[#allocation2 + $0xc8] sm:$0xff] }
  0x5e   : > { %427 = vst.msk [vmem:[#allocation2 + $0x169] sm:$0xff] %vm310_vm0, %v4740_v9  ;;  %v484_v16 = vld [vmem:[#allocation2 + $0xf9] sm:$0xff]  ;;  %v5883_v2 = vld [vmem:[#allocation2 + $0x50] sm:$0xff]  ;;  %v6003_v49 = vpack.i.bf16 %v448_v44, %v447_v43 }
  0x5f   : > { %4824 = vrot.lane.b32.xlu1 %v5824_v10, %s5577_s26  ;;  %428 = vst.msk [vmem:[#allocation2 + $0x171] sm:$0xff] %vm310_vm0, %v4741_v11  ;;  %v487_v18 = vld [vmem:[#allocation2 + $0x121] sm:$0xff]  ;;  %v4838_v20 = vpack.i.bf16 %v484_v16, %v483_v15  ;;  %v5868_v62 = vld [vmem:[#allocation2 + $0x38] sm:$0xff]  ;;  %v517_v58 = vld [vmem:[#allocation2 + $0x10a] sm:$0xff] }
  0x60   : > { %v488_v19 = vld [vmem:[#allocation2 + $0x129] sm:$0xff]  ;;  %v4918_v63 = vpack.i.bf16 %v5868_v62, %v5866_v61  ;;  %v5913_v8 = vld [vmem:[#allocation2 + $0x78] sm:$0xff]  ;;  %v5915_v9 = vld [vmem:[#allocation2 + $0x80] sm:$0xff]  ;;  %2607 = vst.msk [vmem:[#allocation3 + $0x10] sm:$0xff] %vm2603_vm12, %v5576_v0 }
  0x61   : > { %4834 = vrot.lane.b32.xlu0 %v4833_v12, %s5577_s26  ;;  %v5837_v21 = vpack.i.bf16 %v488_v19, %v487_v18  ;;  %v491_v22 = vld [vmem:[#allocation2 + $0x151] sm:$0xff]  ;;  %v5008_v12 = vpack.i.bf16 %v5915_v9, %v5913_v8  ;;  %v613_v44 = vld [vmem:[#allocation2 + $0x122] sm:$0xff]  ;;  %2608 = vst.msk [vmem:[#allocation3 + $0x18] sm:$0x3] %vm2605_vm13, %v5576_v0 }
  0x62   : > { %v492_v23 = vld [vmem:[#allocation2 + $0x159] sm:$0xff]  ;;  %v614_v46 = vld [vmem:[#allocation2 + $0x12a] sm:$0xff]  ;;  %2604 = vst.msk [vmem:[#allocation3] sm:$0xff] %vm2603_vm12, %v5576_v0 }
  0x63   : > { %v489_v24 = vld [vmem:[#allocation2 + $0x139] sm:$0xff]  ;;  %v4858_v26 = vpack.i.bf16 %v492_v23, %v491_v22  ;;  %2606 = vst.msk [vmem:[#allocation3 + $0x8] sm:$0x3] %vm2605_vm13, %v5576_v0 }
  0x64   : > { %v490_v25 = vld [vmem:[#allocation2 + $0x141] sm:$0xff]  ;;  %v5939_v16 = vld [vmem:[#allocation2 + $0x98] sm:$0xff]  ;;  %2609 = vst.msk [vmem:[#allocation3 + $0x20] sm:$0xff] %vm2603_vm12, %v5576_v0 }
  0x65   : > { %4844 = vrot.lane.b32.xlu2 %v4843_v17, %s5577_s26  ;;  %v493_v28 = vld [vmem:[#allocation2 + $0x169] sm:$0xff]  ;;  %v5842_v30 = vpack.i.bf16 %v490_v25, %v489_v24  ;;  %v4626_v56 = vld [vmem:[%s7267_s1] sm:$0xff]  ;;  %2610 = vst.msk [vmem:[#allocation3 + $0x28] sm:$0x3] %vm2605_vm13, %v5576_v0 }
  0x66   : > { %v494_v29 = vld [vmem:[#allocation2 + $0x171] sm:$0xff]  ;;  %v445_v25 = vld [vmem:[#allocation2 + $0xa8] sm:$0xff]  ;;  %2611 = vst.msk [vmem:[#allocation3 + $0x30] sm:$0xff] %vm2603_vm12, %v5576_v0 }
  0x67   : > { %4839 = vrot.lane.b32.xlu1 %v4838_v20, %s5577_s26  ;;  %v4863_v31 = vpack.i.bf16 %v494_v29, %v493_v28  ;;  %2612 = vst.msk [vmem:[#allocation3 + $0x38] sm:$0x3] %vm2605_vm13, %v5576_v0 }
  0x68   : > { %2613 = vst.msk [vmem:[#allocation3 + $0x40] sm:$0xff] %vm2603_vm12, %v5576_v0 }
  0x69   : > { %4849 = vrot.lane.b32.xlu0 %v5837_v21, %s5577_s26  ;;  %2614 = vst.msk [vmem:[#allocation3 + $0x48] sm:$0x3] %vm2605_vm13, %v5576_v0 }
  0x6a   : > { %2615 = vst.msk [vmem:[#allocation3 + $0x50] sm:$0xff] %vm2603_vm12, %v5576_v0 }
  0x6b   : > { %2616 = vst.msk [vmem:[#allocation3 + $0x58] sm:$0x3] %vm2605_vm13, %v5576_v0 }
  0x6c   : > { %2617 = vst.msk [vmem:[#allocation3 + $0x60] sm:$0xff] %vm2603_vm12, %v5576_v0 }
  0x6d   : > { %4859 = vrot.lane.b32.xlu2 %v4858_v26, %s5577_s26  ;;  %v446_v26 = vld [vmem:[#allocation2 + $0xb0] sm:$0xff]  ;;  %2618 = vst.msk [vmem:[#allocation3 + $0x68] sm:$0x3] %vm2605_vm13, %v5576_v0 }
  0x6e   : > { %v5068_v29 = vpack.i.bf16 %v446_v26, %v445_v25  ;;  %2619 = vst.msk [vmem:[#allocation3 + $0x70] sm:$0xff] %vm2603_vm12, %v5576_v0 }
  0x6f   : > { %4854 = vrot.lane.b32.xlu1 %v5842_v30, %s5577_s26  ;;  %2620 = vst.msk [vmem:[#allocation3 + $0x78] sm:$0x3] %vm2605_vm13, %v5576_v0 }
  0x70   : > { %2621 = vst.msk [vmem:[#allocation3 + $0x80] sm:$0xff] %vm2603_vm12, %v5576_v0 }
  0x71   : > { %4864 = vrot.lane.b32.xlu0 %v4863_v31, %s5577_s26  ;;  %2622 = vst.msk [vmem:[#allocation3 + $0x88] sm:$0x3] %vm2605_vm13, %v5576_v0  ;;  %s5587_s26 = smov 96  }
  0x72   : > { %2623 = vst.msk [vmem:[#allocation3 + $0x90] sm:$0xff] %vm2603_vm12, %v5576_v0 }
  0x73   : > { %2624 = vst.msk [vmem:[#allocation3 + $0x98] sm:$0x3] %vm2605_vm13, %v5576_v0  ;;  %vm2763_vm13 = vcmask 1046534  }
  0x75   : > { %4874 = vrot.lane.b32.xlu2 %v4873_v37, %s5578_s8 }
  0x77   : > { %4869 = vrot.lane.b32.xlu1 %v4868_v41, %s5578_s8  ;;  %v4301_v41 = vor.u32 %v4627_v40, %v4300_v38 }
  0x79   : > { %4879 = vrot.lane.b32.xlu0 %v4878_v42, %s5578_s8 }
  0x7d   : > { %4889 = vrot.lane.b32.xlu2 %v4888_v48, %s5578_s8 }
  0x7f   : > { %4884 = vrot.lane.b32.xlu1 %v4883_v52, %s5578_s8 }
  0x81   : > { %4894 = vrot.lane.b32.xlu0 %v5852_v53, %s5578_s8 }
  0x85   : > { %4904 = vrot.lane.b32.xlu2 %v4903_v59, %s5579_s9 }
  0x87   : > { %4899 = vrot.lane.b32.xlu1 %v5863_v60, %s5578_s8 }
  0x89   : > { %4909 = vrot.lane.b32.xlu0 %v5789_v39, %s5580_s10  ;;  %v4948_v39 = vpack.i.bf16 %v5883_v2, %v5881_v1 }
  0x8a   : > { %v5922_v11 = vpop.permute.xlu0 %4789 }
  0x8d   : > { %4919 = vrot.lane.b32.xlu2 %v4918_v63, %s5581_s11 }
  0x8f   : > { %4914 = vrot.lane.b32.xlu1 %v4873_v37, %s5582_s12  ;;  %v5986_v37 = vpack.i.bf16 %v699_v35, %v698_v34  ;;  %v456_v34 = vld [vmem:[#allocation2 + $0x128] sm:$0xff] }
  0x91   : > { %4924 = vrot.lane.b32.xlu0 %v5782_v33, %s5583_s13 }
  0x95   : > { %4934 = vrot.lane.b32.xlu2 %v4918_v63, %s5579_s9  ;;  %v701_v63 = vld [vmem:[#allocation2 + $0xca] sm:$0xff] }
  0x97   : > { %4929 = vrot.lane.b32.xlu1 %v4878_v42, %s5584_s14 }
  0x99   : > { %4939 = vrot.lane.b32.xlu0 %v5782_v33, %s5580_s10  ;;  %v4978_v33 = vpack.i.bf16 %v5897_v4, %v5895_v3 }
  0x9d   : > { %4949 = vrot.lane.b32.xlu2 %v4948_v39, %s5581_s11 }
  0x9f   : > { %4944 = vrot.lane.b32.xlu1 %v4878_v42, %s5582_s12 }
  0xa1   : > { %4954 = vrot.lane.b32.xlu0 %v5801_v51, %s5583_s13 }
  0xa5   : > { %4964 = vrot.lane.b32.xlu2 %v4948_v39, %s5579_s9 }
  0xa7   : > { %4959 = vrot.lane.b32.xlu1 %v4883_v52, %s5584_s14  ;;  %v5900_v6 = vpop.permute.xlu2 %4809 }
  0xa9   : > { %4969 = vrot.lane.b32.xlu0 %v5801_v51, %s5580_s10 }
  0xad   : > { %4979 = vrot.lane.b32.xlu2 %v4978_v33, %s5581_s11 }
  0xaf   : > { %4974 = vrot.lane.b32.xlu1 %v4883_v52, %s5582_s12  ;;  %v5908_v7 = vpop.permute.xlu2 %4814  ;;  %v2096_v52 = vand.u32 %v4301_v41, %v2094_v50 }
  0xb0   : > { %v4817_v39 = vunpack.i.h.bf16 %v5908_v7 }
  0xb1   : > { %4984 = vrot.lane.b32.xlu0 %v5775_v27, %s5583_s13  ;;  %2104 = vmatpush.bf16.msra.mxu0 %v2096_v52 }
  0xb2   : > { %4762 = vmatpush.bf16.msra.mxu2 %v2096_v52  ;;  %4761 = vmatpush.bf16.msra.mxu1 %v2096_v52  ;;  %v1755_v40 = vsel %vm310_vm0, %v5915_v9, %v4817_v39 }
  0xb3   : > { %4763 = vmatpush.bf16.msra.mxu3 %v2096_v52  ;;  %v6048_v52 = vpack.i.bf16 %v614_v46, %v613_v44  ;;  %v711_v44 = vld [vmem:[#allocation2 + $0x142] sm:$0xff] }
  0xb5   : > { %4994 = vrot.lane.b32.xlu2 %v4978_v33, %s5579_s9  ;;  %2105 = vmatpush.bf16.msra.mxu0 %v4626_v56  ;;  %v4816_v33 = vunpack.i.l.bf16 %v5908_v7 }
  0xb6   : > { %4765 = vmatpush.bf16.msra.mxu2 %v4626_v56  ;;  %4764 = vmatpush.bf16.msra.mxu1 %v4626_v56 }
  0xb7   : > { %4989 = vrot.lane.b32.xlu1 %v4888_v48, %s5584_s14  ;;  %v5918_v51 = vpop.permute.xlu2 %4829  ;;  %4766 = vmatpush.bf16.msra.mxu3 %v4626_v56  ;;  %v1754_v7 = vsel %vm310_vm0, %v5913_v8, %v4816_v33  ;;  %v4792_v56 = vunpack.i.h.bf16 %v5922_v11 }
  0xb9   : > { %4999 = vrot.lane.b32.xlu0 %v5775_v27, %s5580_s10  ;;  %v5937_v27 = vld [vmem:[#allocation2 + $0x90] sm:$0xff] }
  0xba   : > { %v5038_v19 = vpack.i.bf16 %v5939_v16, %v5937_v27 }
  0xbd   : > { %5009 = vrot.lane.b32.xlu2 %v5008_v12, %s5581_s11 }
  0xbf   : > { %5004 = vrot.lane.b32.xlu1 %v4888_v48, %s5582_s12  ;;  %v5928_v13 = vpop.permute.xlu2 %4844 }
  0xc1   : > { %5014 = vrot.lane.b32.xlu0 %v5796_v45, %s5583_s13  ;;  %v5932_v14 = vpop.permute.xlu1 %4799 }
  0xc3   : > { %v5934_v15 = vpop.permute.xlu0 %4794 }
  0xc5   : > { %5024 = vrot.lane.b32.xlu2 %v5008_v12, %s5579_s9 }
  0xc7   : > { %5019 = vrot.lane.b32.xlu1 %v5852_v53, %s5584_s14  ;;  %v5943_v17 = vpop.permute.xlu2 %4859 }
  0xc9   : > { %5029 = vrot.lane.b32.xlu0 %v5796_v45, %s5580_s10  ;;  %v5947_v18 = vpop.permute.xlu1 %4804 }
  0xcb   : > { %v5951_v20 = vpop.permute.xlu0 %4819 }
  0xcc   : > { %v4822_v47 = vunpack.i.h.bf16 %v5951_v20  ;;  %v4821_v9 = vunpack.i.l.bf16 %v5951_v20 }
  0xcd   : > { %5039 = vrot.lane.b32.xlu2 %v5038_v19, %s5581_s11 }
  0xce   : > { %v1757_v20 = vsel %vm310_vm0, %v5939_v16, %v4822_v47  ;;  %v1756_v39 = vsel %vm310_vm0, %v5937_v27, %v4821_v9  ;;  %v710_v16 = vld [vmem:[#allocation2 + $0x13a] sm:$0xff] }
  0xcf   : > { %5034 = vrot.lane.b32.xlu1 %v5852_v53, %s5582_s12  ;;  %v5956_v22 = vpop.permute.xlu2 %4874 }
  0xd1   : > { %5044 = vrot.lane.b32.xlu0 %v5808_v57, %s5583_s13  ;;  %v5960_v23 = vpop.permute.xlu1 %4824 }
  0xd3   : > { %v5962_v45 = vpop.permute.xlu0 %4834 }
  0xd5   : > { %5054 = vrot.lane.b32.xlu2 %v5038_v19, %s5579_s9 }
  0xd7   : > { %5049 = vrot.lane.b32.xlu1 %v5863_v60, %s5584_s14  ;;  %v5967_v24 = vpop.permute.xlu2 %4889 }
  0xd9   : > { %5059 = vrot.lane.b32.xlu0 %v5808_v57, %s5580_s10  ;;  %v5971_v28 = vpop.permute.xlu1 %4839 }
  0xdb   : > { %v5973_v31 = vpop.permute.xlu0 %4849 }
  0xdd   : > { %5069 = vrot.lane.b32.xlu2 %v5068_v29, %s5581_s11 }
  0xdf   : > { %5064 = vrot.lane.b32.xlu1 %v5863_v60, %s5582_s12  ;;  %v5978_v32 = vpop.permute.xlu2 %4904  ;;  %v700_v60 = vld [vmem:[#allocation2 + $0xc2] sm:$0xff] }
  0xe0   : > { %v6024_v26 = vpack.i.bf16 %v701_v63, %v700_v60  ;;  %v432_v60 = vld [vmem:[#allocation2 + $0x8] sm:$0xff]  ;;  %v4791_v63 = vunpack.i.l.bf16 %v5922_v11  ;;  %v4907_v47 = vunpack.i.h.bf16 %v5978_v32 }
  0xe1   : > { %5074 = vrot.lane.b32.xlu0 %v5824_v10, %s5583_s13  ;;  %v5982_v36 = vpop.permute.xlu1 %4854  ;;  %v1745_v27 = vsel %vm310_vm0, %v432_v60, %v4792_v56 }
  0xe3   : > { %v5984_v57 = vpop.permute.xlu0 %4864 }
  0xe5   : > { %5084 = vrot.lane.b32.xlu2 %v5068_v29, %s5579_s9  ;;  %v455_v29 = vld [vmem:[#allocation2 + $0x120] sm:$0xff] }
  0xe7   : > { %5079 = vrot.lane.b32.xlu1 %v5986_v37, %s5584_s14  ;;  %v5997_v42 = vpop.permute.xlu2 %4919 }
  0xe9   : > { %5089 = vrot.lane.b32.xlu0 %v5824_v10, %s5580_s10  ;;  %v6001_v48 = vpop.permute.xlu1 %4869  ;;  %v518_v10 = vld [vmem:[#allocation2 + $0x112] sm:$0xff] }
  0xea   : > { %v6022_v19 = vpack.i.bf16 %v518_v10, %v517_v58 }
  0xeb   : > { %v6005_v53 = vpop.permute.xlu0 %4879 }
  0xed   : > { %5099 = vrot.lane.b32.xlu2 %v6003_v49, %s5581_s11 }
  0xef   : > { %5094 = vrot.lane.b32.xlu1 %v5986_v37, %s5582_s12  ;;  %v6014_v59 = vpop.permute.xlu2 %4934 }
  0xf1   : > { %5104 = vrot.lane.b32.xlu0 %v5820_v5, %s5583_s13  ;;  %v6020_v12 = vpop.permute.xlu1 %4884  ;;  %v6032_v5 = vpack.i.bf16 %v456_v34, %v455_v29  ;;  %v457_v29 = vld [vmem:[#allocation2 + $0x138] sm:$0xff]  ;;  %v458_v34 = vld [vmem:[#allocation2 + $0x140] sm:$0xff] }
  0xf2   : > { %v6064_v11 = vpack.i.bf16 %v458_v34, %v457_v29  ;;  %v4922_v29 = vunpack.i.h.bf16 %v5997_v42  ;;  %v4921_v34 = vunpack.i.l.bf16 %v5997_v42 }
  0xf3   : > { %v4895_v25 = vpop.permute.xlu0 %4894 }
  0xf4   : > { %v4897_v35 = vunpack.i.h.bf16 %v4895_v25  ;;  %v4896_v38 = vunpack.i.l.bf16 %v4895_v25  ;;  %v431_v25 = vld [vmem:[#allocation2] sm:$0xff] }
  0xf5   : > { %5114 = vrot.lane.b32.xlu2 %v6022_v19, %s5578_s8  ;;  %v1744_v46 = vsel %vm310_vm0, %v431_v25, %v4791_v63  ;;  %v6080_v63 = vpack.i.bf16 %v711_v44, %v710_v16  ;;  %v573_v16 = vld [vmem:[#allocation2 + $0xc1] sm:$0xff]  ;;  %v574_v44 = vld [vmem:[#allocation2 + $0xc9] sm:$0xff] }
  0xf6   : > { %v6035_v41 = vsel %vm1776_vm4, %v1755_v40, %v4897_v35  ;;  %v6038_v43 = vsel %vm1776_vm4, %v1754_v7, %v4896_v38  ;;  %v4872_v35 = vunpack.i.h.bf16 %v6001_v48  ;;  %v4871_v38 = vunpack.i.l.bf16 %v6001_v48 }
  0xf7   : > { %5109 = vrot.lane.b32.xlu1 %v6024_v26, %s5584_s14  ;;  %v6044_v8 = vpop.permute.xlu2 %4949  ;;  %v4906_v48 = vunpack.i.l.bf16 %v5978_v32 }
  0xf9   : > { %5119 = vrot.lane.b32.xlu0 %v6032_v5, %s5579_s9  ;;  %v4900_v50 = vpop.permute.xlu1 %4899 }
  0xfa   : > { %v4902_v58 = vunpack.i.h.bf16 %v4900_v50  ;;  %v4901_v10 = vunpack.i.l.bf16 %v4900_v50  ;;  %v1778_v50 = vsel %vm1776_vm4, %v1745_v27, %v4872_v35 }
  0xfb   : > { %v4910_v33 = vpop.permute.xlu0 %4909 }
  0xfc   : > { %v6059_v40 = vsel %vm1776_vm4, %v1756_v39, %v4901_v10  ;;  %v6062_v7 = vsel %vm1776_vm4, %v1757_v20, %v4902_v58  ;;  %v1777_v58 = vsel %vm1776_vm4, %v1744_v46, %v4871_v38  ;;  %v4912_v10 = vunpack.i.h.bf16 %v4910_v33 }
  0xfd   : > { %5129 = vrot.lane.b32.xlu2 %v6048_v52, %s5582_s12  ;;  %v4911_v56 = vunpack.i.l.bf16 %v4910_v33  ;;  %v1811_v39 = vsel %vm1809_vm5, %v1778_v50, %v4907_v47 }
  0xfe   : > { %v1844_v33 = vsel %vm1842_vm6, %v1811_v39, %v4912_v10  ;;  %v5158_v10 = vpack.i.bf16 %v574_v44, %v573_v16  ;;  %v4936_v16 = vunpack.i.l.bf16 %v6014_v59 }
  0xff   : > { %5124 = vrot.lane.b32.xlu1 %v5837_v21, %s5580_s10  ;;  %v6074_v9 = vpop.permute.xlu2 %4964  ;;  %v1810_v21 = vsel %vm1809_vm5, %v1777_v58, %v4906_v48 }
 0x100   : > { %v1843_v35 = vsel %vm1842_vm6, %v1810_v21, %v4911_v56 }
 0x101   : > { %5134 = vrot.lane.b32.xlu0 %v6064_v11, %s5581_s11  ;;  %v4915_v60 = vpop.permute.xlu1 %4914 }
 0x102   : > { %v4917_v32 = vunpack.i.h.bf16 %v4915_v60  ;;  %v4916_v20 = vunpack.i.l.bf16 %v4915_v60 }
 0x103   : > { %v4925_v25 = vpop.permute.xlu0 %4924 }
 0x104   : > { %v1876_v38 = vsel %vm1875_vm7, %v1843_v35, %v4916_v20  ;;  %v1877_v27 = vsel %vm1875_vm7, %v1844_v33, %v4917_v32  ;;  %v4927_v46 = vunpack.i.h.bf16 %v4925_v25  ;;  %v4926_v47 = vunpack.i.l.bf16 %v4925_v25  ;;  %v670_v35 = vld [vmem:[#allocation2 + $0xd9] sm:$0xff] }
 0x105   : > { %5144 = vrot.lane.b32.xlu2 %v6080_v63, %s5584_s14  ;;  %v1909_v48 = vsel %vm1908_vm8, %v1876_v38, %v4921_v34  ;;  %v1910_v50 = vsel %vm1908_vm8, %v1877_v27, %v4922_v29  ;;  %v4797_v25 = vunpack.i.h.bf16 %v5934_v15  ;;  %v4796_v29 = vunpack.i.l.bf16 %v5934_v15  ;;  %v671_v38 = vld [vmem:[#allocation2 + $0xe1] sm:$0xff] }
 0x106   : > { %v1942_v32 = vsel %vm1941_vm9, %v1909_v48, %v4926_v47  ;;  %v1943_v20 = vsel %vm1941_vm9, %v1910_v50, %v4927_v46  ;;  %v4877_v34 = vunpack.i.h.bf16 %v5956_v22  ;;  %v4876_v33 = vunpack.i.l.bf16 %v5956_v22  ;;  %v449_v48 = vld [vmem:[#allocation2 + $0xd8] sm:$0xff] }
 0x107   : > { %5139 = vrot.lane.b32.xlu1 %v5842_v30, %s5583_s13  ;;  %v6094_v42 = vpop.permute.xlu2 %4979  ;;  %v4937_v27 = vunpack.i.h.bf16 %v6014_v59  ;;  %v1746_v47 = vsel %vm310_vm0, %v5854_v54, %v4796_v29  ;;  %v1747_v22 = vsel %vm310_vm0, %v5856_v55, %v4797_v25  ;;  %v6122_v50 = vpack.i.bf16 %v671_v38, %v670_v35 }
 0x108   : > { %v4951_v25 = vunpack.i.l.bf16 %v6044_v8 }
 0x109   : > { %5149 = vrot.lane.b32.xlu0 %v5986_v37, %s5578_s8  ;;  %v4930_v58 = vpop.permute.xlu1 %4929 }
 0x10a   : > { %v4932_v56 = vunpack.i.h.bf16 %v4930_v58  ;;  %v4931_v60 = vunpack.i.l.bf16 %v4930_v58  ;;  %v1780_v58 = vsel %vm1776_vm4, %v1747_v22, %v4877_v34 }
 0x10b   : > { %v4940_v30 = vpop.permute.xlu0 %4939  ;;  %v1813_v55 = vsel %vm1809_vm5, %v1780_v58, %v4937_v27 }
 0x10c   : > { %v1975_v21 = vsel %vm7275_vm10, %v1942_v32, %v4931_v60  ;;  %v1976_v39 = vsel %vm7275_vm10, %v1943_v20, %v4932_v56  ;;  %v4942_v15 = vunpack.i.h.bf16 %v4940_v30  ;;  %v4941_v46 = vunpack.i.l.bf16 %v4940_v30  ;;  %v702_v32 = vld [vmem:[#allocation2 + $0xda] sm:$0xff]  ;;  %v703_v20 = vld [vmem:[#allocation2 + $0xe2] sm:$0xff] }
 0x10d   : > { %v2007_v37 = vpack.c.bf16 %v1976_v39, %v1975_v21  ;;  %5159 = vrot.lane.b32.xlu2 %v5158_v10, %s5580_s10  ;;  %v450_v10 = vld [vmem:[#allocation2 + $0xe0] sm:$0xff]  ;;  %v4952_v39 = vunpack.i.h.bf16 %v6044_v8  ;;  %v6136_v35 = vpack.i.bf16 %v703_v20, %v702_v32  ;;  %v4802_v32 = vunpack.i.h.bf16 %v5932_v14 }
 0x10e   : > { %v6128_v21 = vpack.i.bf16 %v450_v10, %v449_v48  ;;  %v583_v48 = vld [vmem:[#allocation2 + $0x139] sm:$0xff]  ;;  %v4801_v20 = vunpack.i.l.bf16 %v5932_v14  ;;  %v459_v14 = vld [vmem:[#allocation2 + $0x150] sm:$0xff] }
 0x10f   : > { %5154 = vrot.lane.b32.xlu1 %v6003_v49, %s5579_s9  ;;  %4302 = vmatmul.msk.bf16.vlgmr.msra.gmra.mxu0 %vm2042_vm11, %v2007_v37  ;;  %v6114_v44 = vpop.permute.xlu2 %4994  ;;  %v1779_v49 = vsel %vm1776_vm4, %v1746_v47, %v4876_v33  ;;  %v1846_v37 = vsel %vm1842_vm6, %v1813_v55, %v4942_v15 }
 0x110   : > { %v1812_v54 = vsel %vm1809_vm5, %v1779_v49, %v4936_v16 }
 0x111   : > { %5164 = vrot.lane.b32.xlu0 %v6024_v26, %s5582_s12  ;;  %v4945_v59 = vpop.permute.xlu1 %4944  ;;  %v1845_v29 = vsel %vm1842_vm6, %v1812_v54, %v4941_v46 }
 0x112   : > { %v4947_v56 = vunpack.i.h.bf16 %v4945_v59  ;;  %v4946_v60 = vunpack.i.l.bf16 %v4945_v59  ;;  %v584_v59 = vld [vmem:[#allocation2 + $0x141] sm:$0xff] }
 0x113   : > { %v4955_v30 = vpop.permute.xlu0 %4954  ;;  %v5193_v54 = vpack.i.bf16 %v584_v59, %v583_v48  ;;  %v681_v48 = vld [vmem:[#allocation2 + $0x159] sm:$0xff] }
 0x114   : > { %v1878_v34 = vsel %vm1875_vm7, %v1845_v29, %v4946_v60  ;;  %v1879_v33 = vsel %vm1875_vm7, %v1846_v37, %v4947_v56  ;;  %v4957_v38 = vunpack.i.h.bf16 %v4955_v30  ;;  %v4956_v27 = vunpack.i.l.bf16 %v4955_v30 }
 0x115   : > { %5174 = vrot.lane.b32.xlu2 %v6122_v50, %s5583_s13  ;;  %v1911_v8 = vsel %vm1908_vm8, %v1878_v34, %v4951_v25  ;;  %v1912_v15 = vsel %vm1908_vm8, %v1879_v33, %v4952_v39  ;;  %v4882_v30 = vunpack.i.h.bf16 %v6005_v53  ;;  %v4881_v39 = vunpack.i.l.bf16 %v6005_v53  ;;  %v460_v34 = vld [vmem:[#allocation2 + $0x158] sm:$0xff] }
 0x116   : > { %v1944_v49 = vsel %vm1941_vm9, %v1911_v8, %v4956_v27  ;;  %v1945_v58 = vsel %vm1941_vm9, %v1912_v15, %v4957_v38  ;;  %v4967_v25 = vunpack.i.h.bf16 %v6074_v9  ;;  %v4966_v29 = vunpack.i.l.bf16 %v6074_v9 }
 0x117   : > { %5169 = vrot.lane.b32.xlu1 %v6128_v21, %s5581_s11  ;;  %v6142_v16 = vpop.permute.xlu2 %5009  ;;  %v1749_v53 = vsel %vm310_vm0, %v5868_v62, %v4802_v32  ;;  %v5203_v27 = vpack.i.bf16 %v460_v34, %v459_v14  ;;  %v4981_v62 = vunpack.i.l.bf16 %v6094_v42 }
 0x118   : > { %v1782_v8 = vsel %vm1776_vm4, %v1749_v53, %v4882_v30 }
 0x119   : > { %5179 = vrot.lane.b32.xlu0 %v6136_v35, %s5584_s14  ;;  %v4960_v46 = vpop.permute.xlu1 %4959 }
 0x11a   : > { %v4962_v47 = vunpack.i.h.bf16 %v4960_v46  ;;  %v4961_v22 = vunpack.i.l.bf16 %v4960_v46 }
 0x11b   : > { %v4970_v10 = vpop.permute.xlu0 %4969 }
 0x11c   : > { %v1977_v56 = vsel %vm7275_vm10, %v1944_v49, %v4961_v22  ;;  %v1978_v60 = vsel %vm7275_vm10, %v1945_v58, %v4962_v47  ;;  %v4972_v33 = vunpack.i.h.bf16 %v4970_v10  ;;  %v4971_v38 = vunpack.i.l.bf16 %v4970_v10  ;;  %v680_v22 = vld [vmem:[#allocation2 + $0x151] sm:$0xff] }
 0x11d   : > { %v2008_v55 = vpack.c.bf16 %v1978_v60, %v1977_v56  ;;  %5189 = vrot.lane.b32.xlu2 %v6064_v11, %s5579_s9  ;;  %v1748_v11 = vsel %vm310_vm0, %v5866_v61, %v4801_v20  ;;  %v1815_v49 = vsel %vm1809_vm5, %v1782_v8, %v4967_v25  ;;  %v4982_v58 = vunpack.i.h.bf16 %v6094_v42 }
 0x11e   : > { %v1781_v15 = vsel %vm1776_vm4, %v1748_v11, %v4881_v39  ;;  %v1848_v56 = vsel %vm1842_vm6, %v1815_v49, %v4972_v33  ;;  %v6180_v20 = vpack.i.bf16 %v681_v48, %v680_v22  ;;  %v4887_v22 = vunpack.i.h.bf16 %v6020_v12 }
 0x11f   : > { %5184 = vrot.lane.b32.xlu1 %v6048_v52, %s5578_s8  ;;  %4303 = vmatmul.msk.bf16.gmra.mxu0 %vm2042_vm11, %v2008_v55  ;;  %v6163_v37 = vpop.permute.xlu2 %5024  ;;  %v1814_v59 = vsel %vm1809_vm5, %v1781_v15, %v4966_v29  ;;  %v713_v55 = vld [vmem:[#allocation2 + $0x15a] sm:$0xff]  ;;  %v4807_v15 = vunpack.i.h.bf16 %v5947_v18  ;;  %v4886_v48 = vunpack.i.l.bf16 %v6020_v12  ;;  %v4996_v49 = vunpack.i.l.bf16 %v6114_v44  ;;  %v451_v12 = vld [vmem:[#allocation2 + $0xf0] sm:$0xff] }
 0x120   : > { %v1847_v10 = vsel %vm1842_vm6, %v1814_v59, %v4971_v38  ;;  %v4997_v59 = vunpack.i.h.bf16 %v6114_v44 }
 0x121   : > { %5194 = vrot.lane.b32.xlu0 %v5193_v54, %s5580_s10  ;;  %v4975_v9 = vpop.permute.xlu1 %4974  ;;  %v712_v54 = vld [vmem:[#allocation2 + $0x152] sm:$0xff] }
 0x122   : > { %v4977_v46 = vunpack.i.h.bf16 %v4975_v9  ;;  %v4976_v47 = vunpack.i.l.bf16 %v4975_v9  ;;  %v6191_v34 = vpack.i.bf16 %v713_v55, %v712_v54 }
 0x123   : > { %v4985_v61 = vpop.permute.xlu0 %4984 }
 0x124   : > { %v1880_v60 = vsel %vm1875_vm7, %v1847_v10, %v4976_v47  ;;  %v1881_v32 = vsel %vm1875_vm7, %v1848_v56, %v4977_v46  ;;  %v4987_v30 = vunpack.i.h.bf16 %v4985_v61  ;;  %v4986_v39 = vunpack.i.l.bf16 %v4985_v61  ;;  %v452_v56 = vld [vmem:[#allocation2 + $0xf8] sm:$0xff] }
 0x125   : > { %5204 = vrot.lane.b32.xlu2 %v5203_v27, %s5581_s11  ;;  %v1913_v25 = vsel %vm1908_vm8, %v1880_v60, %v4981_v62  ;;  %v1914_v29 = vsel %vm1908_vm8, %v1881_v32, %v4982_v58  ;;  %v4806_v46 = vunpack.i.l.bf16 %v5947_v18  ;;  %v1751_v62 = vsel %vm310_vm0, %v5883_v2, %v4807_v15 }
 0x126   : > { %v1946_v11 = vsel %vm1941_vm9, %v1913_v25, %v4986_v39  ;;  %v1947_v53 = vsel %vm1941_vm9, %v1914_v29, %v4987_v30  ;;  %v1784_v32 = vsel %vm1776_vm4, %v1751_v62, %v4887_v22  ;;  %v577_v30 = vld [vmem:[#allocation2 + $0xf1] sm:$0xff]  ;;  %v578_v39 = vld [vmem:[#allocation2 + $0xf9] sm:$0xff] }
 0x127   : > { %5199 = vrot.lane.b32.xlu1 %v6080_v63, %s5582_s12  ;;  %v6185_v42 = vpop.permute.xlu2 %5039  ;;  %v1750_v10 = vsel %vm310_vm0, %v5881_v1, %v4806_v46  ;;  %v1817_v25 = vsel %vm1809_vm5, %v1784_v32, %v4997_v59  ;;  %v6220_v1 = vpack.i.bf16 %v452_v56, %v451_v12  ;;  %v4811_v56 = vunpack.i.l.bf16 %v5900_v6 }
 0x128   : > { %v1783_v60 = vsel %vm1776_vm4, %v1750_v10, %v4886_v48  ;;  %v4892_v32 = vunpack.i.h.bf16 %v5967_v24 }
 0x129   : > { %5209 = vrot.lane.b32.xlu0 %v6180_v20, %s5583_s13  ;;  %v4990_v14 = vpop.permute.xlu1 %4989  ;;  %v1816_v2 = vsel %vm1809_vm5, %v1783_v60, %v4996_v49 }
 0x12a   : > { %v4992_v33 = vunpack.i.h.bf16 %v4990_v14  ;;  %v4991_v38 = vunpack.i.l.bf16 %v4990_v14  ;;  %v5012_v14 = vunpack.i.h.bf16 %v6142_v16 }
 0x12b   : > { %v5000_v9 = vpop.permute.xlu0 %4999 }
 0x12c   : > { %v1979_v27 = vsel %vm7275_vm10, %v1946_v11, %v4991_v38  ;;  %v1980_v8 = vsel %vm7275_vm10, %v1947_v53, %v4992_v33  ;;  %v5002_v18 = vunpack.i.h.bf16 %v5000_v9  ;;  %v5001_v58 = vunpack.i.l.bf16 %v5000_v9 }
 0x12d   : > { %v2009_v47 = vpack.c.bf16 %v1980_v8, %v1979_v27  ;;  %5219 = vrot.lane.b32.xlu2 %v6191_v34, %s5584_s14  ;;  %v6228_v9 = vpack.i.bf16 %v578_v39, %v577_v30  ;;  %v704_v27 = vld [vmem:[#allocation2 + $0xf2] sm:$0xff]  ;;  %v705_v8 = vld [vmem:[#allocation2 + $0xfa] sm:$0xff]  ;;  %v5026_v30 = vunpack.i.l.bf16 %v6163_v37 }
 0x12e   : > { %v1850_v33 = vsel %vm1842_vm6, %v1817_v25, %v5002_v18  ;;  %v1849_v38 = vsel %vm1842_vm6, %v1816_v2, %v5001_v58  ;;  %v6240_v59 = vpack.i.bf16 %v705_v8, %v704_v27  ;;  %v1752_v2 = vsel %vm310_vm0, %v5895_v3, %v4811_v56 }
 0x12f   : > { %5214 = vrot.lane.b32.xlu1 %v6136_v35, %s5578_s8  ;;  %4304 = vmatmul.msk.bf16.gmra.mxu0 %vm2042_vm11, %v2009_v47  ;;  %v6208_v61 = vpop.permute.xlu2 %5054 }
 0x131   : > { %5224 = vrot.lane.b32.xlu0 %v6024_v26, %s5578_s8  ;;  %v5005_v44 = vpop.permute.xlu1 %5004  ;;  %v5011_v26 = vunpack.i.l.bf16 %v6142_v16 }
 0x132   : > { %v5007_v54 = vunpack.i.h.bf16 %v5005_v44  ;;  %v5006_v55 = vunpack.i.l.bf16 %v5005_v44  ;;  %v4812_v44 = vunpack.i.h.bf16 %v5900_v6 }
 0x133   : > { %v5015_v29 = vpop.permute.xlu0 %5014 }
 0x134   : > { %v1882_v11 = vsel %vm1875_vm7, %v1849_v38, %v5006_v55  ;;  %v1883_v53 = vsel %vm1875_vm7, %v1850_v33, %v5007_v54  ;;  %v5017_v15 = vunpack.i.h.bf16 %v5015_v29  ;;  %v5016_v46 = vunpack.i.l.bf16 %v5015_v29 }
 0x135   : > { %5234 = vrot.lane.b32.xlu2 %v6128_v21, %s5579_s9  ;;  %v1915_v47 = vsel %vm1908_vm8, %v1882_v11, %v5011_v26  ;;  %v1916_v22 = vsel %vm1908_vm8, %v1883_v53, %v5012_v14  ;;  %v4891_v54 = vunpack.i.l.bf16 %v5967_v24  ;;  %v5027_v55 = vunpack.i.h.bf16 %v6163_v37  ;;  %v6263_v24 = vld [vmem:[#allocation2 + $0x108] sm:$0xff]  ;;  %v6267_v14 = vld [vmem:[#allocation2 + $0x110] sm:$0xff] }
 0x136   : > { %v1948_v18 = vsel %vm1941_vm9, %v1915_v47, %v5016_v46  ;;  %v1949_v58 = vsel %vm1941_vm9, %v1916_v22, %v5017_v15  ;;  %v1753_v29 = vsel %vm310_vm0, %v5897_v4, %v4812_v44  ;;  %v674_v11 = vld [vmem:[#allocation2 + $0x109] sm:$0xff]  ;;  %v675_v53 = vld [vmem:[#allocation2 + $0x111] sm:$0xff]  ;;  %v5258_v8 = vpack.i.bf16 %v6267_v14, %v6263_v24 }
 0x137   : > { %5229 = vrot.lane.b32.xlu1 %v6220_v1, %s5579_s9  ;;  %v6234_v16 = vpop.permute.xlu2 %5069  ;;  %v1785_v26 = vsel %vm1776_vm4, %v1752_v2, %v4891_v54  ;;  %v5041_v15 = vunpack.i.l.bf16 %v6185_v42  ;;  %v5056_v2 = vunpack.i.l.bf16 %v6208_v61 }
 0x138   : > { %v1818_v3 = vsel %vm1809_vm5, %v1785_v26, %v5026_v30  ;;  %v553_v30 = vld [vmem:[#allocation2 + $0x150] sm:$0xff] }
 0x139   : > { %5239 = vrot.lane.b32.xlu0 %v6228_v9, %s5580_s10  ;;  %v5020_v48 = vpop.permute.xlu1 %5019 }
 0x13a   : > { %v5022_v21 = vunpack.i.h.bf16 %v5020_v48  ;;  %v5021_v49 = vunpack.i.l.bf16 %v5020_v48 }
 0x13b   : > { %v5030_v62 = vpop.permute.xlu0 %5029 }
 0x13c   : > { %v1981_v10 = vsel %vm7275_vm10, %v1948_v18, %v5021_v49  ;;  %v1982_v12 = vsel %vm7275_vm10, %v1949_v58, %v5022_v21  ;;  %v5032_v6 = vunpack.i.h.bf16 %v5030_v62  ;;  %v5031_v25 = vunpack.i.l.bf16 %v5030_v62 }
 0x13d   : > { %v2010_v60 = vpack.c.bf16 %v1982_v12, %v1981_v10  ;;  %5249 = vrot.lane.b32.xlu2 %v6240_v59, %s5582_s12  ;;  %v6281_v21 = vpack.i.bf16 %v675_v53, %v674_v11 }
 0x13e   : > { %v1851_v47 = vsel %vm1842_vm6, %v1818_v3, %v5031_v25  ;;  %v5057_v25 = vunpack.i.h.bf16 %v6208_v61  ;;  %v1820_v61 = vsel %vm1809_vm5, %v6038_v43, %v5056_v2  ;;  %v5072_v3 = vunpack.i.h.bf16 %v6234_v16 }
 0x13f   : > { %5244 = vrot.lane.b32.xlu1 %v6122_v50, %s5580_s10  ;;  %4305 = vmatmul.msk.bf16.gmra.mxu0 %vm2042_vm11, %v2010_v60  ;;  %v6257_v39 = vpop.permute.xlu2 %5084  ;;  %v1786_v50 = vsel %vm1776_vm4, %v1753_v29, %v4892_v32 }
 0x140   : > { %v1819_v4 = vsel %vm1809_vm5, %v1786_v50, %v5027_v55  ;;  %v5087_v2 = vunpack.i.h.bf16 %v6257_v39 }
 0x141   : > { %5254 = vrot.lane.b32.xlu0 %v6136_v35, %s5582_s12  ;;  %v5035_v37 = vpop.permute.xlu1 %5034  ;;  %v5042_v35 = vunpack.i.h.bf16 %v6185_v42  ;;  %v1852_v46 = vsel %vm1842_vm6, %v1819_v4, %v5032_v6  ;;  %v554_v6 = vld [vmem:[#allocation2 + $0x158] sm:$0xff]  ;;  %v5071_v4 = vunpack.i.l.bf16 %v6234_v16  ;;  %v461_v16 = vld [vmem:[#allocation2 + $0x168] sm:$0xff] }
 0x142   : > { %v5037_v33 = vunpack.i.h.bf16 %v5035_v37  ;;  %v5036_v38 = vunpack.i.l.bf16 %v5035_v37 }
 0x143   : > { %v5045_v27 = vpop.permute.xlu0 %5044 }
 0x144   : > { %v1884_v22 = vsel %vm1875_vm7, %v1851_v47, %v5036_v38  ;;  %v1885_v48 = vsel %vm1875_vm7, %v1852_v46, %v5037_v33  ;;  %v5047_v49 = vunpack.i.h.bf16 %v5045_v27  ;;  %v5046_v18 = vunpack.i.l.bf16 %v5045_v27  ;;  %v4760_v46 = vld [vmem:[%s5738_s30 + $0x78] sm:$0xff]  }
 0x145   : > { %5264 = vrot.lane.b32.xlu2 %v6220_v1, %s5581_s11  ;;  %v1917_v42 = vsel %vm1908_vm8, %v1884_v22, %v5041_v15  ;;  %v1918_v62 = vsel %vm1908_vm8, %v1885_v48, %v5042_v35  ;;  %v5293_v33 = vpack.i.bf16 %v554_v6, %v553_v30  ;;  %v4744_v43 = vunpack.c.l.bf16 %v4760_v46  ;;  %v714_v6 = vld [vmem:[#allocation2 + $0x16a] sm:$0xff] }
 0x146   : > { %v1950_v56 = vsel %vm1941_vm9, %v1917_v42, %v5046_v18  ;;  %v1951_v1 = vsel %vm1941_vm9, %v1918_v62, %v5047_v49  ;;  %v4745_v47 = vunpack.c.h.bf16 %v4760_v46  ;;  %v462_v49 = vld [vmem:[#allocation2 + $0x170] sm:$0xff] }
 0x147   : > { %5259 = vrot.lane.b32.xlu1 %v5258_v8, %s5581_s11  ;;  %v6286_v58 = vpop.permute.xlu2 %5099  ;;  %429 = vst.msk [vmem:[#allocation2 + $0x181] sm:$0xff] %vm310_vm0, %v4744_v43 }
 0x148   : > { %430 = vst.msk [vmem:[#allocation2 + $0x189] sm:$0xff] %vm310_vm0, %v4745_v47 }
 0x149   : > { %5269 = vrot.lane.b32.xlu0 %v6281_v21, %s5583_s13  ;;  %v5050_v10 = vpop.permute.xlu1 %5049 }
 0x14a   : > { %v5052_v12 = vunpack.i.h.bf16 %v5050_v10  ;;  %v5051_v44 = vunpack.i.l.bf16 %v5050_v10  ;;  %v5308_v10 = vpack.i.bf16 %v462_v49, %v461_v16 }
 0x14b   : > { %v5060_v60 = vpop.permute.xlu0 %5059 }
 0x14c   : > { %v1983_v32 = vsel %vm7275_vm10, %v1950_v56, %v5051_v44  ;;  %v1984_v54 = vsel %vm7275_vm10, %v1951_v1, %v5052_v12  ;;  %v5062_v37 = vunpack.i.h.bf16 %v5060_v60  ;;  %v5061_v50 = vunpack.i.l.bf16 %v5060_v60  ;;  %v683_v56 = vld [vmem:[#allocation2 + $0x171] sm:$0xff] }
 0x14d   : > { %v2011_v55 = vpack.c.bf16 %v1984_v54, %v1983_v32  ;;  %5279 = vrot.lane.b32.xlu2 %v6022_v19, %s5584_s14 }
 0x14e   : > { %v1853_v27 = vsel %vm1842_vm6, %v1820_v61, %v5061_v50 }
 0x14f   : > { %5274 = vrot.lane.b32.xlu1 %v6228_v9, %s5583_s13  ;;  %4306 = vmatmul.msk.bf16.gmra.mxu0 %vm2042_vm11, %v2011_v55  ;;  %v6303_v29 = vpop.permute.xlu2 %5114  ;;  %v1821_v9 = vsel %vm1809_vm5, %v6035_v41, %v5057_v25  ;;  %v715_v25 = vld [vmem:[#allocation2 + $0x172] sm:$0xff] }
 0x150   : > { %v1854_v8 = vsel %vm1842_vm6, %v1821_v9, %v5062_v37  ;;  %v5086_v37 = vunpack.i.l.bf16 %v6257_v39 }
 0x151   : > { %5284 = vrot.lane.b32.xlu0 %v6240_v59, %s5584_s14  ;;  %v5065_v26 = vpop.permute.xlu1 %5064 }
 0x152   : > { %v5067_v38 = vunpack.i.h.bf16 %v5065_v26  ;;  %v5066_v11 = vunpack.i.l.bf16 %v5065_v26  ;;  %v1822_v39 = vsel %vm1809_vm5, %v6059_v40, %v5086_v37 }
 0x153   : > { %v5075_v53 = vpop.permute.xlu0 %5074 }
 0x154   : > { %v1886_v35 = vsel %vm1875_vm7, %v1853_v27, %v5066_v11  ;;  %v1887_v15 = vsel %vm1875_vm7, %v1854_v8, %v5067_v38  ;;  %v5077_v22 = vunpack.i.h.bf16 %v5075_v53  ;;  %v5076_v41 = vunpack.i.l.bf16 %v5075_v53  ;;  %v547_v53 = vld [vmem:[#allocation2 + $0x108] sm:$0xff] }
 0x155   : > { %5294 = vrot.lane.b32.xlu2 %v5293_v33, %s5579_s9  ;;  %v1919_v18 = vsel %vm1908_vm8, %v1886_v35, %v5071_v4  ;;  %v1920_v42 = vsel %vm1908_vm8, %v1887_v15, %v5072_v3  ;;  %v6345_v11 = vpack.i.bf16 %v715_v25, %v714_v6  ;;  %v548_v3 = vld [vmem:[#allocation2 + $0x110] sm:$0xff]  ;;  %v1823_v4 = vsel %vm1809_vm5, %v6062_v7, %v5087_v2  ;;  %v676_v6 = vld [vmem:[#allocation2 + $0x121] sm:$0xff] }
 0x156   : > { %v1952_v1 = vsel %vm1941_vm9, %v1919_v18, %v5076_v41  ;;  %v1953_v60 = vsel %vm1941_vm9, %v1920_v42, %v5077_v22  ;;  %v5102_v8 = vunpack.i.h.bf16 %v6286_v58  ;;  %v5101_v35 = vunpack.i.l.bf16 %v6286_v58  ;;  %v677_v25 = vld [vmem:[#allocation2 + $0x129] sm:$0xff] }
 0x157   : > { %5289 = vrot.lane.b32.xlu1 %v6080_v63, %s5578_s8  ;;  %v6321_v48 = vpop.permute.xlu2 %5129  ;;  %v682_v63 = vld [vmem:[#allocation2 + $0x169] sm:$0xff]  ;;  %v5328_v22 = vpack.i.bf16 %v548_v3, %v547_v53 }
 0x158   : > { %v6333_v30 = vpack.i.bf16 %v683_v56, %v682_v63  ;;  %v4847_v56 = vunpack.i.h.bf16 %v5928_v13  ;;  %v5131_v53 = vunpack.i.l.bf16 %v6321_v48  ;;  %v555_v3 = vld [vmem:[#allocation2 + $0x168] sm:$0xff] }
 0x159   : > { %5299 = vrot.lane.b32.xlu0 %v6180_v20, %s5580_s10  ;;  %v5080_v62 = vpop.permute.xlu1 %5079 }
 0x15a   : > { %v5082_v12 = vunpack.i.h.bf16 %v5080_v62  ;;  %v5081_v44 = vunpack.i.l.bf16 %v5080_v62 }
 0x15b   : > { %v5090_v32 = vpop.permute.xlu0 %5089 }
 0x15c   : > { %v1985_v54 = vsel %vm7275_vm10, %v1952_v1, %v5081_v44  ;;  %v1986_v55 = vsel %vm7275_vm10, %v1953_v60, %v5082_v12  ;;  %v5092_v26 = vunpack.i.h.bf16 %v5090_v32  ;;  %v5091_v33 = vunpack.i.l.bf16 %v5090_v32 }
 0x15d   : > { %v2012_v20 = vpack.c.bf16 %v1986_v55, %v1985_v54  ;;  %5309 = vrot.lane.b32.xlu2 %v5308_v10, %s5581_s11  ;;  %v4846_v1 = vunpack.i.l.bf16 %v5928_v13  ;;  %v5117_v60 = vunpack.i.h.bf16 %v6303_v29  ;;  %v5116_v32 = vunpack.i.l.bf16 %v6303_v29 }
 0x15e   : > { %v1855_v15 = vsel %vm1842_vm6, %v1822_v39, %v5091_v33  ;;  %v1856_v46 = vsel %vm1842_vm6, %v1823_v4, %v5092_v26  ;;  %v1767_v13 = vsel %vm310_vm0, %v6267_v14, %v4847_v56  ;;  %v556_v39 = vld [vmem:[#allocation2 + $0x170] sm:$0xff] }
 0x15f   : > { %5304 = vrot.lane.b32.xlu1 %v6191_v34, %s5582_s12  ;;  %4307 = vmatmul.msk.bf16.gmra.mxu0 %vm2042_vm11, %v2012_v20  ;;  %v6341_v50 = vpop.permute.xlu2 %5144  ;;  %v1766_v29 = vsel %vm310_vm0, %v6263_v24, %v4846_v1  ;;  %v1800_v37 = vsel %vm1776_vm4, %v1767_v13, %v5117_v60  ;;  %v684_v1 = vld [vmem:[#allocation2 + $0x181] sm:$0xff]  ;;  %v685_v60 = vld [vmem:[#allocation2 + $0x189] sm:$0xff] }
 0x160   : > { %v1799_v26 = vsel %vm1776_vm4, %v1766_v29, %v5116_v32  ;;  %v6423_v29 = vpack.i.bf16 %v685_v60, %v684_v1 }
 0x161   : > { %5314 = vrot.lane.b32.xlu0 %v6333_v30, %s5583_s13  ;;  %v5095_v38 = vpop.permute.xlu1 %5094 }
 0x162   : > { %v5097_v61 = vunpack.i.h.bf16 %v5095_v38  ;;  %v5096_v9 = vunpack.i.l.bf16 %v5095_v38  ;;  %v5348_v38 = vpack.i.bf16 %v677_v25, %v676_v6  ;;  %v5551_v6 = vld [vmem:[#allocation2 + $0xb0] sm:$0xff] }
 0x163   : > { %v5105_v27 = vpop.permute.xlu0 %5104 }
 0x164   : > { %v1888_v43 = vsel %vm1875_vm7, %v1855_v15, %v5096_v9  ;;  %v1889_v47 = vsel %vm1875_vm7, %v1856_v46, %v5097_v61  ;;  %v5107_v40 = vunpack.i.h.bf16 %v5105_v27  ;;  %v5106_v41 = vunpack.i.l.bf16 %v5105_v27 }
 0x165   : > { %5324 = vrot.lane.b32.xlu2 %v6345_v11, %s5584_s14  ;;  %v1921_v58 = vsel %vm1908_vm8, %v1888_v43, %v5101_v35  ;;  %v1922_v16 = vsel %vm1908_vm8, %v1889_v47, %v5102_v8  ;;  %v5146_v46 = vunpack.i.l.bf16 %v6341_v50  ;;  %v5368_v43 = vpack.i.bf16 %v556_v39, %v555_v3 }
 0x166   : > { %v1954_v62 = vsel %vm1941_vm9, %v1921_v58, %v5106_v41  ;;  %v1955_v10 = vsel %vm1941_vm9, %v1922_v16, %v5107_v40  ;;  %v557_v40 = vld [vmem:[#allocation2 + $0x180] sm:$0xff]  ;;  %v558_v41 = vld [vmem:[#allocation2 + $0x188] sm:$0xff] }
 0x167   : > { %5319 = vrot.lane.b32.xlu1 %v6240_v59, %s5578_s8  ;;  %v6361_v7 = vpop.permute.xlu2 %5159 }
 0x169   : > { %5329 = vrot.lane.b32.xlu0 %v5328_v22, %s5579_s9  ;;  %v5110_v49 = vpop.permute.xlu1 %5109 }
 0x16a   : > { %v5112_v18 = vunpack.i.h.bf16 %v5110_v49  ;;  %v5111_v42 = vunpack.i.l.bf16 %v5110_v49 }
 0x16b   : > { %v5120_v12 = vpop.permute.xlu0 %5119 }
 0x16c   : > { %v1987_v44 = vsel %vm7275_vm10, %v1954_v62, %v5111_v42  ;;  %v1988_v59 = vsel %vm7275_vm10, %v1955_v10, %v5112_v18  ;;  %v5122_v55 = vunpack.i.h.bf16 %v5120_v12  ;;  %v5121_v20 = vunpack.i.l.bf16 %v5120_v12 }
 0x16d   : > { %v2013_v63 = vpack.c.bf16 %v1988_v59, %v1987_v44  ;;  %5339 = vrot.lane.b32.xlu2 %v6022_v19, %s5582_s12  ;;  %v5373_v62 = vpack.i.bf16 %v558_v41, %v557_v40  ;;  %v4827_v12 = vunpack.i.h.bf16 %v5960_v23  ;;  %v4826_v44 = vunpack.i.l.bf16 %v5960_v23  ;;  %v5552_v23 = vld [vmem:[#allocation2 + $0xa8] sm:$0xff] }
 0x16e   : > { %v1833_v61 = vsel %vm1809_vm5, %v1800_v37, %v5122_v55  ;;  %v1832_v9 = vsel %vm1809_vm5, %v1799_v26, %v5121_v20  ;;  %v5162_v37 = vunpack.i.h.bf16 %v6361_v7  ;;  %v5161_v26 = vunpack.i.l.bf16 %v6361_v7 }
 0x16f   : > { %5334 = vrot.lane.b32.xlu1 %v6281_v21, %s5580_s10  ;;  %4308 = vmatmul.msk.bf16.gmra.mxu0 %vm2042_vm11, %v2013_v63  ;;  %v6379_v54 = vpop.permute.xlu2 %5174  ;;  %v1759_v25 = vsel %vm310_vm0, %v5551_v6, %v4827_v12  ;;  %v4851_v12 = vunpack.i.l.bf16 %v5973_v31 }
 0x170   : > { %v5177_v7 = vunpack.i.h.bf16 %v6379_v54  ;;  %v5176_v3 = vunpack.i.l.bf16 %v6379_v54 }
 0x171   : > { %5344 = vrot.lane.b32.xlu0 %v6032_v5, %s5581_s11  ;;  %v5125_v19 = vpop.permute.xlu1 %5124  ;;  %v5132_v5 = vunpack.i.h.bf16 %v6321_v48  ;;  %v5147_v48 = vunpack.i.h.bf16 %v6341_v50 }
 0x172   : > { %v5127_v2 = vunpack.i.h.bf16 %v5125_v19  ;;  %v5126_v21 = vunpack.i.l.bf16 %v5125_v19  ;;  %v1758_v19 = vsel %vm310_vm0, %v5552_v23, %v4826_v44 }
 0x173   : > { %v5135_v33 = vpop.permute.xlu0 %5134 }
 0x174   : > { %v1865_v14 = vsel %vm1842_vm6, %v1832_v9, %v5126_v21  ;;  %v1866_v24 = vsel %vm1842_vm6, %v1833_v61, %v5127_v2  ;;  %v5137_v4 = vunpack.i.h.bf16 %v5135_v33  ;;  %v5136_v27 = vunpack.i.l.bf16 %v5135_v33 }
 0x175   : > { %5354 = vrot.lane.b32.xlu2 %v6048_v52, %s5584_s14  ;;  %v1898_v35 = vsel %vm1875_vm7, %v1865_v14, %v5131_v53  ;;  %v1899_v15 = vsel %vm1875_vm7, %v1866_v24, %v5132_v5  ;;  %v621_v14 = vld [vmem:[#allocation2 + $0x182] sm:$0xff]  ;;  %v622_v24 = vld [vmem:[#allocation2 + $0x18a] sm:$0xff] }
 0x176   : > { %v1931_v58 = vsel %vm1908_vm8, %v1898_v35, %v5136_v27  ;;  %v1932_v16 = vsel %vm1908_vm8, %v1899_v15, %v5137_v4  ;;  %v654_v35 = vld [vmem:[#allocation2 + $0x198] sm:$0xff]  ;;  %v655_v15 = vld [vmem:[#allocation2 + $0x1a0] sm:$0xff] }
 0x177   : > { %5349 = vrot.lane.b32.xlu1 %v5348_v38, %s5583_s13  ;;  %v6398_v8 = vpop.permute.xlu2 %5189  ;;  %v5403_v41 = vpack.i.bf16 %v655_v15, %v654_v35 }
 0x178   : > { %v5191_v6 = vunpack.i.l.bf16 %v6398_v8 }
 0x179   : > { %5359 = vrot.lane.b32.xlu0 %v6191_v34, %s5578_s8  ;;  %v5140_v52 = vpop.permute.xlu1 %5139 }
 0x17a   : > { %v5142_v47 = vunpack.i.h.bf16 %v5140_v52  ;;  %v5141_v22 = vunpack.i.l.bf16 %v5140_v52 }
 0x17b   : > { %v5150_v49 = vpop.permute.xlu0 %5149 }
 0x17c   : > { %v1964_v18 = vsel %vm1941_vm9, %v1931_v58, %v5141_v22  ;;  %v1965_v42 = vsel %vm1941_vm9, %v1932_v16, %v5142_v47  ;;  %v5152_v59 = vunpack.i.h.bf16 %v5150_v49  ;;  %v5151_v63 = vunpack.i.l.bf16 %v5150_v49 }
 0x17d   : > { %v1997_v50 = vsel %vm7275_vm10, %v1964_v18, %v5146_v46  ;;  %v1998_v34 = vsel %vm7275_vm10, %v1965_v42, %v5147_v48  ;;  %5369 = vrot.lane.b32.xlu2 %v5368_v43, %s5579_s9  ;;  %v5393_v43 = vpack.i.bf16 %v622_v24, %v621_v14  ;;  %v686_v42 = vld [vmem:[#allocation2 + $0x199] sm:$0xff] }
 0x17e   : > { %v2018_v10 = vpack.c.bf16 %v1998_v34, %v1997_v50  ;;  %v1792_v2 = vsel %vm1776_vm4, %v1759_v25, %v5152_v59  ;;  %v1791_v21 = vsel %vm1776_vm4, %v1758_v19, %v5151_v63  ;;  %v687_v50 = vld [vmem:[#allocation2 + $0x1a1] sm:$0xff] }
 0x17f   : > { %5364 = vrot.lane.b32.xlu1 %v6345_v11, %s5578_s8  ;;  %v6418_v56 = vpop.permute.xlu2 %5204 }
 0x180   : > { %4313 = vmatmul.msk.bf16.vlgmr.msra.gmra.mxu2 %vm2042_vm11, %v2018_v10  ;;  %v4852_v10 = vunpack.i.h.bf16 %v5973_v31  ;;  %v5553_v31 = vld [vmem:[#allocation2 + $0x128] sm:$0xff] }
 0x181   : > { %5374 = vrot.lane.b32.xlu0 %v5373_v62, %s5579_s9  ;;  %v5155_v32 = vpop.permute.xlu1 %5154 }
 0x182   : > { %v5157_v55 = vunpack.i.h.bf16 %v5155_v32  ;;  %v5156_v20 = vunpack.i.l.bf16 %v5155_v32  ;;  %v1769_v60 = vsel %vm310_vm0, %v5553_v31, %v4852_v10  ;;  %v5554_v32 = vld [vmem:[#allocation2 + $0x120] sm:$0xff] }
 0x183   : > { %v5165_v13 = vpop.permute.xlu0 %5164 }
 0x184   : > { %v1824_v33 = vsel %vm1809_vm5, %v1791_v21, %v5156_v20  ;;  %v1825_v38 = vsel %vm1809_vm5, %v1792_v2, %v5157_v55  ;;  %v5167_v61 = vunpack.i.h.bf16 %v5165_v13  ;;  %v5166_v9 = vunpack.i.l.bf16 %v5165_v13 }
 0x185   : > { %5384 = vrot.lane.b32.xlu2 %v6423_v29, %s5580_s10  ;;  %v1857_v5 = vsel %vm1842_vm6, %v1824_v33, %v5161_v26  ;;  %v1858_v53 = vsel %vm1842_vm6, %v1825_v38, %v5162_v37  ;;  %v1768_v55 = vsel %vm310_vm0, %v5554_v32, %v4851_v12  ;;  %v5192_v20 = vunpack.i.h.bf16 %v6398_v8  ;;  %v6483_v8 = vld [vmem:[%s7268_s2] ss:$0 sm:$0xff]  ;;  %v718_v37 = vld [vmem:[#allocation2 + $0x19a] sm:$0xff]  ;;  %v719_v26 = vld [vmem:[#allocation2 + $0x1a2] sm:$0xff] }
 0x186   : > { %v1891_v46 = vsel %vm1875_vm7, %v1858_v53, %v5167_v61  ;;  %v5207_v61 = vunpack.i.h.bf16 %v6418_v56  ;;  %v5423_v24 = vpack.i.bf16 %v719_v26, %v718_v37  ;;  %v4836_v32 = vunpack.i.l.bf16 %v5962_v45 }
 0x187   : > { %5379 = vrot.lane.b32.xlu1 %v6333_v30, %s5580_s10  ;;  %v6441_v48 = vpop.permute.xlu2 %5219  ;;  %v1890_v30 = vsel %vm1875_vm7, %v1857_v5, %v5166_v9  ;;  %v5206_v9 = vunpack.i.l.bf16 %v6418_v56 }
 0x188   : > { %v5222_v14 = vunpack.i.h.bf16 %v6441_v48 }
 0x189   : > { %5389 = vrot.lane.b32.xlu0 %v6345_v11, %s5582_s12  ;;  %v5170_v39 = vpop.permute.xlu1 %5169 }
 0x18a   : > { %v5172_v4 = vunpack.i.h.bf16 %v5170_v39  ;;  %v5171_v27 = vunpack.i.l.bf16 %v5170_v39 }
 0x18b   : > { %v5180_v52 = vpop.permute.xlu0 %5179 }
 0x18c   : > { %v1923_v47 = vsel %vm1908_vm8, %v1890_v30, %v5171_v27  ;;  %v1924_v54 = vsel %vm1908_vm8, %v1891_v46, %v5172_v4  ;;  %v5182_v22 = vunpack.i.h.bf16 %v5180_v52  ;;  %v5181_v40 = vunpack.i.l.bf16 %v5180_v52  ;;  %v2107_v11 = vpop.f32.mrf.mxu0 }
 0x18d   : > { %v1956_v58 = vsel %vm1941_vm9, %v1923_v47, %v5176_v3  ;;  %v1957_v16 = vsel %vm1941_vm9, %v1924_v54, %v5177_v7  ;;  %5399 = vrot.lane.b32.xlu2 %v5373_v62, %s5581_s11  ;;  %v5413_v62 = vpack.i.bf16 %v687_v50, %v686_v42  ;;  %v2108_v7 = vadd.f32 %v6483_v8, %v2107_v11 }
 0x18e   : > { %v1989_v49 = vsel %vm7275_vm10, %v1956_v58, %v5181_v40  ;;  %v1990_v18 = vsel %vm7275_vm10, %v1957_v16, %v5182_v22  ;;  %v5221_v4 = vunpack.i.l.bf16 %v6441_v48 }
 0x18f   : > { %5394 = vrot.lane.b32.xlu1 %v5393_v43, %s5582_s12  ;;  %v2014_v34 = vpack.c.bf16 %v1990_v18, %v1989_v49  ;;  %v6469_v23 = vpop.permute.xlu2 %5234  ;;  %v2187_v40 = vmax.f32 %v2108_v7, 0.0 }
 0x191   : > { %5404 = vrot.lane.b32.xlu0 %v5403_v41, %s5581_s11  ;;  %v5185_v44 = vpop.permute.xlu1 %5184  ;;  %4309 = vmatmul.msk.bf16.gmra.mxu0 %vm2042_vm11, %v2014_v34 }
 0x192   : > { %v5187_v59 = vunpack.i.h.bf16 %v5185_v44  ;;  %v5186_v63 = vunpack.i.l.bf16 %v5185_v44  ;;  %v4832_v44 = vunpack.i.h.bf16 %v5918_v51 }
 0x193   : > { %v5195_v1 = vpop.permute.xlu0 %5194 }
 0x194   : > { %v6467_v25 = vpop.f32.mrf.mxu0  ;;  %v1801_v19 = vsel %vm1776_vm4, %v1768_v55, %v5186_v63  ;;  %v1802_v13 = vsel %vm1776_vm4, %v1769_v60, %v5187_v59  ;;  %v5197_v2 = vunpack.i.h.bf16 %v5195_v1  ;;  %v5196_v21 = vunpack.i.l.bf16 %v5195_v1 }
 0x195   : > { %5414 = vrot.lane.b32.xlu2 %v5413_v62, %s5583_s13  ;;  %v1834_v33 = vsel %vm1809_vm5, %v1801_v19, %v5191_v6  ;;  %v1835_v38 = vsel %vm1809_vm5, %v1802_v13, %v5192_v20  ;;  %v2110_v62 = vadd.f32 %v6483_v8, %v6467_v25  ;;  %v4831_v63 = vunpack.i.l.bf16 %v5918_v51  ;;  %v5556_v51 = vld [vmem:[#allocation2 + $0xc0] sm:$0xff] }
 0x196   : > { %v1867_v3 = vsel %vm1842_vm6, %v1834_v33, %v5196_v21  ;;  %v1868_v56 = vsel %vm1842_vm6, %v1835_v38, %v5197_v2  ;;  %v4837_v1 = vunpack.i.h.bf16 %v5962_v45  ;;  %v5555_v2 = vld [vmem:[#allocation2 + $0xc8] sm:$0xff]  ;;  %v5557_v38 = vld [vmem:[#allocation2 + $0xe0] sm:$0xff] }
 0x197   : > { %5409 = vrot.lane.b32.xlu1 %v6423_v29, %s5583_s13  ;;  %v6520_v22 = vpop.permute.xlu2 %5249  ;;  %v6550_v25 = vsel %vm310_vm0, %v5555_v2, %v4832_v44  ;;  %v2188_v21 = vmax.f32 %v2110_v62, 0.0  ;;  %v1760_v33 = vsel %vm310_vm0, %v5556_v51, %v4831_v63 }
 0x198   : > { %v1763_v45 = vsel %vm310_vm0, %v5557_v38, %v4837_v1 }
 0x199   : > { %5419 = vrot.lane.b32.xlu0 %v5393_v43, %s5584_s14  ;;  %v5200_v5 = vpop.permute.xlu1 %5199 }
 0x19a   : > { %v5202_v29 = vunpack.i.h.bf16 %v5200_v5  ;;  %v5201_v53 = vunpack.i.l.bf16 %v5200_v5  ;;  %v5558_v5 = vld [vmem:[#allocation2 + $0xd8] sm:$0xff] }
 0x19b   : > { %v5210_v39 = vpop.permute.xlu0 %5209 }
 0x19c   : > { %v1900_v27 = vsel %vm1875_vm7, %v1867_v3, %v5201_v53  ;;  %v1901_v35 = vsel %vm1875_vm7, %v1868_v56, %v5202_v29  ;;  %v5212_v15 = vunpack.i.h.bf16 %v5210_v39  ;;  %v5211_v30 = vunpack.i.l.bf16 %v5210_v39  ;;  %v2112_v46 = vpop.f32.mrf.mxu0 }
 0x19d   : > { %v1933_v52 = vsel %vm1908_vm8, %v1900_v27, %v5206_v9  ;;  %v1934_v43 = vsel %vm1908_vm8, %v1901_v35, %v5207_v61  ;;  %v2113_v47 = vadd.f32 %v6483_v8, %v2112_v46  ;;  %v1762_v29 = vsel %vm310_vm0, %v5558_v5, %v4836_v32 }
 0x19e   : > { %v1966_v48 = vsel %vm1941_vm9, %v1933_v52, %v5211_v30  ;;  %v1967_v54 = vsel %vm1941_vm9, %v1934_v43, %v5212_v15  ;;  %v5236_v3 = vunpack.i.l.bf16 %v6469_v23  ;;  %v5251_v5 = vunpack.i.l.bf16 %v6520_v22 }
 0x19f   : > { %v2189_v11 = vmax.f32 %v2113_v47, 0.0  ;;  %5424 = vrot.lane.b32.xlu1 %v5423_v24, %s5584_s14  ;;  %v1999_v41 = vsel %vm7275_vm10, %v1966_v48, %v5221_v4  ;;  %v2000_v58 = vsel %vm7275_vm10, %v1967_v54, %v5222_v14  ;;  %v6552_v26 = vpop.permute.xlu2 %5264 }
 0x1a0   : > { %v2019_v16 = vpack.c.bf16 %v2000_v58, %v1999_v41 }
 0x1a1   : > { %v2219_v49 = vmax.f32 %v2187_v40, %v2189_v11  ;;  %v6529_v18 = vpop.permute.xlu1 %5214 }
 0x1a2   : > { %4314 = vmatmul.msk.bf16.gmra.mxu2 %vm2042_vm11, %v2019_v16  ;;  %v5217_v46 = vunpack.i.h.bf16 %v6529_v18  ;;  %v5216_v40 = vunpack.i.l.bf16 %v6529_v18 }
 0x1a3   : > { %v2251_v42 = vrot.slane %v2219_v49, 2  ;;  %v2252_v50 = vrot.slane %v2219_v49, 4  ;;  %v2253_v34 = vrot.slane %v2219_v49, 6  ;;  %v4318_v10 = vrot.slane %v2219_v49, 9  ;;  %v6536_v12 = vpop.permute.xlu0 %5224 }
 0x1a4   : > { %v2114_v59 = vpop.f32.mrf.mxu0  ;;  %v5227_v62 = vunpack.i.h.bf16 %v6536_v12  ;;  %v1795_v18 = vsel %vm1776_vm4, %v1762_v29, %v5216_v40 }
 0x1a5   : > { %v4319_v31 = vrot.slane %v2251_v42, 9  ;;  %v4320_v60 = vrot.slane %v2252_v50, 9  ;;  %v2539_v55 = vmax.f32 %v2219_v49, %v4318_v10  ;;  %v2115_v20 = vadd.f32 %v6483_v8, %v2114_v59 }
 0x1a6   : > { %v4321_v6 = vrot.slane %v2253_v34, 9  ;;  %v1794_v38 = vsel %vm1776_vm4, %v6550_v25, %v5227_v62 }
 0x1a7   : > { %v2540_v19 = vmax.f32 %v2251_v42, %v4319_v31  ;;  %v2541_v13 = vmax.f32 %v2252_v50, %v4320_v60  ;;  %v2190_v37 = vmax.f32 %v2115_v20, 0.0  ;;  %v2689_v53 = vperm.slane %v2539_v55, 0  ;;  %v5280_v1 = vpop.permute.xlu2 %5279 }
 0x1a8   : > { %v2542_v24 = vmax.f32 %v2253_v34, %v4321_v6  ;;  %v5226_v42 = vunpack.i.l.bf16 %v6536_v12  ;;  %v1796_v31 = vsel %vm1776_vm4, %v1763_v45, %v5217_v46 }
 0x1a9   : > { %v2690_v61 = vperm.slane %v2540_v19, 0  ;;  %v5230_v9 = vpop.permute.xlu1 %5229  ;;  %v2220_v14 = vmax.f32 %v2188_v21, %v2190_v37  ;;  %v2691_v7 = vperm.slane %v2541_v13, 0  ;;  %v5237_v21 = vunpack.i.h.bf16 %v6469_v23 }
 0x1aa   : > { %v2692_v48 = vperm.slane %v2542_v24, 0  ;;  %v5232_v49 = vunpack.i.h.bf16 %v5230_v9  ;;  %v5231_v34 = vunpack.i.l.bf16 %v5230_v9  ;;  %v1793_v12 = vsel %vm1776_vm4, %v1760_v33, %v5226_v42 }
 0x1ab   : > { %v5240_v56 = vpop.permute.xlu0 %5239  ;;  %v2754_v39 = vsel %vm7274_vm14, %v2690_v61, %v2689_v53  ;;  %v2254_v4 = vrot.slane %v2220_v14, 2  ;;  %v2255_v27 = vrot.slane %v2220_v14, 4  ;;  %v2256_v35 = vrot.slane %v2220_v14, 6 }
 0x1ac   : > { %v2117_v15 = vpop.f32.mrf.mxu0  ;;  %v4322_v30 = vrot.slane %v2220_v14, 9  ;;  %v2756_v54 = vsel %vm7277_vm15, %v2691_v7, %v2754_v39  ;;  %vm2765_vm14 = vcmask 1047559   ;;  %v5242_v32 = vunpack.i.h.bf16 %v5240_v56 }
 0x1ad   : > { %v4323_v52 = vrot.slane %v2254_v4, 9  ;;  %v4324_v43 = vrot.slane %v2255_v27, 9  ;;  %v4325_v47 = vrot.slane %v2256_v35, 9  ;;  %v2758_v44 = vsel %vm2757_vm1, %v2692_v48, %v2756_v54 }
 0x1ae   : > { %v2543_v11 = vmax.f32 %v2220_v14, %v4322_v30  ;;  %v1829_v19 = vsel %vm1809_vm5, %v1796_v31, %v5232_v49  ;;  %v5241_v13 = vunpack.i.l.bf16 %v5240_v56  ;;  %v1828_v51 = vsel %vm1809_vm5, %v1795_v18, %v5231_v34 }
 0x1af   : > { %v2544_v41 = vmax.f32 %v2254_v4, %v4323_v52  ;;  %v2545_v58 = vmax.f32 %v2255_v27, %v4324_v43  ;;  %v2546_v16 = vmax.f32 %v2256_v35, %v4325_v47  ;;  %v5252_v61 = vunpack.i.h.bf16 %v6520_v22  ;;  %v6591_v40 = vpop.permute.xlu2 %5294 }
 0x1b0   : > { %v2693_v50 = vperm.slane %v2543_v11, 0  ;;  %v1862_v9 = vsel %vm1842_vm6, %v1829_v19, %v5242_v32  ;;  %v1826_v23 = vsel %vm1809_vm5, %v1793_v12, %v5236_v3  ;;  %v1861_v53 = vsel %vm1842_vm6, %v1828_v51, %v5241_v13 }
 0x1b1   : > { %v5245_v10 = vpop.permute.xlu1 %5244  ;;  %v2694_v59 = vperm.slane %v2544_v41, 0  ;;  %v2695_v63 = vperm.slane %v2545_v58, 0  ;;  %v2696_v20 = vperm.slane %v2546_v16, 0  ;;  %v1827_v14 = vsel %vm1809_vm5, %v1794_v38, %v5237_v21 }
 0x1b2   : > { %v2760_v60 = vsel %vm2759_vm2, %v2693_v50, %v2758_v44  ;;  %v5247_v33 = vunpack.i.h.bf16 %v5245_v10  ;;  %v5246_v29 = vunpack.i.l.bf16 %v5245_v10  ;;  %v2118_v25 = vadd.f32 %v6483_v8, %v2117_v15 }
 0x1b3   : > { %v5255_v55 = vpop.permute.xlu0 %5254  ;;  %v2762_v6 = vsel %vm7276_vm3, %v2694_v59, %v2760_v60  ;;  %v5282_v7 = vunpack.i.h.bf16 %v5280_v1  ;;  %v5281_v56 = vunpack.i.l.bf16 %v5280_v1  ;;  %v1895_v39 = vsel %vm1875_vm7, %v1862_v9, %v5252_v61 }
 0x1b4   : > { %v2119_v2 = vpop.f32.mrf.mxu0  ;;  %v2764_v37 = vsel %vm2763_vm13, %v2695_v63, %v2762_v6  ;;  %v5256_v4 = vunpack.i.l.bf16 %v5255_v55  ;;  %v1894_v22 = vsel %vm1875_vm7, %v1861_v53, %v5251_v5  ;;  %v1859_v30 = vsel %vm1842_vm6, %v1826_v23, %v5246_v29 }
 0x1b5   : > { %v2766_v45 = vsel %vm2765_vm14, %v2696_v20, %v2764_v37  ;;  %v1860_v3 = vsel %vm1842_vm6, %v1827_v14, %v5247_v33  ;;  %v5257_v46 = vunpack.i.h.bf16 %v5255_v55  ;;  %v5267_v11 = vunpack.i.h.bf16 %v6552_v26 }
 0x1b6   : > { %2825 = vst.msk [vmem:[#allocation3 + $0x11] sm:$0xff] %vm2603_vm12, %v2766_v45  ;;  %v5266_v41 = vunpack.i.l.bf16 %v6552_v26  ;;  %v2191_v16 = vmax.f32 %v2118_v25, 0.0  ;;  %v1892_v49 = vsel %vm1875_vm7, %v1859_v30, %v5256_v4  ;;  %v4857_v63 = vunpack.i.h.bf16 %v5982_v36  ;;  %v5559_v4 = vld [vmem:[#allocation2 + $0x140] sm:$0xff] }
 0x1b7   : > { %v1893_v34 = vsel %vm1875_vm7, %v1860_v3, %v5257_v46  ;;  %v2120_v26 = vadd.f32 %v6483_v8, %v2119_v2  ;;  %v6612_v53 = vpop.permute.xlu2 %5309  ;;  %v4856_v14 = vunpack.i.l.bf16 %v5982_v36 }
 0x1b8   : > { %v1925_v31 = vsel %vm1908_vm8, %v1892_v49, %v5266_v41  ;;  %v1926_v60 = vsel %vm1908_vm8, %v1893_v34, %v5267_v11  ;;  %v5296_v11 = vunpack.i.l.bf16 %v6591_v40 }
 0x1b9   : > { %v5260_v24 = vpop.permute.xlu1 %5259 }
 0x1ba   : > { %v5262_v27 = vunpack.i.h.bf16 %v5260_v24  ;;  %v5261_v35 = vunpack.i.l.bf16 %v5260_v24 }
 0x1bb   : > { %v5270_v52 = vpop.permute.xlu0 %5269 }
 0x1bc   : > { %v1927_v43 = vsel %vm1908_vm8, %v1894_v22, %v5261_v35  ;;  %v1928_v15 = vsel %vm1908_vm8, %v1895_v39, %v5262_v27  ;;  %v5272_v47 = vunpack.i.h.bf16 %v5270_v52  ;;  %v5271_v48 = vunpack.i.l.bf16 %v5270_v52  ;;  %v2122_v54 = vpop.f32.mrf.mxu0 }
 0x1bd   : > { %v2123_v58 = vadd.f32 %v6483_v8, %v2122_v54  ;;  %v1771_v27 = vsel %vm310_vm0, %v5559_v4, %v4857_v63  ;;  %v5297_v54 = vunpack.i.h.bf16 %v6591_v40 }
 0x1be   : > { %v1960_v42 = vsel %vm1941_vm9, %v1927_v43, %v5271_v48  ;;  %v1961_v50 = vsel %vm1941_vm9, %v1928_v15, %v5272_v47  ;;  %v5560_v47 = vld [vmem:[#allocation2 + $0x138] sm:$0xff] }
 0x1bf   : > { %v2193_v10 = vmax.f32 %v2123_v58, 0.0  ;;  %v1993_v44 = vsel %vm7275_vm10, %v1960_v42, %v5281_v56  ;;  %v1994_v62 = vsel %vm7275_vm10, %v1961_v50, %v5282_v7  ;;  %v2192_v7 = vmax.f32 %v2120_v26, 0.0 }
 0x1c0   : > { %v2016_v59 = vpack.c.bf16 %v1994_v62, %v1993_v44  ;;  %v1770_v36 = vsel %vm310_vm0, %v5560_v47, %v4856_v14  ;;  %v5312_v42 = vunpack.i.h.bf16 %v6612_v53 }
 0x1c1   : > { %v2221_v1 = vmax.f32 %v2191_v16, %v2193_v10  ;;  %v5275_v18 = vpop.permute.xlu1 %5274 }
 0x1c2   : > { %v5277_v32 = vunpack.i.h.bf16 %v5275_v18  ;;  %v5276_v55 = vunpack.i.l.bf16 %v5275_v18  ;;  %4311 = vmatmul.msk.bf16.vlgmr.msra.gmra.mxu1 %vm2042_vm11, %v2016_v59 }
 0x1c3   : > { %v2257_v20 = vrot.slane %v2221_v1, 2  ;;  %v2258_v6 = vrot.slane %v2221_v1, 4  ;;  %v2259_v19 = vrot.slane %v2221_v1, 6  ;;  %v4326_v13 = vrot.slane %v2221_v1, 9  ;;  %v5285_v12 = vpop.permute.xlu0 %5284 }
 0x1c4   : > { %v1958_v21 = vsel %vm1941_vm9, %v1925_v31, %v5276_v55  ;;  %v1959_v37 = vsel %vm1941_vm9, %v1926_v60, %v5277_v32  ;;  %v5287_v2 = vunpack.i.h.bf16 %v5285_v12  ;;  %v5286_v51 = vunpack.i.l.bf16 %v5285_v12  ;;  %v2124_v38 = vpop.f32.mrf.mxu0 }
 0x1c5   : > { %v4327_v45 = vrot.slane %v2257_v20, 9  ;;  %v4328_v61 = vrot.slane %v2258_v6, 9  ;;  %v4329_v9 = vrot.slane %v2259_v19, 9  ;;  %v2547_v5 = vmax.f32 %v2221_v1, %v4326_v13 }
 0x1c6   : > { %v2125_v33 = vadd.f32 %v6483_v8, %v2124_v38  ;;  %v1991_v29 = vsel %vm7275_vm10, %v1958_v21, %v5286_v51  ;;  %v1992_v23 = vsel %vm7275_vm10, %v1959_v37, %v5287_v2  ;;  %vm7278_vm10 = vcmask 1041409  }
 0x1c7   : > { %v2548_v25 = vmax.f32 %v2257_v20, %v4327_v45  ;;  %v2549_v24 = vmax.f32 %v2258_v6, %v4328_v61  ;;  %v2015_v39 = vpack.c.bf16 %v1992_v23, %v1991_v29  ;;  %v2550_v35 = vmax.f32 %v2259_v19, %v4329_v9  ;;  %v5325_v19 = vpop.permute.xlu2 %5324 }
 0x1c8   : > { %v2194_v56 = vmax.f32 %v2125_v33, 0.0  ;;  %v2697_v22 = vperm.slane %v2547_v5, 0  ;;  %v5311_v12 = vunpack.i.l.bf16 %v6612_v53  ;;  %v5327_v37 = vunpack.i.h.bf16 %v5325_v19 }
 0x1c9   : > { %v2698_v30 = vperm.slane %v2548_v25, 0  ;;  %v5290_v3 = vpop.permute.xlu1 %5289  ;;  %v2699_v46 = vperm.slane %v2549_v24, 0  ;;  %4310 = vmatmul.msk.bf16.gmra.mxu0 %vm2042_vm11, %v2015_v39  ;;  %v2700_v34 = vperm.slane %v2550_v35, 0  ;;  %v5326_v2 = vunpack.i.l.bf16 %v5325_v19 }
 0x1ca   : > { %v2222_v52 = vmax.f32 %v2192_v7, %v2194_v56  ;;  %v5292_v43 = vunpack.i.h.bf16 %v5290_v3  ;;  %v5291_v15 = vunpack.i.l.bf16 %v5290_v3 }
 0x1cb   : > { %v2767_v48 = vsel %vm7278_vm10, %v2698_v30, %v2697_v22  ;;  %v5300_v41 = vpop.permute.xlu0 %5299  ;;  %vm7279_vm10 = vcmask 195584  }
 0x1cc   : > { %v2260_v58 = vrot.slane %v2222_v52, 2  ;;  %v2261_v16 = vrot.slane %v2222_v52, 4  ;;  %v2262_v49 = vrot.slane %v2222_v52, 6  ;;  %v2127_v50 = vpop.f32.mrf.mxu0  ;;  %v4330_v10 = vrot.slane %v2222_v52, 9 }
 0x1cd   : > { %v1804_v44 = vsel %vm1776_vm4, %v1771_v27, %v5292_v43  ;;  %v1803_v62 = vsel %vm1776_vm4, %v1770_v36, %v5291_v15  ;;  %v2768_v59 = vsel %vm7277_vm15, %v2699_v46, %v2767_v48  ;;  %v5302_v31 = vunpack.i.h.bf16 %v5300_v41 }
 0x1ce   : > { %v4331_v63 = vrot.slane %v2260_v58, 9  ;;  %v4332_v26 = vrot.slane %v2261_v16, 9  ;;  %v4333_v1 = vrot.slane %v2262_v49, 9  ;;  %v2551_v18 = vmax.f32 %v2222_v52, %v4330_v10 }
 0x1cf   : > { %v1837_v40 = vsel %vm1809_vm5, %v1804_v44, %v5297_v54  ;;  %v5301_v60 = vunpack.i.l.bf16 %v5300_v41  ;;  %v1836_v6 = vsel %vm1809_vm5, %v1803_v62, %v5296_v11  ;;  %v2769_v51 = vsel %vm2757_vm1, %v2700_v34, %v2768_v59  ;;  %v6644_v47 = vpop.permute.xlu2 %5339  ;;  %v5561_v62 = vld [vmem:[#allocation2 + $0xf8] sm:$0xff] }
 0x1d0   : > { %v2552_v32 = vmax.f32 %v2260_v58, %v4331_v63  ;;  %v2553_v55 = vmax.f32 %v2261_v16, %v4332_v26  ;;  %v2554_v20 = vmax.f32 %v2262_v49, %v4333_v1  ;;  %v2701_v13 = vperm.slane %v2551_v18, 0  ;;  %v5562_v63 = vld [vmem:[#allocation2 + $0xf0] sm:$0xff] }
 0x1d1   : > { %v5305_v21 = vpop.permute.xlu1 %5304  ;;  %v1870_v61 = vsel %vm1842_vm6, %v1837_v40, %v5302_v31  ;;  %v1869_v5 = vsel %vm1842_vm6, %v1836_v6, %v5301_v60  ;;  %v2128_v36 = vadd.f32 %v6483_v8, %v2127_v50  ;;  %v4842_v54 = vunpack.i.h.bf16 %v5971_v28  ;;  %v2841_v40 = vld [vmem:[#allocation3 + $0x1] sm:$0xff]  ;;  %v6661_v31 = vld [vmem:[#allocation3 + $0x11] sm:$0xff] }
 0x1d2   : > { %v2702_v38 = vperm.slane %v2552_v32, 0  ;;  %v2703_v45 = vperm.slane %v2553_v55, 0  ;;  %v2770_v9 = vsel %vm2759_vm2, %v2701_v13, %v2769_v51  ;;  %v5307_v33 = vunpack.i.h.bf16 %v5305_v21 }
 0x1d3   : > { %v5306_v29 = vunpack.i.l.bf16 %v5305_v21  ;;  %v5315_v23 = vpop.permute.xlu0 %5314  ;;  %v2704_v14 = vperm.slane %v2554_v20, 0  ;;  %v4841_v41 = vunpack.i.l.bf16 %v5971_v28  ;;  %v2195_v10 = vmax.f32 %v2128_v36, 0.0 }
 0x1d4   : > { %v2771_v25 = vsel %vm7276_vm3, %v2702_v38, %v2770_v9  ;;  %v5317_v53 = vunpack.i.h.bf16 %v5315_v23  ;;  %v5316_v24 = vunpack.i.l.bf16 %v5315_v23  ;;  %v2129_v7 = vpop.f32.mrf.mxu0  ;;  %v1903_v4 = vsel %vm1875_vm7, %v1870_v61, %v5307_v33  ;;  %vm7280_vm3 = vmmov %vm7279_vm10 }
 0x1d5   : > { %v2772_v56 = vsel %vm2763_vm13, %v2703_v45, %v2771_v25  ;;  %v1902_v39 = vsel %vm1875_vm7, %v1869_v5, %v5306_v29  ;;  %v1936_v22 = vsel %vm1908_vm8, %v1903_v4, %v5312_v42  ;;  %v6651_v42 = vld [vmem:[#allocation3 + $0x12] sm:$0xff]  ;;  %v1765_v59 = vsel %vm310_vm0, %v5561_v62, %v4842_v54 }
 0x1d6   : > { %v2773_v27 = vsel %vm2765_vm14, %v2704_v14, %v2772_v56  ;;  %v1935_v35 = vsel %vm1908_vm8, %v1902_v39, %v5311_v12  ;;  %v1969_v3 = vsel %vm1941_vm9, %v1936_v22, %v5317_v53  ;;  %v1764_v26 = vsel %vm310_vm0, %v5562_v63, %v4841_v41 }
 0x1d7   : > { %2826 = vst.msk [vmem:[#allocation3 + $0x21] sm:$0xff] %vm2603_vm12, %v2773_v27  ;;  %v1968_v30 = vsel %vm1941_vm9, %v1935_v35, %v5316_v24  ;;  %v2002_v52 = vsel %vm7280_vm3, %v1969_v3, %v5327_v37  ;;  %v2130_v37 = vadd.f32 %v6483_v8, %v2129_v7  ;;  %v5355_v51 = vpop.permute.xlu2 %5354  ;;  %v5433_v45 = vpack.i.bf16 %v6661_v31, %v2841_v40 }
 0x1d8   : > { %v2001_v46 = vsel %vm7279_vm10, %v1968_v30, %v5326_v2  ;;  %v5342_v61 = vunpack.i.h.bf16 %v6644_v47  ;;  %v5341_v9 = vunpack.i.l.bf16 %v6644_v47  ;;  %vm7281_vm3 = vcmask 1041409  }
 0x1d9   : > { %v5320_v43 = vpop.permute.xlu1 %5319  ;;  %v2020_v15 = vpack.c.bf16 %v2002_v52, %v2001_v46  ;;  %v2196_v39 = vmax.f32 %v2130_v37, 0.0 }
 0x1da   : > { %v5322_v58 = vunpack.i.h.bf16 %v5320_v43  ;;  %v5321_v49 = vunpack.i.l.bf16 %v5320_v43 }
 0x1db   : > { %v5330_v48 = vpop.permute.xlu0 %5329  ;;  %4315 = vmatmul.msk.bf16.gmra.mxu2 %vm2042_vm11, %v2020_v15 }
 0x1dc   : > { %v2132_v11 = vpop.f32.mrf.mxu0  ;;  %v1798_v28 = vsel %vm1776_vm4, %v1765_v59, %v5322_v58  ;;  %v1797_v60 = vsel %vm1776_vm4, %v1764_v26, %v5321_v49  ;;  %v5332_v32 = vunpack.i.h.bf16 %v5330_v48  ;;  %v5331_v55 = vunpack.i.l.bf16 %v5330_v48 }
 0x1dd   : > { %v2133_v16 = vadd.f32 %v6483_v8, %v2132_v11 }
 0x1de   : > { %v6653_v34 = vld [vmem:[#allocation3 + $0x22] sm:$0xff]  ;;  %v1831_v29 = vsel %vm1809_vm5, %v1798_v28, %v5332_v32  ;;  %v1830_v23 = vsel %vm1809_vm5, %v1797_v60, %v5331_v55 }
 0x1df   : > { %v2197_v44 = vmax.f32 %v2133_v16, 0.0  ;;  %v5428_v50 = vpack.i.bf16 %v6653_v34, %v6651_v42 }
 0x1e1   : > { %v2223_v1 = vmax.f32 %v2195_v10, %v2197_v44  ;;  %5429 = vrot.lane.b32.xlu2 %v5428_v50, %s5586_s23  ;;  %v5335_v18 = vpop.permute.xlu1 %5334  ;;  %v5357_v44 = vunpack.i.h.bf16 %v5355_v51  ;;  %v5356_v50 = vunpack.i.l.bf16 %v5355_v51 }
 0x1e2   : > { %v5336_v20 = vunpack.i.l.bf16 %v5335_v18  ;;  %v5337_v2 = vunpack.i.h.bf16 %v5335_v18 }
 0x1e3   : > { %v2263_v6 = vrot.slane %v2223_v1, 2  ;;  %v2264_v19 = vrot.slane %v2223_v1, 4  ;;  %v2265_v13 = vrot.slane %v2223_v1, 6  ;;  %v4334_v12 = vrot.slane %v2223_v1, 9  ;;  %v5345_v21 = vpop.permute.xlu0 %5344 }
 0x1e4   : > { %v2134_v38 = vpop.f32.mrf.mxu0  ;;  %v1863_v56 = vsel %vm1842_vm6, %v1830_v23, %v5336_v20  ;;  %v1864_v4 = vsel %vm1842_vm6, %v1831_v29, %v5337_v2  ;;  %v5347_v22 = vunpack.i.h.bf16 %v5345_v21  ;;  %v5346_v30 = vunpack.i.l.bf16 %v5345_v21 }
 0x1e5   : > { %v4335_v5 = vrot.slane %v2263_v6, 9  ;;  %v4336_v33 = vrot.slane %v2264_v19, 9  ;;  %v2555_v14 = vmax.f32 %v2223_v1, %v4334_v12  ;;  %v2135_v25 = vadd.f32 %v6483_v8, %v2134_v38  ;;  %v6681_v1 = vpop.permute.xlu2 %5369 }
 0x1e6   : > { %v4337_v53 = vrot.slane %v2265_v13, 9  ;;  %v1896_v52 = vsel %vm1875_vm7, %v1863_v56, %v5341_v9  ;;  %v1897_v48 = vsel %vm1875_vm7, %v1864_v4, %v5342_v61 }
 0x1e7   : > { %v2556_v24 = vmax.f32 %v2263_v6, %v4335_v5  ;;  %v2557_v7 = vmax.f32 %v2264_v19, %v4336_v33  ;;  %v2198_v27 = vmax.f32 %v2135_v25, 0.0  ;;  %v2705_v46 = vperm.slane %v2555_v14, 0 }
 0x1e8   : > { %v2558_v47 = vmax.f32 %v2265_v13, %v4337_v53  ;;  %v1929_v10 = vsel %vm1908_vm8, %v1896_v52, %v5346_v30  ;;  %v1930_v60 = vsel %vm1908_vm8, %v1897_v48, %v5347_v22  ;;  %v4862_v25 = vunpack.i.h.bf16 %v5943_v17  ;;  %v6708_v22 = vld [vmem:[#allocation3 + $0x21] sm:$0xff] }
 0x1e9   : > { %v2706_v35 = vperm.slane %v2556_v24, 0  ;;  %5434 = vrot.lane.b32.xlu2 %v5433_v45, %s5586_s23  ;;  %v5350_v3 = vpop.permute.xlu1 %5349  ;;  %v2224_v43 = vmax.f32 %v2196_v39, %v2198_v27  ;;  %v2707_v36 = vperm.slane %v2557_v7, 0  ;;  %v4861_v24 = vunpack.i.l.bf16 %v5943_v17  ;;  %v5563_v27 = vld [vmem:[#allocation2 + $0x158] sm:$0xff]  ;;  %v6710_v30 = vld [vmem:[#allocation3 + $0x20] sm:$0xff] }
 0x1ea   : > { %v5351_v15 = vunpack.i.l.bf16 %v5350_v3  ;;  %v5352_v54 = vunpack.i.h.bf16 %v5350_v3  ;;  %v2708_v18 = vperm.slane %v2558_v47, 0  ;;  %v5564_v3 = vld [vmem:[#allocation2 + $0x150] sm:$0xff]  ;;  %v4867_v52 = vunpack.i.h.bf16 %v5984_v57 }
 0x1eb   : > { %v6676_v11 = vpop.permute.xlu0 %5359  ;;  %v2774_v41 = vsel %vm7281_vm3, %v2706_v35, %v2705_v46  ;;  %v2266_v58 = vrot.slane %v2224_v43, 2  ;;  %v2267_v16 = vrot.slane %v2224_v43, 4  ;;  %v2268_v49 = vrot.slane %v2224_v43, 6  ;;  %vm7282_vm3 = vmmov %vm7279_vm10 }
 0x1ec   : > { %v4338_v62 = vrot.slane %v2224_v43, 9  ;;  %v1962_v28 = vsel %vm1941_vm9, %v1929_v10, %v5351_v15  ;;  %v2775_v40 = vsel %vm7277_vm15, %v2707_v36, %v2774_v41  ;;  %v1963_v19 = vsel %vm1941_vm9, %v1930_v60, %v5352_v54  ;;  %v6705_v4 = vpop.f32.mrf.mxu0 }
 0x1ed   : > { %v4339_v59 = vrot.slane %v2266_v58, 9  ;;  %v4340_v63 = vrot.slane %v2267_v16, 9  ;;  %v4341_v26 = vrot.slane %v2268_v49, 9  ;;  %v1995_v12 = vsel %vm7279_vm10, %v1962_v28, %v5356_v50  ;;  %v6699_v14 = vpop.permute.xlu2 %5384 }
 0x1ee   : > { %v2559_v32 = vmax.f32 %v2224_v43, %v4338_v62  ;;  %v2776_v37 = vsel %vm2757_vm1, %v2708_v18, %v2775_v40  ;;  %v1996_v45 = vsel %vm7282_vm3, %v1963_v19, %v5357_v44  ;;  %vm7283_vm15 = vcmask 1045509   ;;  %v5565_v62 = vld [vmem:[#allocation2 + $0x170] sm:$0xff] }
 0x1ef   : > { %v2560_v55 = vmax.f32 %v2266_v58, %v4339_v59  ;;  %v2561_v20 = vmax.f32 %v2267_v16, %v4340_v63  ;;  %v2562_v6 = vmax.f32 %v2268_v49, %v4341_v26  ;;  %v2017_v33 = vpack.c.bf16 %v1996_v45, %v1995_v12  ;;  %v5566_v63 = vld [vmem:[#allocation2 + $0x168] sm:$0xff]  ;;  %v4645_v12 = vld [vmem:[%s7269_s3 + $0x88] sm:$0xff] }
 0x1f0   : > { %v2709_v13 = vperm.slane %v2559_v32, 0  ;;  %v5362_v7 = vunpack.i.h.bf16 %v6676_v11  ;;  %v5361_v39 = vunpack.i.l.bf16 %v6676_v11  ;;  %v1773_v35 = vsel %vm310_vm0, %v5563_v27, %v4862_v25  ;;  %3384 = vmatpush.bf16.msrb.mxu3 %v4645_v12 }
 0x1f1   : > { %v6687_v21 = vpop.permute.xlu1 %5364  ;;  %v2710_v2 = vperm.slane %v2560_v55, 0  ;;  %v2711_v51 = vperm.slane %v2561_v20, 0  ;;  %v2712_v9 = vperm.slane %v2562_v6, 0  ;;  %4312 = vmatmul.msk.bf16.gmra.mxu1 %vm2042_vm11, %v2017_v33  ;;  %v1772_v46 = vsel %vm310_vm0, %v5564_v3, %v4861_v24  ;;  %v2849_v55 = vld [vmem:[#allocation3 + $0x2] sm:$0xff] }
 0x1f2   : > { %v2777_v38 = vsel %vm2759_vm2, %v2709_v13, %v2776_v37  ;;  %v4866_v17 = vunpack.i.l.bf16 %v5984_v57  ;;  %v5372_v43 = vunpack.i.h.bf16 %v6681_v1  ;;  %v1806_v48 = vsel %vm1776_vm4, %v1773_v35, %v5362_v7 }
 0x1f3   : > { %v6692_v61 = vpop.permute.xlu0 %5374  ;;  %v2778_v5 = vsel %vm7283_vm15, %v2710_v2, %v2777_v38  ;;  %v5371_v54 = vunpack.i.l.bf16 %v6681_v1  ;;  %v1805_v57 = vsel %vm1776_vm4, %v1772_v46, %v5361_v39  ;;  %v5367_v58 = vunpack.i.h.bf16 %v6687_v21  ;;  %v6751_v2 = vld [vmem:[#allocation3 + $0x10] sm:$0xff] }
 0x1f4   : > { %v2779_v29 = vsel %vm2763_vm13, %v2711_v51, %v2778_v5  ;;  %v5366_v16 = vunpack.i.l.bf16 %v6687_v21  ;;  %v1775_v59 = vsel %vm310_vm0, %v5565_v62, %v4867_v52  ;;  %v1774_v26 = vsel %vm310_vm0, %v5566_v63, %v4866_v17  ;;  %v2139_v45 = vpop.f32.mrf.mxu0  ;;  %vm7284_vm0 = vmmov %vm7282_vm3 }
 0x1f5   : > { %v2780_v23 = vsel %vm2765_vm14, %v2712_v9, %v2779_v29  ;;  %v5400_v28 = vpop.permute.xlu2 %5399  ;;  %v1838_v1 = vsel %vm1809_vm5, %v1805_v57, %v5371_v54  ;;  %v1839_v18 = vsel %vm1809_vm5, %v1806_v48, %v5372_v43  ;;  %v5377_v40 = vunpack.i.h.bf16 %v6692_v61 }
 0x1f6   : > { %2827 = vst.msk [vmem:[#allocation3 + $0x31] sm:$0xff] %vm2603_vm12, %v2780_v23  ;;  %v5376_v60 = vunpack.i.l.bf16 %v6692_v61  ;;  %v1807_v20 = vsel %vm1776_vm4, %v1774_v26, %v5366_v16  ;;  %v1808_v6 = vsel %vm1776_vm4, %v1775_v59, %v5367_v58  ;;  %v5387_v51 = vunpack.i.h.bf16 %v6699_v14  ;;  %vm7285_vm4 = vmmov %vm7284_vm0 }
 0x1f7   : > { %v5386_v38 = vunpack.i.l.bf16 %v6699_v14  ;;  %v5453_v61 = vpack.i.bf16 %v6710_v30, %v6751_v2  ;;  %v5443_v9 = vpack.i.bf16 %v6651_v42, %v2849_v55  ;;  %v1841_v33 = vsel %vm1809_vm5, %v1808_v6, %v5377_v40  ;;  %v4644_v14 = vld [vmem:[%s7269_s3 + $0x80] sm:$0xff] }
 0x1f8   : > { %v1840_v5 = vsel %vm1809_vm5, %v1807_v20, %v5376_v60  ;;  %v5402_v29 = vunpack.i.h.bf16 %v5400_v28  ;;  %v5401_v23 = vunpack.i.l.bf16 %v5400_v28  ;;  %v1874_v39 = vsel %vm1842_vm6, %v1841_v33, %v5387_v51  ;;  %3385 = vmatpush.bf16.msrb.mxu3 %v4644_v14  ;;  %vm7286_vm5 = vmmov %vm7284_vm0 }
 0x1f9   : > { %v5380_v53 = vpop.permute.xlu1 %5379  ;;  %v2138_v16 = vadd.f32 %v6483_v8, %v6705_v4 }
 0x1fa   : > { %v5382_v10 = vunpack.i.h.bf16 %v5380_v53  ;;  %v5381_v44 = vunpack.i.l.bf16 %v5380_v53 }
 0x1fb   : > { %v5390_v56 = vpop.permute.xlu0 %5389  ;;  %v2199_v60 = vmax.f32 %v2138_v16, 0.0 }
 0x1fc   : > { %v5392_v19 = vunpack.i.h.bf16 %v5390_v56  ;;  %v5391_v13 = vunpack.i.l.bf16 %v5390_v56  ;;  %v1871_v21 = vsel %vm1842_vm6, %v1838_v1, %v5381_v44  ;;  %v1872_v37 = vsel %vm1842_vm6, %v1839_v18, %v5382_v10 }
 0x1fd   : > { %v6716_v15 = vld [vmem:[#allocation3 + $0x31] sm:$0xff]  ;;  %v1873_v56 = vsel %vm1842_vm6, %v1840_v5, %v5386_v38  ;;  %v5415_v48 = vpop.permute.xlu2 %5414  ;;  %vm7287_vm6 = vmmov %vm7284_vm0 }
 0x1fe   : > { %v6718_v47 = vld [vmem:[#allocation3 + $0x30] sm:$0xff]  ;;  %v6726_v11 = vpack.i.bf16 %v6716_v15, %v6708_v22  ;;  %v1904_v25 = vsel %vm1875_vm7, %v1871_v21, %v5391_v13  ;;  %v1905_v53 = vsel %vm1875_vm7, %v1872_v37, %v5392_v19  ;;  %v5417_v63 = vunpack.i.h.bf16 %v5415_v48 }
 0x1ff   : > { %v6720_v36 = vld [vmem:[#allocation3 + $0x32] sm:$0xff]  ;;  %v5438_v41 = vpack.i.bf16 %v6718_v47, %v6710_v30  ;;  %v1937_v3 = vsel %vm1908_vm8, %v1904_v25, %v5401_v23  ;;  %v1938_v46 = vsel %vm1908_vm8, %v1905_v53, %v5402_v29  ;;  %v5416_v26 = vunpack.i.l.bf16 %v5415_v48 }
 0x200   : > { %v5473_v49 = vpack.i.bf16 %v6720_v36, %v6653_v34  ;;  %5449 = vrot.lane.b32.xlu1 %v6726_v11, %s5587_s26 }
 0x201   : > { %5439 = vrot.lane.b32.xlu0 %v5438_v41, %s5588_s27  ;;  %v5395_v50 = vpop.permute.xlu1 %5394 }
 0x202   : > { %v5397_v24 = vunpack.i.h.bf16 %v5395_v50  ;;  %v5396_v7 = vunpack.i.l.bf16 %v5395_v50 }
 0x203   : > { %v5405_v32 = vpop.permute.xlu0 %5404 }
 0x204   : > { %v5407_v52 = vunpack.i.h.bf16 %v5405_v32  ;;  %v5406_v17 = vunpack.i.l.bf16 %v5405_v32  ;;  %v1906_v10 = vsel %vm1875_vm7, %v1873_v56, %v5396_v7  ;;  %v1907_v44 = vsel %vm1875_vm7, %v1874_v39, %v5397_v24 }
 0x205   : > { %vm7288_vm7 = vcmask 1041409  }
 0x206   : > { %v1939_v18 = vsel %vm1908_vm8, %v1906_v10, %v5406_v17  ;;  %v1940_v40 = vsel %vm1908_vm8, %v1907_v44, %v5407_v52  ;;  %vm7289_vm8 = vcmask 1042434   ;;  %vm7294_vm3 = vmmov %vm7288_vm7 }
 0x207   : > { %v1972_v6 = vsel %vm1941_vm9, %v1939_v18, %v5416_v26  ;;  %v1973_v19 = vsel %vm1941_vm9, %v1940_v40, %v5417_v63  ;;  %v3150_v40 = vpack.c.bf16 %v6720_v36, %v6653_v34 }
 0x208   : > { %5454 = vrot.lane.b32.xlu1 %v5453_v61, %s5587_s26 }
 0x209   : > { %5444 = vrot.lane.b32.xlu0 %v5443_v9, %s5588_s27  ;;  %v5410_v42 = vpop.permute.xlu1 %5409  ;;  %v2140_v9 = vadd.f32 %v6483_v8, %v2139_v45 }
 0x20a   : > { %v5412_v27 = vunpack.i.h.bf16 %v5410_v42  ;;  %v5411_v35 = vunpack.i.l.bf16 %v5410_v42 }
 0x20b   : > { %v5420_v43 = vpop.permute.xlu0 %5419  ;;  %v2200_v42 = vmax.f32 %v2140_v9, 0.0 }
 0x20c   : > { %v1970_v54 = vsel %vm1941_vm9, %v1937_v3, %v5411_v35  ;;  %v1971_v41 = vsel %vm1941_vm9, %v1938_v46, %v5412_v27  ;;  %v5422_v57 = vunpack.i.h.bf16 %v5420_v43  ;;  %v5421_v58 = vunpack.i.l.bf16 %v5420_v43  ;;  %vm7290_vm9 = vmmov %vm7283_vm15 }
 0x20d   : > { %vm7292_vm15 = vmmov %vm7289_vm8 }
 0x20e   : > { %v2142_v50 = vpop.f32.mrf.mxu0  ;;  %v2003_v62 = vsel %vm7284_vm0, %v1970_v54, %v5421_v58  ;;  %v2004_v59 = vsel %vm7285_vm4, %v1971_v41, %v5422_v57  ;;  %vm7293_vm10 = vmmov %vm7290_vm9  ;;  %vm3106_vm4 = vcmask 523264  }
 0x20f   : > { %v2143_v28 = vadd.f32 %v6483_v8, %v2142_v50  ;;  %v2021_v1 = vpack.c.bf16 %v2004_v59, %v2003_v62  ;;  %vm7295_vm0 = vmmov %vm7289_vm8 }
 0x211   : > { %v2201_v4 = vmax.f32 %v2143_v28, 0.0  ;;  %4316 = vmatmul.msk.bf16.gmra.mxu2 %vm2042_vm11, %v2021_v1  ;;  %v5425_v32 = vpop.permute.xlu1 %5424 }
 0x212   : > { %v5427_v55 = vunpack.i.h.bf16 %v5425_v32  ;;  %v5426_v20 = vunpack.i.l.bf16 %v5425_v32 }
 0x213   : > { %v2225_v13 = vmax.f32 %v2199_v60, %v2201_v4 }
 0x214   : > { %v2005_v12 = vsel %vm7286_vm5, %v1972_v6, %v5426_v20  ;;  %v2006_v21 = vsel %vm7287_vm6, %v1973_v19, %v5427_v55  ;;  %v6806_v20 = vpop.f32.mrf.mxu2  ;;  %v4643_v6 = vld [vmem:[%s7269_s3 + $0x78] sm:$0xff]  ;;  %vm3115_vm5 = vcmask 785408   ;;  %vm7296_vm6 = vmmov %vm7290_vm9 }
 0x215   : > { %v2269_v37 = vrot.slane %v2225_v13, 2  ;;  %v2270_v51 = vrot.slane %v2225_v13, 4  ;;  %v2271_v38 = vrot.slane %v2225_v13, 6  ;;  %v4342_v61 = vrot.slane %v2225_v13, 9  ;;  %3349 = vmatpush.bf16.msrb.mxu2 %v4643_v6 }
 0x216   : > { %v2144_v5 = vpop.f32.mrf.mxu0  ;;  %v2022_v33 = vpack.c.bf16 %v2006_v21, %v2005_v12  ;;  %v6821_v21 = vld [vmem:[%s7268_s2] ss:$0 sm:$0xff] }
 0x217   : > { %v4343_v29 = vrot.slane %v2269_v37, 9  ;;  %v4344_v23 = vrot.slane %v2270_v51, 9  ;;  %v2563_v25 = vmax.f32 %v2225_v13, %v4342_v61  ;;  %v2145_v53 = vadd.f32 %v6483_v8, %v2144_v5  ;;  %v4642_v13 = vld [vmem:[%s7269_s3 + $0x70] sm:$0xff] }
 0x218   : > { %4317 = vmatmul.msk.bf16.vlgmr.msra.gmra.mxu3 %vm2042_vm11, %v2022_v33  ;;  %v4345_v14 = vrot.slane %v2271_v38, 9  ;;  %v4634_v33 = vld [vmem:[%s7269_s3 + $0x30] sm:$0xff]  ;;  %vm7291_vm11 = vmmov %vm7288_vm7 }
 0x219   : > { %v2564_v24 = vmax.f32 %v2269_v37, %v4343_v29  ;;  %v2565_v7 = vmax.f32 %v2270_v51, %v4344_v23  ;;  %v2202_v56 = vmax.f32 %v2145_v53, 0.0  ;;  %v2713_v27 = vperm.slane %v2563_v25, 0  ;;  %3350 = vmatpush.bf16.msrb.mxu2 %v4642_v13  ;;  %v4635_v37 = vld [vmem:[%s7269_s3 + $0x38] sm:$0xff]  ;;  %v4641_v51 = vld [vmem:[%s7269_s3 + $0x68] sm:$0xff]  ;;  %v4640_v29 = vld [vmem:[%s7269_s3 + $0x60] sm:$0xff] }
 0x21a   : > { %v2566_v3 = vmax.f32 %v2271_v38, %v4345_v14  ;;  %3320 = vmatpush.bf16.msrb.mxu1 %v4635_v37 }
 0x21b   : > { %v2714_v39 = vperm.slane %v2564_v24, 0  ;;  %v2226_v35 = vmax.f32 %v2200_v42, %v2202_v56  ;;  %v2715_v46 = vperm.slane %v2565_v7, 0  ;;  %v4633_v56 = vld [vmem:[%s7269_s3 + $0x28] sm:$0xff] }
 0x21c   : > { %v2716_v16 = vperm.slane %v2566_v3, 0  ;;  %v6816_v12 = vpop.f32.mrf.mxu2 }
 0x21d   : > { %v2781_v45 = vsel %vm7288_vm7, %v2714_v39, %v2713_v27  ;;  %v2272_v52 = vrot.slane %v2226_v35, 2  ;;  %v2273_v17 = vrot.slane %v2226_v35, 4  ;;  %v2274_v43 = vrot.slane %v2226_v35, 6  ;;  %3351 = vmatpush.bf16.msrb.mxu2 %v4641_v51  ;;  %v4639_v39 = vld [vmem:[%s7269_s3 + $0x58] sm:$0xff]  ;;  %vm7297_vm7 = vmmov %vm7294_vm3 }
 0x21e   : > { %v4346_v48 = vrot.slane %v2226_v35, 9  ;;  %v2782_v57 = vsel %vm7289_vm8, %v2715_v46, %v2781_v45  ;;  %3321 = vmatpush.bf16.msrb.mxu1 %v4634_v33  ;;  %vm7298_vm8 = vmmov %vm7295_vm0 }
 0x21f   : > { %v4347_v54 = vrot.slane %v2272_v52, 9  ;;  %v4348_v8 = vrot.slane %v2273_v17, 9  ;;  %v4349_v41 = vrot.slane %v2274_v43, 9  ;;  %v2783_v59 = vsel %vm2757_vm1, %v2716_v16, %v2782_v57 }
 0x220   : > { %v2567_v58 = vmax.f32 %v2226_v35, %v4346_v48 }
 0x221   : > { %v2568_v10 = vmax.f32 %v2272_v52, %v4347_v54  ;;  %v2569_v44 = vmax.f32 %v2273_v17, %v4348_v8  ;;  %v2570_v50 = vmax.f32 %v2274_v43, %v4349_v41  ;;  %3352 = vmatpush.bf16.msrb.mxu2 %v4640_v29  ;;  %v4632_v54 = vld [vmem:[%s7269_s3 + $0x20] sm:$0xff]  ;;  %v4638_v8 = vld [vmem:[%s7269_s3 + $0x50] sm:$0xff] }
 0x222   : > { %v2717_v62 = vperm.slane %v2567_v58, 0  ;;  %3322 = vmatpush.bf16.msrb.mxu1 %v4633_v56 }
 0x223   : > { %v2718_v63 = vperm.slane %v2568_v10, 0  ;;  %v2719_v26 = vperm.slane %v2569_v44, 0  ;;  %v2720_v1 = vperm.slane %v2570_v50, 0 }
 0x224   : > { %v2784_v28 = vsel %vm2759_vm2, %v2717_v62, %v2783_v59  ;;  %v4631_v59 = vld [vmem:[%s7269_s3 + $0x18] sm:$0xff] }
 0x225   : > { %v2785_v18 = vsel %vm7290_vm9, %v2718_v63, %v2784_v28  ;;  %v2167_v23 = vpop.f32.mrf.mxu2  ;;  %3353 = vmatpush.bf16.msrb.mxu2 %v4639_v39  ;;  %v4637_v63 = vld [vmem:[%s7269_s3 + $0x48] sm:$0xff]  ;;  %vm7299_vm9 = vmmov %vm7296_vm6 }
 0x226   : > { %v2786_v60 = vsel %vm2763_vm13, %v2719_v26, %v2785_v18  ;;  %3323 = vmatpush.bf16.msrb.mxu1 %v4632_v54 }
 0x227   : > { %v2787_v4 = vsel %vm2765_vm14, %v2720_v1, %v2786_v60 }
 0x228   : > { %4454 = vmatmul.msk.bf16.vlgmr.msrb.gmra.mxu3 %vm2603_vm12, %v3150_v40  ;;  %2828 = vst.msk [vmem:[#allocation3 + $0x41] sm:$0xff] %vm2603_vm12, %v2787_v4 }
 0x229   : > { %3354 = vmatpush.bf16.msrb.mxu2 %v4638_v8 }
 0x22a   : > { %3324 = vmatpush.bf16.msrb.mxu1 %v4631_v59 }
 0x22d   : > { %v2169_v44 = vpop.f32.mrf.mxu2  ;;  %3355 = vmatpush.bf16.msrb.mxu2 %v4637_v63 }
 0x22f   : > { %v6801_v32 = vld [vmem:[#allocation3 + $0x42] sm:$0xff] }
 0x230   : > { %v5458_v55 = vpack.i.bf16 %v6801_v32, %v6720_v36 }
 0x232   : > { %5459 = vrot.lane.b32.xlu2 %v5458_v55, %s5586_s23 }
 0x23a   : > { %5464 = vrot.lane.b32.xlu2 %v6726_v11, %s5586_s23 }
 0x23f   : > { %v2152_v19 = vpop.f32.mrf.mxu1 }
 0x240   : > { %v2153_v11 = vadd.f32 %v6821_v21, %v2152_v19 }
 0x242   : > { %v2205_v9 = vmax.f32 %v2153_v11, 0.0 }
 0x246   : > { %v2147_v38 = vpop.f32.mrf.mxu0 }
 0x247   : > { %v2148_v61 = vadd.f32 %v6821_v21, %v2147_v38  ;;  %v2154_v53 = vpop.f32.mrf.mxu1 }
 0x248   : > { %v2155_v27 = vadd.f32 %v6821_v21, %v2154_v53 }
 0x249   : > { %v2203_v5 = vmax.f32 %v2148_v61, 0.0  ;;  %v4630_v61 = vld [vmem:[%s7269_s3 + $0x10] sm:$0xff] }
 0x24a   : > { %v2206_v41 = vmax.f32 %v2155_v27, 0.0  ;;  %3325 = vmatpush.bf16.msrb.mxu1 %v4630_v61 }
 0x24b   : > { %v2227_v25 = vmax.f32 %v2203_v5, %v2205_v9  ;;  %v4636_v9 = vld [vmem:[%s7269_s3 + $0x40] sm:$0xff]  ;;  %v2168_v5 = vadd.f32 %v6821_v21, %v2167_v23  ;;  %v4629_v23 = vld [vmem:[%s7269_s3 + $0x8] sm:$0xff] }
 0x24c   : > { %3356 = vmatpush.bf16.msrb.mxu2 %v4636_v9 }
 0x24d   : > { %v2275_v14 = vrot.slane %v2227_v25, 2  ;;  %v2276_v24 = vrot.slane %v2227_v25, 4  ;;  %v2277_v7 = vrot.slane %v2227_v25, 6  ;;  %v4350_v42 = vrot.slane %v2227_v25, 9 }
 0x24e   : > { %v2149_v35 = vpop.f32.mrf.mxu0  ;;  %v2211_v39 = vmax.f32 %v2168_v5, 0.0  ;;  %3326 = vmatpush.bf16.msrb.mxu1 %v4629_v23 }
 0x24f   : > { %v4351_v3 = vrot.slane %v2275_v14, 9  ;;  %v4352_v46 = vrot.slane %v2276_v24, 9  ;;  %v2571_v45 = vmax.f32 %v2227_v25, %v4350_v42  ;;  %v2150_v52 = vadd.f32 %v6821_v21, %v2149_v35 }
 0x250   : > { %v4353_v17 = vrot.slane %v2277_v7, 9 }
 0x251   : > { %v2572_v43 = vmax.f32 %v2275_v14, %v4351_v3  ;;  %v2573_v48 = vmax.f32 %v2276_v24, %v4352_v46  ;;  %v2204_v57 = vmax.f32 %v2150_v52, 0.0  ;;  %v2721_v16 = vperm.slane %v2571_v45, 0  ;;  %v4628_v45 = vld [vmem:[%s7269_s3] sm:$0xff] }
 0x252   : > { %v2574_v50 = vmax.f32 %v2277_v7, %v4353_v17  ;;  %v2170_v46 = vadd.f32 %v6821_v21, %v2169_v44  ;;  %3327 = vmatpush.bf16.msrb.mxu1 %v4628_v45 }
 0x253   : > { %v2722_v58 = vperm.slane %v2572_v43, 0  ;;  %v2228_v10 = vmax.f32 %v2204_v57, %v2206_v41  ;;  %v2723_v62 = vperm.slane %v2573_v48, 0 }
 0x254   : > { %v2724_v13 = vperm.slane %v2574_v50, 0  ;;  %v2212_v44 = vmax.f32 %v2170_v46, 0.0 }
 0x255   : > { %v2788_v26 = vsel %vm7291_vm11, %v2722_v58, %v2721_v16  ;;  %v2278_v28 = vrot.slane %v2228_v10, 2  ;;  %v2279_v1 = vrot.slane %v2228_v10, 4  ;;  %v2280_v18 = vrot.slane %v2228_v10, 6  ;;  %v6881_v16 = vld [vmem:[#allocation3 + $0x41] sm:$0xff]  ;;  %vm7300_vm11 = vmmov %vm7294_vm3 }
 0x256   : > { %v4354_v40 = vrot.slane %v2228_v10, 9  ;;  %v2789_v6 = vsel %vm7292_vm15, %v2723_v62, %v2788_v26  ;;  %vm7301_vm15 = vmmov %vm7295_vm0 }
 0x257   : > { %v4355_v60 = vrot.slane %v2278_v28, 9  ;;  %v4356_v4 = vrot.slane %v2279_v1, 9  ;;  %v4357_v55 = vrot.slane %v2280_v18, 9  ;;  %v2790_v33 = vsel %vm2757_vm1, %v2724_v13, %v2789_v6 }
 0x258   : > { %v2575_v19 = vmax.f32 %v2228_v10, %v4354_v40  ;;  %v6883_v10 = vld [vmem:[#allocation3 + $0x40] sm:$0xff]  ;;  %v2163_v6 = vadd.f32 %v6821_v21, %v6806_v20 }
 0x259   : > { %v2576_v11 = vmax.f32 %v2278_v28, %v4355_v60  ;;  %v2577_v37 = vmax.f32 %v2279_v1, %v4356_v4  ;;  %v2578_v51 = vmax.f32 %v2280_v18, %v4357_v55  ;;  %v5430_v1 = vpop.permute.xlu2 %5429 }
 0x25a   : > { %v2725_v38 = vperm.slane %v2575_v19, 0  ;;  %v5432_v5 = vunpack.i.h.bf16 %v5430_v1 }
 0x25b   : > { %v2726_v29 = vperm.slane %v2576_v11, 0  ;;  %v2727_v25 = vperm.slane %v2577_v37, 0  ;;  %v2728_v24 = vperm.slane %v2578_v51, 0 }
 0x25c   : > { %v2791_v53 = vsel %vm2759_vm2, %v2725_v38, %v2790_v33 }
 0x25d   : > { %v2792_v7 = vsel %vm7293_vm10, %v2726_v29, %v2791_v53  ;;  %v2209_v29 = vmax.f32 %v2163_v6, 0.0  ;;  %vm7302_vm10 = vmmov %vm7296_vm6 }
 0x25e   : > { %v2172_v14 = vpop.f32.mrf.mxu2  ;;  %v2793_v56 = vsel %vm2763_vm13, %v2727_v25, %v2792_v7 }
 0x25f   : > { %v2173_v42 = vadd.f32 %v6821_v21, %v2172_v14  ;;  %v2794_v27 = vsel %vm2765_vm14, %v2728_v24, %v2793_v56  ;;  %v5431_v14 = vunpack.i.l.bf16 %v5430_v1 }
 0x260   : > { %2829 = vst.msk [vmem:[#allocation3 + $0x51] sm:$0xff] %vm2603_vm12, %v2794_v27 }
 0x261   : > { %v2213_v35 = vmax.f32 %v2173_v42, 0.0  ;;  %v5483_v42 = vpack.i.bf16 %v6883_v10, %v6718_v47  ;;  %v3124_v1 = vsel %vm2603_vm12, %v6661_v31, %v5431_v14 }
 0x263   : > { %v2231_v3 = vmax.f32 %v2211_v39, %v2213_v35  ;;  %v3125_v35 = vsel %vm2603_vm12, %v6708_v22, %v5432_v5 }
 0x265   : > { %v2287_v52 = vrot.slane %v2231_v3, 2  ;;  %v2288_v17 = vrot.slane %v2231_v3, 4  ;;  %v2289_v43 = vrot.slane %v2231_v3, 6  ;;  %v4366_v48 = vrot.slane %v2231_v3, 9 }
 0x266   : > { %v2174_v54 = vpop.f32.mrf.mxu2 }
 0x267   : > { %v4367_v8 = vrot.slane %v2287_v52, 9  ;;  %v4368_v41 = vrot.slane %v2288_v17, 9  ;;  %v2587_v57 = vmax.f32 %v2231_v3, %v4366_v48  ;;  %v2175_v58 = vadd.f32 %v6821_v21, %v2174_v54  ;;  %v6885_v63 = vld [vmem:[#allocation3 + $0x52] sm:$0xff] }
 0x268   : > { %v4369_v50 = vrot.slane %v2289_v43, 9  ;;  %v6887_v26 = vld [vmem:[#allocation3 + $0x51] sm:$0xff]  ;;  %v3153_v40 = vpack.c.bf16 %v6885_v63, %v6801_v32 }
 0x269   : > { %v2588_v62 = vmax.f32 %v2287_v52, %v4367_v8  ;;  %v2589_v59 = vmax.f32 %v2288_v17, %v4368_v41  ;;  %v6889_v28 = vld [vmem:[#allocation3 + $0x50] sm:$0xff]  ;;  %v2214_v18 = vmax.f32 %v2175_v58, 0.0  ;;  %v6895_v60 = vpack.i.bf16 %v6887_v26, %v6881_v16  ;;  %v5435_v52 = vpop.permute.xlu2 %5434 }
 0x26a   : > { %v5468_v4 = vpack.i.bf16 %v6889_v28, %v6883_v10  ;;  %v2737_v19 = vperm.slane %v2587_v57, 0  ;;  %4455 = vmatmul.msk.bf16.gmra.mxu3 %vm2603_vm12, %v3153_v40  ;;  %v2590_v11 = vmax.f32 %v2289_v43, %v4369_v50 }
 0x26b   : > { %v2738_v55 = vperm.slane %v2588_v62, 0  ;;  %v2232_v13 = vmax.f32 %v2212_v44, %v2214_v18  ;;  %5479 = vrot.lane.b32.xlu1 %v6895_v60, %s5587_s26  ;;  %v2739_v37 = vperm.slane %v2589_v59, 0  ;;  %v5437_v18 = vunpack.i.h.bf16 %v5435_v52 }
 0x26c   : > { %5469 = vrot.lane.b32.xlu0 %v5468_v4, %s5588_s27  ;;  %v2740_v56 = vperm.slane %v2590_v11, 0 }
 0x26d   : > { %v2802_v51 = vsel %vm7294_vm3, %v2738_v55, %v2737_v19  ;;  %v2290_v38 = vrot.slane %v2232_v13, 2  ;;  %v2291_v61 = vrot.slane %v2232_v13, 4  ;;  %v2292_v9 = vrot.slane %v2232_v13, 6 }
 0x26e   : > { %v4370_v33 = vrot.slane %v2232_v13, 9  ;;  %v2803_v24 = vsel %vm7295_vm0, %v2739_v37, %v2802_v51  ;;  %v2157_v46 = vpop.f32.mrf.mxu1  ;;  %v2165_v37 = vadd.f32 %v6821_v21, %v6816_v12  ;;  %v3099_v5 = vsel %vm2603_vm12, %v6751_v2, %v5437_v18 }
 0x26f   : > { %v4371_v20 = vrot.slane %v2290_v38, 9  ;;  %v4372_v25 = vrot.slane %v2291_v61, 9  ;;  %v4373_v53 = vrot.slane %v2292_v9, 9  ;;  %v2804_v17 = vsel %vm2757_vm1, %v2740_v56, %v2803_v24 }
 0x270   : > { %v2591_v7 = vmax.f32 %v2232_v13, %v4370_v33  ;;  %v2158_v54 = vadd.f32 %v6821_v21, %v2157_v46 }
 0x271   : > { %v2592_v23 = vmax.f32 %v2290_v38, %v4371_v20  ;;  %v2593_v39 = vmax.f32 %v2291_v61, %v4372_v25  ;;  %v2594_v27 = vmax.f32 %v2292_v9, %v4373_v53  ;;  %v5436_v9 = vunpack.i.l.bf16 %v5435_v52  ;;  %v2833_v25 = vld [vmem:[#allocation3] sm:$0xff] }
 0x272   : > { %v2741_v3 = vperm.slane %v2591_v7, 0  ;;  %v5450_v45 = vpop.permute.xlu1 %5449  ;;  %v2207_v62 = vmax.f32 %v2158_v54, 0.0 }
 0x273   : > { %v2742_v43 = vperm.slane %v2592_v23, 0  ;;  %v2743_v48 = vperm.slane %v2593_v39, 0  ;;  %5484 = vrot.lane.b32.xlu1 %v5483_v42, %s5587_s26  ;;  %v5440_v8 = vpop.permute.xlu0 %5439  ;;  %v5452_v22 = vunpack.i.h.bf16 %v5450_v45  ;;  %v5451_v57 = vunpack.i.l.bf16 %v5450_v45 }
 0x274   : > { %v2805_v41 = vsel %vm2759_vm2, %v2741_v3, %v2804_v17  ;;  %5474 = vrot.lane.b32.xlu0 %v5473_v49, %s5588_s27  ;;  %v5442_v58 = vunpack.i.h.bf16 %v5440_v8  ;;  %v2744_v44 = vperm.slane %v2594_v27, 0  ;;  %v5441_v59 = vunpack.i.l.bf16 %v5440_v8 }
 0x275   : > { %v2806_v50 = vsel %vm7296_vm6, %v2742_v43, %v2805_v41  ;;  %v2229_v34 = vmax.f32 %v2207_v62, %v2209_v29  ;;  %v2210_v39 = vmax.f32 %v2165_v37, 0.0  ;;  %v3098_v2 = vsel %vm2603_vm12, %v2833_v25, %v5436_v9 }
 0x276   : > { %v2807_v40 = vsel %vm2763_vm13, %v2743_v48, %v2806_v50  ;;  %v3133_v4 = vsel %vm3106_vm4, %v3125_v35, %v5442_v58  ;;  %v3132_v36 = vsel %vm3106_vm4, %v3124_v1, %v5441_v59  ;;  %v2159_v51 = vpop.f32.mrf.mxu1 }
 0x277   : > { %v2808_v55 = vsel %vm2765_vm14, %v2744_v44, %v2807_v40  ;;  %v3141_v49 = vsel %vm3115_vm5, %v3133_v4, %v5452_v22  ;;  %v3140_v6 = vsel %vm3115_vm5, %v3132_v36, %v5451_v57  ;;  %v2281_v19 = vrot.slane %v2229_v34, 2 }
 0x278   : > { %2831 = vst.msk [vmem:[#allocation3 + $0x71] sm:$0xff] %vm2603_vm12, %v2808_v55  ;;  %v2282_v13 = vrot.slane %v2229_v34, 4  ;;  %v2283_v11 = vrot.slane %v2229_v34, 6  ;;  %v4358_v31 = vrot.slane %v2229_v34, 9  ;;  %v3149_v38 = vpack.c.bf16 %v3141_v49, %v3140_v6 }
 0x279   : > { %v4359_v33 = vrot.slane %v2281_v19, 9  ;;  %v2160_v14 = vadd.f32 %v6821_v21, %v2159_v51 }
 0x27a   : > { %v5455_v61 = vpop.permute.xlu1 %5454  ;;  %v4360_v29 = vrot.slane %v2282_v13, 9  ;;  %v2579_v53 = vmax.f32 %v2229_v34, %v4358_v31  ;;  %3357 = vmatmul.bf16.vlgmr.msrb.gmra.mxu2 %v3149_v38  ;;  %v4361_v42 = vrot.slane %v2283_v11, 9 }
 0x27b   : > { %v5445_v20 = vpop.permute.xlu0 %5444  ;;  %v5457_v24 = vunpack.i.h.bf16 %v5455_v61  ;;  %v2580_v56 = vmax.f32 %v2281_v19, %v4359_v33  ;;  %v5456_v23 = vunpack.i.l.bf16 %v5455_v61  ;;  %v2208_v27 = vmax.f32 %v2160_v14, 0.0 }
 0x27c   : > { %v5447_v7 = vunpack.i.h.bf16 %v5445_v20  ;;  %v2581_v12 = vmax.f32 %v2282_v13, %v4360_v29  ;;  %v5446_v35 = vunpack.i.l.bf16 %v5445_v20  ;;  %v2729_v45 = vperm.slane %v2579_v53, 0 }
 0x27d   : > { %v2730_v46 = vperm.slane %v2580_v56, 0  ;;  %v2230_v52 = vmax.f32 %v2208_v27, %v2210_v39  ;;  %v2582_v48 = vmax.f32 %v2283_v11, %v4361_v42 }
 0x27e   : > { %v3108_v3 = vsel %vm3106_vm4, %v3099_v5, %v5447_v7  ;;  %v3107_v17 = vsel %vm3106_vm4, %v3098_v2, %v5446_v35  ;;  %v2731_v54 = vperm.slane %v2581_v12, 0  ;;  %v5513_v35 = vpack.i.bf16 %v6885_v63, %v6801_v32 }
 0x27f   : > { %v3117_v43 = vsel %vm3115_vm5, %v3108_v3, %v5457_v24  ;;  %v3116_v8 = vsel %vm3115_vm5, %v3107_v17, %v5456_v23  ;;  %v2795_v41 = vsel %vm7297_vm7, %v2730_v46, %v2729_v45  ;;  %v2284_v22 = vrot.slane %v2230_v52, 2  ;;  %v6947_v61 = vld [vmem:[#allocation3 + $0x72] sm:$0xff] }
 0x280   : > { %v2285_v57 = vrot.slane %v2230_v52, 4  ;;  %v2286_v58 = vrot.slane %v2230_v52, 6  ;;  %v4362_v44 = vrot.slane %v2230_v52, 9  ;;  %v3148_v50 = vpack.c.bf16 %v3117_v43, %v3116_v8  ;;  %v6949_v9 = vld [vmem:[#allocation3 + $0x71] sm:$0xff] }
 0x281   : > { %v4363_v62 = vrot.slane %v2284_v22, 9  ;;  %v2796_v18 = vsel %vm7298_vm8, %v2731_v54, %v2795_v41  ;;  %v2732_v4 = vperm.slane %v2582_v48, 0  ;;  %v6951_v5 = vld [vmem:[#allocation3 + $0x70] sm:$0xff] }
 0x282   : > { %v4364_v59 = vrot.slane %v2285_v57, 9  ;;  %v4365_v1 = vrot.slane %v2286_v58, 9  ;;  %v2583_v40 = vmax.f32 %v2230_v52, %v4362_v44  ;;  %3328 = vmatmul.bf16.vlgmr.msrb.gmra.mxu1 %v3148_v50 }
 0x283   : > { %v2584_v55 = vmax.f32 %v2284_v22, %v4363_v62  ;;  %v2797_v6 = vsel %vm2757_vm1, %v2732_v4, %v2796_v18 }
 0x284   : > { %v2585_v34 = vmax.f32 %v2285_v57, %v4364_v59  ;;  %v2586_v36 = vmax.f32 %v2286_v58, %v4365_v1  ;;  %v2733_v49 = vperm.slane %v2583_v40, 0 }
 0x285   : > { %v2734_v19 = vperm.slane %v2584_v55, 0 }
 0x286   : > { %v2735_v13 = vperm.slane %v2585_v34, 0  ;;  %v2798_v11 = vsel %vm2759_vm2, %v2733_v49, %v2797_v6  ;;  %v2736_v31 = vperm.slane %v2586_v36, 0 }
 0x287   : > { %v2799_v37 = vsel %vm7299_vm9, %v2734_v19, %v2798_v11 }
 0x288   : > { %v2800_v51 = vsel %vm2763_vm13, %v2735_v13, %v2799_v37 }
 0x289   : > { %v2801_v38 = vsel %vm2765_vm14, %v2736_v31, %v2800_v51 }
 0x28a   : > { %2830 = vst.msk [vmem:[#allocation3 + $0x61] sm:$0xff] %vm2603_vm12, %v2801_v38 }
 0x291   : > { %v6953_v33 = vld [vmem:[#allocation3 + $0x62] sm:$0xff] }
 0x292   : > { %v6955_v29 = vld [vmem:[#allocation3 + $0x61] sm:$0xff]  ;;  %v3156_v25 = vpack.c.bf16 %v6947_v61, %v6953_v33  ;;  %v5498_v24 = vpack.i.bf16 %v6953_v33, %v6885_v63 }
 0x293   : > { %v6957_v20 = vld [vmem:[#allocation3 + $0x60] sm:$0xff]  ;;  %v6963_v53 = vpack.i.bf16 %v6949_v9, %v6955_v29 }
 0x294   : > { %v5488_v14 = vpack.i.bf16 %v6951_v5, %v6957_v20  ;;  %v2177_v7 = vpop.f32.mrf.mxu2  ;;  %4456 = vmatmul.msk.bf16.gmra.mxu3 %vm2603_vm12, %v3156_v25  ;;  %5499 = vrot.lane.b32.xlu2 %v5498_v24, %s5586_s23  ;;  %v5523_v39 = vpack.i.bf16 %v6957_v20, %v6889_v28 }
 0x295   : > { %5494 = vrot.lane.b32.xlu1 %v6963_v53, %s5587_s26  ;;  %v2178_v42 = vadd.f32 %v6821_v21, %v2177_v7 }
 0x296   : > { %5489 = vrot.lane.b32.xlu0 %v5488_v14, %s5588_s27 }
 0x297   : > { %v2215_v23 = vmax.f32 %v2178_v42, 0.0 }
 0x29b   : > { %v2182_v56 = vpop.f32.mrf.mxu3 }
 0x29c   : > { %v2183_v12 = vadd.f32 %v6821_v21, %v2182_v56  ;;  %v2179_v2 = vpop.f32.mrf.mxu2  ;;  %5504 = vrot.lane.b32.xlu2 %v6895_v60, %s5586_s23 }
 0x29d   : > { %5524 = vrot.lane.b32.xlu1 %v5523_v39, %s5587_s26  ;;  %v2180_v43 = vadd.f32 %v6821_v21, %v2179_v2  ;;  %v2897_v39 = vld [vmem:[#allocation3 + $0x91] sm:$0xff] }
 0x29e   : > { %v2217_v27 = vmax.f32 %v2183_v12, 0.0  ;;  %5514 = vrot.lane.b32.xlu0 %v5513_v35, %s5588_s27 }
 0x29f   : > { %v2216_v58 = vmax.f32 %v2180_v43, 0.0 }
 0x2a0   : > { %v2233_v3 = vmax.f32 %v2215_v23, %v2217_v27  ;;  %v2905_v23 = vld [vmem:[#allocation3 + $0x92] sm:$0xff] }
 0x2a1   : > { %v2889_v27 = vld [vmem:[#allocation3 + $0x90] sm:$0xff] }
 0x2a2   : > { %v2293_v46 = vrot.slane %v2233_v3, 2  ;;  %v2294_v45 = vrot.slane %v2233_v3, 4  ;;  %v2295_v52 = vrot.slane %v2233_v3, 6  ;;  %v4374_v17 = vrot.slane %v2233_v3, 9 }
 0x2a3   : > { %v2184_v48 = vpop.f32.mrf.mxu3 }
 0x2a4   : > { %v4375_v54 = vrot.slane %v2293_v46, 9  ;;  %v4376_v8 = vrot.slane %v2294_v45, 9  ;;  %v2595_v41 = vmax.f32 %v2233_v3, %v4374_v17  ;;  %v2185_v32 = vadd.f32 %v6821_v21, %v2184_v48 }
 0x2a5   : > { %v4377_v63 = vrot.slane %v2295_v52, 9  ;;  %v5538_v48 = vpack.i.bf16 %v6947_v61, %v6953_v33 }
 0x2a6   : > { %v2596_v22 = vmax.f32 %v2293_v46, %v4375_v54  ;;  %v2597_v57 = vmax.f32 %v2294_v45, %v4376_v8  ;;  %v2218_v44 = vmax.f32 %v2185_v32, 0.0  ;;  %v2745_v62 = vperm.slane %v2595_v41, 0  ;;  %v5460_v54 = vpop.permute.xlu2 %5459 }
 0x2a7   : > { %v2598_v59 = vmax.f32 %v2295_v52, %v4377_v63  ;;  %v5462_v8 = vunpack.i.h.bf16 %v5460_v54  ;;  %v5461_v41 = vunpack.i.l.bf16 %v5460_v54 }
 0x2a8   : > { %v2746_v50 = vperm.slane %v2596_v22, 0  ;;  %v2234_v60 = vmax.f32 %v2216_v58, %v2218_v44  ;;  %v2747_v1 = vperm.slane %v2597_v57, 0 }
 0x2a9   : > { %v2748_v13 = vperm.slane %v2598_v59, 0 }
 0x2aa   : > { %v2809_v18 = vsel %vm7300_vm11, %v2746_v50, %v2745_v62  ;;  %v2296_v40 = vrot.slane %v2234_v60, 2  ;;  %v2297_v4 = vrot.slane %v2234_v60, 4  ;;  %v2298_v55 = vrot.slane %v2234_v60, 6 }
 0x2ab   : > { %v4378_v34 = vrot.slane %v2234_v60, 9  ;;  %v2810_v21 = vsel %vm7301_vm15, %v2747_v1, %v2809_v18  ;;  %v3127_v50 = vsel %vm2603_vm12, %v6881_v16, %v5462_v8  ;;  %vm4151_vm11 = vcmask 1043458  }
 0x2ac   : > { %v4379_v36 = vrot.slane %v2296_v40, 9  ;;  %v4380_v49 = vrot.slane %v2297_v4, 9  ;;  %v4381_v6 = vrot.slane %v2298_v55, 9  ;;  %v2811_v38 = vsel %vm2757_vm1, %v2748_v13, %v2810_v21 }
 0x2ad   : > { %v2599_v19 = vmax.f32 %v2234_v60, %v4378_v34 }
 0x2ae   : > { %v2600_v11 = vmax.f32 %v2296_v40, %v4379_v36  ;;  %v2601_v31 = vmax.f32 %v2297_v4, %v4380_v49  ;;  %v2602_v37 = vmax.f32 %v2298_v55, %v4381_v6  ;;  %v5465_v33 = vpop.permute.xlu2 %5464 }
 0x2af   : > { %v2749_v51 = vperm.slane %v2599_v19, 0  ;;  %v5467_v18 = vunpack.i.h.bf16 %v5465_v33  ;;  %v5466_v40 = vunpack.i.l.bf16 %v5465_v33 }
 0x2b0   : > { %v2750_v25 = vperm.slane %v2600_v11, 0  ;;  %v2751_v14 = vperm.slane %v2601_v31, 0  ;;  %v2752_v7 = vperm.slane %v2602_v37, 0 }
 0x2b1   : > { %v2812_v24 = vsel %vm2759_vm2, %v2749_v51, %v2811_v38  ;;  %v3100_v6 = vsel %vm2603_vm12, %v6710_v30, %v5466_v40  ;;  %vm7303_vm2 = vmmov %vm7294_vm3 }
 0x2b2   : > { %v2813_v42 = vsel %vm7302_vm10, %v2750_v25, %v2812_v24  ;;  %v3387_v25 = vpop.f32.mrf.mxu3  ;;  %vm7304_vm3 = vmmov %vm7295_vm0 }
 0x2b3   : > { %v2814_v56 = vsel %vm2763_vm13, %v2751_v14, %v2813_v42  ;;  %vm3567_vm13 = vcmask 519168   ;;  %vm7305_vm0 = vmmov %vm7303_vm2 }
 0x2b4   : > { %v2815_v12 = vsel %vm2765_vm14, %v2752_v7, %v2814_v56  ;;  %vm3511_vm14 = vcmask 521216   ;;  %vm7307_vm6 = vmmov %vm7305_vm0 }
 0x2b5   : > { %2832 = vst.msk [vmem:[#allocation3 + $0x81] sm:$0xff] %vm2603_vm12, %v2815_v12  ;;  %vm7308_vm7 = vmmov %vm7304_vm3 }
 0x2b6   : > { %3513 = vst.msk [vmem:[#allocation4 + $0x8] sm:$0x3f] %vm3511_vm14, %v5576_v0  ;;  %vm7309_vm8 = vmmov %vm7305_vm0 }
 0x2b7   : > { %3512 = vst.msk [vmem:[#allocation4] sm:$0x3f] %vm3511_vm14, %v5576_v0  ;;  %vm7310_vm9 = vmmov %vm7304_vm3 }
 0x2b8   : > { %3514 = vst.msk [vmem:[#allocation4 + $0x10] sm:$0x3f] %vm3511_vm14, %v5576_v0  ;;  %vm7311_vm15 = vmmov %vm7305_vm0 }
 0x2b9   : > { %3515 = vst.msk [vmem:[#allocation4 + $0x18] sm:$0x3f] %vm3511_vm14, %v5576_v0  ;;  %vm7312_vm10 = vmmov %vm7304_vm3 }
 0x2ba   : > { %3516 = vst.msk [vmem:[#allocation4 + $0x20] sm:$0x3f] %vm3511_vm14, %v5576_v0 }
 0x2bb   : > { %3517 = vst.msk [vmem:[#allocation4 + $0x28] sm:$0x3f] %vm3511_vm14, %v5576_v0 }
 0x2bc   : > { %v2904_v35 = vld [vmem:[#allocation3 + $0x82] sm:$0xff] }
 0x2bd   : > { %v6994_v3 = vld [vmem:[#allocation3 + $0x81] sm:$0xff]  ;;  %v3159_v46 = vpack.c.bf16 %v2905_v23, %v2904_v35  ;;  %v5508_v17 = vpack.i.bf16 %v2904_v35, %v6947_v61  ;;  %v3126_v61 = vsel %vm2603_vm12, %v6716_v15, %v5461_v41  ;;  %v3101_v15 = vsel %vm2603_vm12, %v6718_v47, %v5467_v18  ;;  %v3389_v41 = vpop.f32.mrf.mxu3 }
 0x2be   : > { %v2888_v2 = vld [vmem:[#allocation3 + $0x80] sm:$0xff]  ;;  %v5528_v45 = vpack.i.bf16 %v2897_v39, %v6994_v3  ;;  %v7035_v47 = vld [vmem:[%s7270_s4] ss:$0 sm:$0xff] }
 0x2bf   : > { %v5518_v52 = vpack.i.bf16 %v2889_v27, %v2888_v2  ;;  %4457 = vmatmul.msk.bf16.gmra.mxu3 %vm2603_vm12, %v3159_v46  ;;  %5509 = vrot.lane.b32.xlu2 %v5508_v17, %s5586_s23  ;;  %v5543_v43 = vpack.i.bf16 %v2888_v2, %v6951_v5  ;;  %v3576_v30 = vld [vmem:[#allocation4 + $0x1] sm:$0xf] }
 0x2c0   : > { %5529 = vrot.lane.b32.xlu1 %v5528_v45, %s5587_s26 }
 0x2c1   : > { %5519 = vrot.lane.b32.xlu0 %v5518_v52, %s5588_s27 }
 0x2c7   : > { %5534 = vrot.lane.b32.xlu2 %v6963_v53, %s5586_s23 }
 0x2c8   : > { %5544 = vrot.lane.b32.xlu1 %v5543_v43, %s5587_s26 }
 0x2c9   : > { %5539 = vrot.lane.b32.xlu0 %v5538_v48, %s5588_s27 }
 0x2d1   : > { %3613 = vrot.lane.b32.xlu0 %v3576_v30, %s5588_s27 }
 0x2dd   : > { %v5480_v32 = vpop.permute.xlu1 %5479 }
 0x2de   : > { %v5482_v63 = vunpack.i.h.bf16 %v5480_v32  ;;  %v5481_v22 = vunpack.i.l.bf16 %v5480_v32  ;;  %v5470_v57 = vpop.permute.xlu0 %5469 }
 0x2df   : > { %v5472_v58 = vunpack.i.h.bf16 %v5470_v57  ;;  %v5471_v44 = vunpack.i.l.bf16 %v5470_v57 }
 0x2e1   : > { %v3134_v62 = vsel %vm3106_vm4, %v3126_v61, %v5471_v44  ;;  %v3135_v53 = vsel %vm3106_vm4, %v3127_v50, %v5472_v58 }
 0x2e2   : > { %v3142_v60 = vsel %vm3115_vm5, %v3134_v62, %v5481_v22  ;;  %v3143_v59 = vsel %vm3115_vm5, %v3135_v53, %v5482_v63 }
 0x2e3   : > { %v3152_v1 = vpack.c.bf16 %v3143_v59, %v3142_v60 }
 0x2e5   : > { %3362 = vmatmul.bf16.gmra.mxu2 %v3152_v1  ;;  %v5485_v4 = vpop.permute.xlu1 %5484 }
 0x2e6   : > { %v5487_v55 = vunpack.i.h.bf16 %v5485_v4  ;;  %v5486_v34 = vunpack.i.l.bf16 %v5485_v4  ;;  %v5475_v16 = vpop.permute.xlu0 %5474 }
 0x2e7   : > { %v5477_v36 = vunpack.i.h.bf16 %v5475_v16  ;;  %v5476_v49 = vunpack.i.l.bf16 %v5475_v16 }
 0x2e9   : > { %v3109_v21 = vsel %vm3106_vm4, %v3100_v6, %v5476_v49  ;;  %v3110_v19 = vsel %vm3106_vm4, %v3101_v15, %v5477_v36 }
 0x2ea   : > { %v3118_v13 = vsel %vm3115_vm5, %v3109_v21, %v5486_v34  ;;  %v3119_v11 = vsel %vm3115_vm5, %v3110_v19, %v5487_v55 }
 0x2eb   : > { %v3151_v31 = vpack.c.bf16 %v3119_v11, %v3118_v13 }
 0x2ed   : > { %3333 = vmatmul.bf16.gmra.mxu1 %v3151_v31 }
 0x2ee   : > { %v5500_v38 = vpop.permute.xlu2 %5499 }
 0x2ef   : > { %v5502_v24 = vunpack.i.h.bf16 %v5500_v38  ;;  %v5501_v7 = vunpack.i.l.bf16 %v5500_v38 }
 0x2f1   : > { %v3129_v46 = vsel %vm2603_vm12, %v6955_v29, %v5502_v24  ;;  %v3128_v45 = vsel %vm2603_vm12, %v6887_v26, %v5501_v7 }
 0x2f6   : > { %v5505_v17 = vpop.permute.xlu2 %5504 }
 0x2f7   : > { %v5507_v58 = vunpack.i.h.bf16 %v5505_v17  ;;  %v5506_v29 = vunpack.i.l.bf16 %v5505_v17 }
 0x2f9   : > { %v3103_v60 = vsel %vm2603_vm12, %v6889_v28, %v5507_v58  ;;  %v3102_v59 = vsel %vm2603_vm12, %v6883_v10, %v5506_v29 }
 0x2fd   : > { %v3358_v37 = vpop.f32.mrf.mxu2 }
 0x2ff   : > { %v3329_v51 = vpop.f32.mrf.mxu1 }
 0x300   : > { %v3330_v14 = vadd.f32 %v7035_v47, %v3329_v51 }
 0x302   : > { %v3359_v42 = vadd.f32 %v3358_v37, %v3330_v14 }
 0x304   : > { %v3388_v43 = vadd.f32 %v3387_v25, %v3359_v42 }
 0x305   : > { %v3360_v52 = vpop.f32.mrf.mxu2 }
 0x306   : > { %v3407_v44 = vmax.f32 %v3388_v43, 0.0 }
 0x307   : > { %v5495_v56 = vpop.permute.xlu1 %5494  ;;  %v3331_v39 = vpop.f32.mrf.mxu1 }
 0x308   : > { %v5497_v12 = vunpack.i.h.bf16 %v5495_v56  ;;  %v5496_v0 = vunpack.i.l.bf16 %v5495_v56  ;;  %v5490_v23 = vpop.permute.xlu0 %5489  ;;  %v3332_v2 = vadd.f32 %v7035_v47, %v3331_v39 }
 0x309   : > { %v5492_v27 = vunpack.i.h.bf16 %v5490_v23  ;;  %v5491_v35 = vunpack.i.l.bf16 %v5490_v23 }
 0x30a   : > { %v3361_v48 = vadd.f32 %v3360_v52, %v3332_v2 }
 0x30b   : > { %v3136_v54 = vsel %vm3106_vm4, %v3128_v45, %v5491_v35  ;;  %v3137_v8 = vsel %vm3106_vm4, %v3129_v46, %v5492_v27 }
 0x30c   : > { %v3144_v32 = vsel %vm3115_vm5, %v3136_v54, %v5496_v0  ;;  %v3145_v63 = vsel %vm3115_vm5, %v3137_v8, %v5497_v12  ;;  %v3390_v22 = vadd.f32 %v3389_v41, %v3361_v48 }
 0x30d   : > { %v3155_v57 = vpack.c.bf16 %v3145_v63, %v3144_v32 }
 0x30e   : > { %v3408_v50 = vmax.f32 %v3390_v22, 0.0 }
 0x30f   : > { %3367 = vmatmul.bf16.gmra.mxu2 %v3155_v57  ;;  %v5525_v26 = vpop.permute.xlu1 %5524 }
 0x310   : > { %v5515_v61 = vpop.permute.xlu0 %5514  ;;  %v3415_v33 = vmax.f32 %v3407_v44, %v3408_v50  ;;  %v5527_v1 = vunpack.i.h.bf16 %v5525_v26  ;;  %v5526_v18 = vunpack.i.l.bf16 %v5525_v26 }
 0x311   : > { %v5517_v62 = vunpack.i.h.bf16 %v5515_v61  ;;  %v5516_v53 = vunpack.i.l.bf16 %v5515_v61 }
 0x312   : > { %v3423_v40 = vrot.slane %v3415_v33, 2  ;;  %v3424_v4 = vrot.slane %v3415_v33, 4  ;;  %v3425_v55 = vrot.slane %v3415_v33, 6  ;;  %v4458_v34 = vrot.slane %v3415_v33, 9 }
 0x313   : > { %v3111_v16 = vsel %vm3106_vm4, %v3102_v59, %v5516_v53  ;;  %v3112_v36 = vsel %vm3106_vm4, %v3103_v60, %v5517_v62 }
 0x314   : > { %v4459_v49 = vrot.slane %v3423_v40, 9  ;;  %v4460_v15 = vrot.slane %v3424_v4, 9  ;;  %v4461_v6 = vrot.slane %v3425_v55, 9  ;;  %v3495_v21 = vmax.f32 %v3415_v33, %v4458_v34 }
 0x315   : > { %v3120_v19 = vsel %vm3115_vm5, %v3111_v16, %v5526_v18  ;;  %v3121_v28 = vsel %vm3115_vm5, %v3112_v36, %v5527_v1  ;;  %v3392_v1 = vpop.f32.mrf.mxu3 }
 0x316   : > { %v3496_v13 = vmax.f32 %v3423_v40, %v4459_v49  ;;  %v3497_v10 = vmax.f32 %v3424_v4, %v4460_v15  ;;  %v3498_v11 = vmax.f32 %v3425_v55, %v4461_v6  ;;  %v3154_v31 = vpack.c.bf16 %v3121_v28, %v3120_v19 }
 0x317   : > { %v3534_v30 = vperm.slane %v3495_v21, 0 }
 0x318   : > { %v3535_v37 = vperm.slane %v3496_v13, 0  ;;  %v3536_v51 = vperm.slane %v3497_v10, 0  ;;  %3338 = vmatmul.bf16.gmra.mxu1 %v3154_v31  ;;  %v3537_v38 = vperm.slane %v3498_v11, 0 }
 0x319   : > { %v5510_v56 = vpop.permute.xlu2 %5509 }
 0x31a   : > { %v3550_v25 = vsel %vm7303_vm2, %v3535_v37, %v3534_v30  ;;  %v5512_v12 = vunpack.i.h.bf16 %v5510_v56  ;;  %v5511_v0 = vunpack.i.l.bf16 %v5510_v56  ;;  %v3572_v37 = vld [vmem:[#allocation4] sm:$0xf] }
 0x31b   : > { %v3551_v14 = vsel %vm7304_vm3, %v3536_v51, %v3550_v25 }
 0x31c   : > { %v3552_v24 = vsel %vm2757_vm1, %v3537_v38, %v3551_v14  ;;  %v3131_v45 = vsel %vm2603_vm12, %v6994_v3, %v5512_v12  ;;  %v3130_v52 = vsel %vm2603_vm12, %v6949_v9, %v5511_v0  ;;  %v3580_v38 = vld [vmem:[#allocation4 + $0x2] sm:$0xf] }
 0x31d   : > { %3568 = vst.msk [vmem:[#allocation4 + $0x9] sm:$0xf] %vm3567_vm13, %v3552_v24  ;;  %v3394_v16 = vpop.f32.mrf.mxu3 }
 0x321   : > { %v5535_v17 = vpop.permute.xlu2 %5534 }
 0x322   : > { %v5537_v32 = vunpack.i.h.bf16 %v5535_v17  ;;  %v5536_v63 = vunpack.i.l.bf16 %v5535_v17 }
 0x324   : > { %v3584_v7 = vld [vmem:[#allocation4 + $0x8] sm:$0xf]  ;;  %v3105_v9 = vsel %vm2603_vm12, %v6951_v5, %v5537_v32  ;;  %v3104_v50 = vsel %vm2603_vm12, %v6957_v20, %v5536_v63  ;;  %vm3717_vm12 = vcmask 1043456  }
 0x325   : > { %v3577_v42 = vld [vmem:[#allocation4 + $0x9] sm:$0xf]  ;;  %3629 = vrot.lane.b32.xlu2 %v3584_v7, %s5588_s27 }
 0x326   : > { %3615 = vrot.lane.b32.xlu1 %v3577_v42, %s5588_s27 }
 0x332   : > { %v5530_v23 = vpop.permute.xlu1 %5529 }
 0x333   : > { %v5532_v39 = vunpack.i.h.bf16 %v5530_v23  ;;  %v5531_v27 = vunpack.i.l.bf16 %v5530_v23  ;;  %v5520_v35 = vpop.permute.xlu0 %5519 }
 0x334   : > { %v5522_v2 = vunpack.i.h.bf16 %v5520_v35  ;;  %v5521_v46 = vunpack.i.l.bf16 %v5520_v35 }
 0x336   : > { %v3138_v43 = vsel %vm3106_vm4, %v3130_v52, %v5521_v46  ;;  %v3139_v48 = vsel %vm3106_vm4, %v3131_v45, %v5522_v2 }
 0x337   : > { %v3146_v54 = vsel %vm3115_vm5, %v3138_v43, %v5531_v27  ;;  %v3147_v8 = vsel %vm3115_vm5, %v3139_v48, %v5532_v39 }
 0x338   : > { %v3158_v41 = vpack.c.bf16 %v3147_v8, %v3146_v54 }
 0x33a   : > { %3372 = vmatmul.bf16.gmra.mxu2 %v3158_v41  ;;  %v5545_v22 = vpop.permute.xlu1 %5544  ;;  %v3397_v41 = vpop.f32.mrf.mxu3 }
 0x33b   : > { %v5547_v57 = vunpack.i.h.bf16 %v5545_v22  ;;  %v5546_v58 = vunpack.i.l.bf16 %v5545_v22  ;;  %v5540_v3 = vpop.permute.xlu0 %5539 }
 0x33c   : > { %v5542_v29 = vunpack.i.h.bf16 %v5540_v3  ;;  %v5541_v44 = vunpack.i.l.bf16 %v5540_v3 }
 0x33e   : > { %v3113_v26 = vsel %vm3106_vm4, %v3104_v50, %v5541_v44  ;;  %v3114_v61 = vsel %vm3106_vm4, %v3105_v9, %v5542_v29 }
 0x33f   : > { %v3122_v33 = vsel %vm3115_vm5, %v3113_v26, %v5546_v58  ;;  %v3123_v62 = vsel %vm3115_vm5, %v3114_v61, %v5547_v57  ;;  %vm7306_vm5 = vmmov %vm7304_vm3 }
 0x340   : > { %v3157_v53 = vpack.c.bf16 %v3123_v62, %v3122_v33 }
 0x342   : > { %3343 = vmatmul.bf16.gmra.mxu1 %v3157_v53  ;;  %v3399_v44 = vpop.f32.mrf.mxu3 }
 0x343   : > { %v3614_v51 = vpop.permute.xlu0 %3613 }
 0x344   : > { %v3673_v42 = vsel %vm3106_vm4, %v3572_v37, %v3614_v51  ;;  %v3604_v51 = vld [vmem:[#allocation4 + $0x29] sm:$0xf] }
 0x368   : > { %v3363_v60 = vpop.f32.mrf.mxu2 }
 0x36a   : > { %v3334_v59 = vpop.f32.mrf.mxu1 }
 0x36b   : > { %v3335_v18 = vadd.f32 %v7035_v47, %v3334_v59 }
 0x36d   : > { %v3364_v40 = vadd.f32 %v3363_v60, %v3335_v18 }
 0x36f   : > { %v3393_v55 = vadd.f32 %v3392_v1, %v3364_v40 }
 0x370   : > { %v3365_v20 = vpop.f32.mrf.mxu2 }
 0x371   : > { %v3409_v49 = vmax.f32 %v3393_v55, 0.0 }
 0x372   : > { %v3336_v5 = vpop.f32.mrf.mxu1 }
 0x373   : > { %v3337_v4 = vadd.f32 %v7035_v47, %v3336_v5 }
 0x375   : > { %v3366_v34 = vadd.f32 %v3365_v20, %v3337_v4 }
 0x377   : > { %v3395_v36 = vadd.f32 %v3394_v16, %v3366_v34 }
 0x379   : > { %v3410_v15 = vmax.f32 %v3395_v36, 0.0 }
 0x37b   : > { %v3416_v6 = vmax.f32 %v3409_v49, %v3410_v15 }
 0x37d   : > { %v3426_v21 = vrot.slane %v3416_v6, 2  ;;  %v3427_v19 = vrot.slane %v3416_v6, 4  ;;  %v3428_v28 = vrot.slane %v3416_v6, 6  ;;  %v4462_v13 = vrot.slane %v3416_v6, 9 }
 0x37f   : > { %v4463_v10 = vrot.slane %v3426_v21, 9  ;;  %v4464_v11 = vrot.slane %v3427_v19, 9  ;;  %v4465_v31 = vrot.slane %v3428_v28, 9  ;;  %v3499_v30 = vmax.f32 %v3416_v6, %v4462_v13  ;;  %v3630_v7 = vpop.permute.xlu2 %3629 }
 0x380   : > { %v3677_v23 = vsel %vm3106_vm4, %v3580_v38, %v3630_v7 }
 0x381   : > { %v3500_v25 = vmax.f32 %v3426_v21, %v4463_v10  ;;  %v3501_v14 = vmax.f32 %v3427_v19, %v4464_v11  ;;  %v3502_v24 = vmax.f32 %v3428_v28, %v4465_v31  ;;  %v3538_v56 = vperm.slane %v3499_v30, 0  ;;  %v3402_v11 = vpop.f32.mrf.mxu3 }
 0x382   : > { %v3709_v39 = vrot.slane %v3677_v23, 4 }
 0x383   : > { %v3539_v12 = vperm.slane %v3500_v25, 0  ;;  %v3540_v0 = vperm.slane %v3501_v14, 0  ;;  %v3541_v27 = vperm.slane %v3502_v24, 0 }
 0x384   : > { %v3718_v46 = vsel %vm3717_vm12, %v3673_v42, %v3709_v39 }
 0x385   : > { %v3553_v35 = vsel %vm7305_vm0, %v3539_v12, %v3538_v56  ;;  %3726 = vst [vmem:[#allocation1] ss:$2 sm:$0xff] %v3718_v46 }
 0x386   : > { %v3554_v2 = vsel %vm7306_vm5, %v3540_v0, %v3553_v35 }
 0x387   : > { %v3555_v45 = vsel %vm2757_vm1, %v3541_v27, %v3554_v2 }
 0x388   : > { %3569 = vst.msk [vmem:[#allocation4 + $0x11] sm:$0xf] %vm3567_vm13, %v3555_v45 }
 0x389   : > { %v3404_v42 = vpop.f32.mrf.mxu3 }
 0x38f   : > { %v3585_v52 = vld [vmem:[#allocation4 + $0x10] sm:$0xf] }
 0x390   : > { %v3578_v17 = vld [vmem:[#allocation4 + $0x11] sm:$0xf]  ;;  %3631 = vrot.lane.b32.xlu0 %v3585_v52, %s5588_s27 }
 0x391   : > { %v3601_v43 = vld [vmem:[#allocation4 + $0x11] sm:$0xf]  ;;  %3617 = vrot.lane.b32.xlu2 %v3578_v17, %s5588_s27 }
 0x392   : > { %3661 = vrot.lane.b32.xlu1 %v3601_v43, %s5588_s27  ;;  %v3605_v48 = vld [vmem:[#allocation4 + $0x12] sm:$0xf]  ;;  %v3368_v54 = vpop.f32.mrf.mxu2 }
 0x393   : > { %3734 = vst [vmem:[#allocation1 + $0x20] ss:$2 sm:$0xff] %v3605_v48 }
 0x395   : > { %v3339_v8 = vpop.f32.mrf.mxu1 }
 0x396   : > { %v3340_v32 = vadd.f32 %v7035_v47, %v3339_v8 }
 0x398   : > { %v3369_v63 = vadd.f32 %v3368_v54, %v3340_v32 }
 0x39a   : > { %v3370_v58 = vpop.f32.mrf.mxu2  ;;  %v3398_v3 = vadd.f32 %v3397_v41, %v3369_v63 }
 0x39c   : > { %v3411_v50 = vmax.f32 %v3398_v3, 0.0 }
 0x39d   : > { %v3341_v22 = vpop.f32.mrf.mxu1 }
 0x39e   : > { %v3342_v57 = vadd.f32 %v7035_v47, %v3341_v22 }
 0x3a0   : > { %v3371_v29 = vadd.f32 %v3370_v58, %v3342_v57 }
 0x3a2   : > { %v3400_v9 = vadd.f32 %v3399_v44, %v3371_v29  ;;  %v3593_v44 = vld [vmem:[#allocation4 + $0x12] sm:$0xf] }
 0x3a4   : > { %v3412_v26 = vmax.f32 %v3400_v9, 0.0  ;;  %v3592_v9 = vld [vmem:[#allocation4 + $0xa] sm:$0xf] }
 0x3a6   : > { %v3417_v61 = vmax.f32 %v3411_v50, %v3412_v26  ;;  %v4653_v26 = vld [vmem:[%s7271_s5 + $0x38] sm:$0xff] }
 0x3a7   : > { %4065 = vmatpush.bf16.msra.mxu3 %v4653_v26  ;;  %v4672_v26 = vld [vmem:[%s7271_s5 + $0xd0] sm:$0xff] }
 0x3a8   : > { %v3429_v33 = vrot.slane %v3417_v61, 2  ;;  %v3430_v62 = vrot.slane %v3417_v61, 4  ;;  %v3431_v53 = vrot.slane %v3417_v61, 6  ;;  %v4466_v60 = vrot.slane %v3417_v61, 9 }
 0x3aa   : > { %v4467_v59 = vrot.slane %v3429_v33, 9  ;;  %v4468_v1 = vrot.slane %v3430_v62, 9  ;;  %v4469_v18 = vrot.slane %v3431_v53, 9  ;;  %v3503_v40 = vmax.f32 %v3417_v61, %v4466_v60  ;;  %v4661_v61 = vld [vmem:[%s7271_s5 + $0x78] sm:$0xff]  ;;  %v3581_v60 = vld [vmem:[#allocation4 + $0xa] sm:$0xf] }
 0x3ab   : > { %4079 = vmatpush.bf16.msra.mxu1 %v4661_v61 }
 0x3ac   : > { %v3504_v5 = vmax.f32 %v3429_v33, %v4467_v59  ;;  %v3505_v4 = vmax.f32 %v3430_v62, %v4468_v1  ;;  %v3506_v20 = vmax.f32 %v3431_v53, %v4469_v18  ;;  %v3542_v55 = vperm.slane %v3503_v40, 0  ;;  %v4652_v33 = vld [vmem:[%s7271_s5 + $0x30] sm:$0xff]  ;;  %v3616_v62 = vpop.permute.xlu1 %3615  ;;  %v3573_v1 = vld [vmem:[#allocation4 + $0x8] sm:$0xf] }
 0x3ad   : > { %4066 = vmatpush.bf16.msra.mxu3 %v4652_v33  ;;  %v3674_v40 = vsel %vm3106_vm4, %v3573_v1, %v3616_v62  ;;  %v4662_v1 = vld [vmem:[%s7271_s5 + $0x80] sm:$0xff] }
 0x3ae   : > { %v3543_v34 = vperm.slane %v3504_v5, 0  ;;  %v3544_v16 = vperm.slane %v3505_v4, 0  ;;  %v3545_v36 = vperm.slane %v3506_v20, 0  ;;  %v4669_v4 = vld [vmem:[%s7271_s5 + $0xb8] sm:$0xff]  ;;  %v4651_v20 = vld [vmem:[%s7271_s5 + $0x28] sm:$0xff] }
 0x3af   : > { %4093 = vmatpush.bf16.msra.mxu2 %v4669_v4 }
 0x3b0   : > { %v3556_v49 = vsel %vm7307_vm6, %v3543_v34, %v3542_v55  ;;  %v4660_v55 = vld [vmem:[%s7271_s5 + $0x70] sm:$0xff] }
 0x3b1   : > { %v3557_v15 = vsel %vm7308_vm7, %v3544_v16, %v3556_v49  ;;  %4067 = vmatpush.bf16.msra.mxu3 %v4651_v20  ;;  %4080 = vmatpush.bf16.msra.mxu1 %v4660_v55  ;;  %v4668_v34 = vld [vmem:[%s7271_s5 + $0xb0] sm:$0xff]  ;;  %v4650_v16 = vld [vmem:[%s7271_s5 + $0x20] sm:$0xff] }
 0x3b2   : > { %v3558_v6 = vsel %vm2757_vm1, %v3545_v36, %v3557_v15  ;;  %v4659_v36 = vld [vmem:[%s7271_s5 + $0x68] sm:$0xff]  ;;  %v4658_v49 = vld [vmem:[%s7271_s5 + $0x60] sm:$0xff] }
 0x3b3   : > { %3570 = vst.msk [vmem:[#allocation4 + $0x19] sm:$0xf] %vm3567_vm13, %v3558_v6  ;;  %4094 = vmatpush.bf16.msra.mxu2 %v4668_v34  ;;  %v4667_v15 = vld [vmem:[%s7271_s5 + $0xa8] sm:$0xff]  ;;  %v4649_v6 = vld [vmem:[%s7271_s5 + $0x18] sm:$0xff]  ;;  %v4670_v55 = vld [vmem:[%s7271_s5 + $0xc0] sm:$0xff] }
 0x3b5   : > { %4068 = vmatpush.bf16.msra.mxu3 %v4650_v16  ;;  %4081 = vmatpush.bf16.msra.mxu1 %v4659_v36  ;;  %v4680_v16 = vld [vmem:[%s7271_s5 + $0x110] sm:$0xff] }
 0x3b7   : > { %4095 = vmatpush.bf16.msra.mxu2 %v4667_v15 }
 0x3b9   : > { %4082 = vmatpush.bf16.msra.mxu1 %v4658_v49  ;;  %4069 = vmatpush.bf16.msra.mxu3 %v4649_v6  ;;  %v4679_v49 = vld [vmem:[%s7271_s5 + $0x108] sm:$0xff] }
 0x3ba   : > { %v3579_v21 = vld [vmem:[#allocation4 + $0x19] sm:$0xf] }
 0x3bb   : > { %v3602_v19 = vld [vmem:[#allocation4 + $0x19] sm:$0xf]  ;;  %3619 = vrot.lane.b32.xlu0 %v3579_v21, %s5588_s27  ;;  %v4657_v21 = vld [vmem:[%s7271_s5 + $0x58] sm:$0xff] }
 0x3bc   : > { %v3586_v28 = vld [vmem:[#allocation4 + $0x18] sm:$0xf]  ;;  %3663 = vrot.lane.b32.xlu2 %v3602_v19, %s5588_s27 }
 0x3bd   : > { %v3373_v13 = vpop.f32.mrf.mxu2  ;;  %3633 = vrot.lane.b32.xlu1 %v3586_v28, %s5588_s27  ;;  %v3606_v31 = vld [vmem:[#allocation4 + $0x1a] sm:$0xf]  ;;  %v4666_v28 = vld [vmem:[%s7271_s5 + $0xa0] sm:$0xff]  ;;  %4083 = vmatpush.bf16.msra.mxu1 %v4657_v21 }
 0x3be   : > { %3736 = vst [vmem:[#allocation1 + $0x21] ss:$2 sm:$0xff] %v3606_v31  ;;  %v3594_v39 = vld [vmem:[#allocation4 + $0x1a] sm:$0xf]  ;;  %4096 = vmatpush.bf16.msra.mxu2 %v4666_v28  ;;  %v4678_v28 = vld [vmem:[%s7271_s5 + $0x100] sm:$0xff] }
 0x3bf   : > { %v3344_v10 = vpop.f32.mrf.mxu1  ;;  %v4648_v19 = vld [vmem:[%s7271_s5 + $0x10] sm:$0xff] }
 0x3c0   : > { %v3345_v30 = vadd.f32 %v7035_v47, %v3344_v10  ;;  %4070 = vmatpush.bf16.msra.mxu3 %v4648_v19  ;;  %v4647_v10 = vld [vmem:[%s7271_s5 + $0x8] sm:$0xff] }
 0x3c2   : > { %v3374_v37 = vadd.f32 %v3373_v13, %v3345_v30  ;;  %v4656_v13 = vld [vmem:[%s7271_s5 + $0x50] sm:$0xff]  ;;  %v4655_v30 = vld [vmem:[%s7271_s5 + $0x48] sm:$0xff] }
 0x3c3   : > { %4084 = vmatpush.bf16.msra.mxu1 %v4656_v13  ;;  %v3590_v13 = vld [vmem:[#allocation4 + $0x19] sm:$0xf] }
 0x3c4   : > { %v3403_v24 = vadd.f32 %v3402_v11, %v3374_v37  ;;  %v4665_v11 = vld [vmem:[%s7271_s5 + $0x98] sm:$0xff]  ;;  %4071 = vmatpush.bf16.msra.mxu3 %v4647_v10  ;;  %v4646_v37 = vld [vmem:[%s7271_s5] sm:$0xff] }
 0x3c5   : > { %3667 = vrot.lane.b32.xlu1 %v3604_v51, %s5588_s27  ;;  %v3375_v14 = vpop.f32.mrf.mxu2  ;;  %4097 = vmatpush.bf16.msra.mxu2 %v4665_v11 }
 0x3c6   : > { %v3413_v12 = vmax.f32 %v3403_v24, 0.0  ;;  %v3582_v24 = vld [vmem:[#allocation4 + $0x12] sm:$0xf] }
 0x3c7   : > { %v3346_v38 = vpop.f32.mrf.mxu1  ;;  %4085 = vmatpush.bf16.msra.mxu1 %v4655_v30 }
 0x3c8   : > { %v3347_v25 = vadd.f32 %v7035_v47, %v3346_v38  ;;  %v4677_v38 = vld [vmem:[%s7271_s5 + $0xf8] sm:$0xff]  ;;  %4072 = vmatpush.bf16.msra.mxu3 %v4646_v37 }
 0x3ca   : > { %v3376_v7 = vadd.f32 %v3375_v14, %v3347_v25  ;;  %v4654_v25 = vld [vmem:[%s7271_s5 + $0x40] sm:$0xff]  ;;  %v4664_v14 = vld [vmem:[%s7271_s5 + $0x90] sm:$0xff] }
 0x3cb   : > { %4098 = vmatpush.bf16.msra.mxu2 %v4664_v14  ;;  %4086 = vmatpush.bf16.msra.mxu1 %v4654_v25 }
 0x3cc   : > { %v3405_v56 = vadd.f32 %v3404_v42, %v3376_v7  ;;  %4107 = vmatpush.bf16.msrb.mxu3 %v4677_v38  ;;  %v4676_v42 = vld [vmem:[%s7271_s5 + $0xf0] sm:$0xff]  ;;  %v3589_v38 = vld [vmem:[#allocation4 + $0x11] sm:$0xf] }
 0x3cd   : > { %3649 = vrot.lane.b32.xlu1 %v3594_v39, %s5588_s27 }
 0x3ce   : > { %v3414_v0 = vmax.f32 %v3405_v56, 0.0 }
 0x3d0   : > { %v3418_v23 = vmax.f32 %v3413_v12, %v3414_v0  ;;  %v3574_v12 = vld [vmem:[#allocation4 + $0x10] sm:$0xf]  ;;  %4108 = vmatpush.bf16.msrb.mxu3 %v4676_v42  ;;  %v3608_v42 = vld [vmem:[#allocation4 + $0x2a] sm:$0xf] }
 0x3d2   : > { %v3432_v27 = vrot.slane %v3418_v23, 2  ;;  %v3433_v35 = vrot.slane %v3418_v23, 4  ;;  %v3434_v2 = vrot.slane %v3418_v23, 6  ;;  %v4470_v46 = vrot.slane %v3418_v23, 9 }
 0x3d4   : > { %v4471_v45 = vrot.slane %v3432_v27, 9  ;;  %v4472_v52 = vrot.slane %v3433_v35, 9  ;;  %v4473_v47 = vrot.slane %v3434_v2, 9  ;;  %v3507_v17 = vmax.f32 %v3418_v23, %v4470_v46  ;;  %v4663_v46 = vld [vmem:[%s7271_s5 + $0x88] sm:$0xff] }
 0x3d5   : > { %4099 = vmatpush.bf16.msra.mxu2 %v4663_v46 }
 0x3d6   : > { %v3508_v43 = vmax.f32 %v3432_v27, %v4471_v45  ;;  %v3509_v48 = vmax.f32 %v3433_v35, %v4472_v52  ;;  %v3510_v54 = vmax.f32 %v3434_v2, %v4473_v47  ;;  %v3546_v8 = vperm.slane %v3507_v17, 0  ;;  %v4675_v35 = vld [vmem:[%s7271_s5 + $0xe8] sm:$0xff]  ;;  %v4674_v2 = vld [vmem:[%s7271_s5 + $0xe0] sm:$0xff]  ;;  %v3583_v52 = vld [vmem:[#allocation4 + $0x1a] sm:$0xf] }
 0x3d7   : > { %4109 = vmatpush.bf16.msrb.mxu3 %v4675_v35  ;;  %v4673_v17 = vld [vmem:[%s7271_s5 + $0xd8] sm:$0xff] }
 0x3d8   : > { %v3547_v41 = vperm.slane %v3508_v43, 0  ;;  %v3548_v32 = vperm.slane %v3509_v48, 0  ;;  %v3549_v63 = vperm.slane %v3510_v54, 0  ;;  %v3575_v48 = vld [vmem:[#allocation4 + $0x18] sm:$0xf] }
 0x3d9   : > { %4100 = vmatpush.bf16.msra.mxu2 %v4662_v1 }
 0x3da   : > { %v3559_v22 = vsel %vm7309_vm8, %v3547_v41, %v3546_v8  ;;  %v3597_v41 = vld [vmem:[#allocation4 + $0x10] sm:$0xf] }
 0x3db   : > { %v3560_v57 = vsel %vm7310_vm9, %v3548_v32, %v3559_v22  ;;  %4110 = vmatpush.bf16.msrb.mxu3 %v4674_v2 }
 0x3dc   : > { %v3561_v58 = vsel %vm2757_vm1, %v3549_v63, %v3560_v57  ;;  %v3600_v57 = vld [vmem:[#allocation4 + $0x28] sm:$0xf] }
 0x3dd   : > { %3571 = vst.msk [vmem:[#allocation4 + $0x21] sm:$0xf] %vm3567_vm13, %v3561_v58  ;;  %v3588_v58 = vld [vmem:[#allocation4 + $0x9] sm:$0xf] }
 0x3df   : > { %4111 = vmatpush.bf16.msrb.mxu3 %v4673_v17 }
 0x3e3   : > { %4112 = vmatpush.bf16.msrb.mxu3 %v4672_v26 }
 0x3e4   : > { %v3603_v3 = vld [vmem:[#allocation4 + $0x21] sm:$0xf] }
 0x3e5   : > { %v3587_v29 = vld [vmem:[#allocation4 + $0x20] sm:$0xf]  ;;  %3665 = vrot.lane.b32.xlu0 %v3603_v3, %s5588_s27 }
 0x3e6   : > { %3635 = vrot.lane.b32.xlu2 %v3587_v29, %s5588_s27  ;;  %v3595_v50 = vld [vmem:[#allocation4 + $0x22] sm:$0xf] }
 0x3e7   : > { %v3591_v4 = vld [vmem:[#allocation4 + $0x21] sm:$0xf] }
 0x3e8   : > { %v3599_v6 = vld [vmem:[#allocation4 + $0x20] sm:$0xf] }
 0x3eb   : > { %v3618_v51 = vpop.permute.xlu2 %3617 }
 0x3ec   : > { %v3675_v23 = vsel %vm3106_vm4, %v3574_v12, %v3618_v51 }
 0x3ed   : > { %3647 = vrot.lane.b32.xlu0 %v3593_v44, %s5588_s27 }
 0x3ee   : > { %3645 = vrot.lane.b32.xlu2 %v3592_v9, %s5588_s27 }
 0x3f6   : > { %3651 = vrot.lane.b32.xlu2 %v3595_v50, %s5588_s27 }
 0x402   : > { %v3632_v53 = vpop.permute.xlu0 %3631 }
 0x403   : > { %v3678_v59 = vsel %vm3106_vm4, %v3581_v60, %v3632_v53 }
 0x404   : > { %v3711_v18 = vrot.slane %v3678_v59, 4  ;;  %v3662_v31 = vpop.permute.xlu1 %3661 }
 0x405   : > { %v3685_v63 = vsel %vm3106_vm4, %v3597_v41, %v3662_v31  ;;  %v3598_v31 = vld [vmem:[#allocation4 + $0x18] sm:$0xf] }
 0x406   : > { %v3720_v5 = vsel %vm3717_vm12, %v3674_v40, %v3711_v18  ;;  %v3710_v22 = vrot.slane %v3685_v63, 4  ;;  %v4671_v18 = vld [vmem:[%s7271_s5 + $0xc8] sm:$0xff]  ;;  %v4681_v40 = vld [vmem:[%s7271_s5 + $0x118] sm:$0xff] }
 0x407   : > { %3728 = vst [vmem:[#allocation1 + $0x1] ss:$2 sm:$0xff] %v3720_v5  ;;  %4113 = vmatpush.bf16.msrb.mxu3 %v4671_v18  ;;  %4125 = vmatpush.bf16.msrb.mxu1 %v4681_v40 }
 0x40b   : > { %4114 = vmatpush.bf16.msrb.mxu3 %v4670_v55  ;;  %4126 = vmatpush.bf16.msrb.mxu1 %v4680_v16 }
 0x40e   : > { %v3741_v50 = vld.sshfl [vmem:[#allocation1] sm:$0xff pattern:$0x75316420]  ;;  %v3742_v33 = vld.sshfl [vmem:[#allocation1 + $0x8] sm:$0xff pattern:$0x75316420] }
 0x40f   : > { %4127 = vmatpush.bf16.msrb.mxu1 %v4679_v49 }
 0x413   : > { %4128 = vmatpush.bf16.msrb.mxu1 %v4678_v28 }
 0x416   : > { %v7188_v39 = vpop.permute.xlu2 %3663 }
 0x417   : > { %v3686_v37 = vsel %vm3106_vm4, %v3598_v31, %v7188_v39  ;;  %v3745_v39 = vld.sshfl [vmem:[#allocation1 + $0x20] sm:$0xff pattern:$0x75316420] }
 0x418   : > { %v3712_v51 = vrot.slane %v3686_v37, 4 }
 0x42d   : > { %v3620_v45 = vpop.permute.xlu0 %3619 }
 0x42e   : > { %v3676_v8 = vsel %vm3106_vm4, %v3575_v48, %v3620_v45 }
 0x42f   : > { %v3634_v7 = vpop.permute.xlu1 %3633 }
 0x430   : > { %v3679_v56 = vsel %vm3106_vm4, %v3582_v24, %v3634_v7  ;;  %v3607_v7 = vld [vmem:[#allocation4 + $0x22] sm:$0xf] }
 0x431   : > { %v3713_v0 = vrot.slane %v3679_v56, 4 }
 0x433   : > { %v3722_v27 = vsel %vm3717_vm12, %v3675_v23, %v3713_v0 }
 0x434   : > { %3738 = vst [vmem:[#allocation1 + $0x30] ss:$2 sm:$0xff] %v3722_v27 }
 0x437   : > { %v3668_v44 = vpop.permute.xlu1 %3667 }
 0x438   : > { %v3688_v61 = vsel %vm3106_vm4, %v3600_v57, %v3668_v44 }
 0x439   : > { %v3716_v5 = vrot.slane %v3688_v61, 4 }
 0x43f   : > { %v3650_v15 = vpop.permute.xlu1 %3649 }
 0x440   : > { %v3636_v47 = vpop.permute.xlu2 %3635  ;;  %v3683_v11 = vsel %vm3106_vm4, %v3590_v13, %v3650_v15 }
 0x441   : > { %v3680_v43 = vsel %vm3106_vm4, %v3583_v52, %v3636_v47  ;;  %v5550_v47 = vld [vmem:[%s7272_s6] ss:$0 sm:$0xff] }
 0x442   : > { %v3715_v54 = vrot.slane %v3680_v43, 4 }
 0x444   : > { %v3724_v32 = vsel %vm3717_vm12, %v3676_v8, %v3715_v54 }
 0x445   : > { %3740 = vst [vmem:[#allocation1 + $0x31] ss:$2 sm:$0xff] %v3724_v32 }
 0x448   : > { %v3646_v3 = vpop.permute.xlu2 %3645 }
 0x449   : > { %v3681_v29 = vsel %vm3106_vm4, %v3588_v58, %v3646_v3 }
 0x44a   : > { %v3719_v9 = vsel %vm3717_vm12, %v3681_v29, %v3710_v22 }
 0x44b   : > { %3730 = vst [vmem:[#allocation1 + $0x10] ss:$2 sm:$0xff] %v3719_v9 }
 0x44c   : > { %v3746_v62 = vld.sshfl [vmem:[#allocation1 + $0x30] sm:$0xff pattern:$0x75316420]  ;;  %v3747_v53 = vld.sshfl [vmem:[#allocation1 + $0x38] sm:$0xff pattern:$0x75316420] }
 0x44d   : > { %v3765_v60 = vpack.c.bf16 %v3746_v62, %v3741_v50  ;;  %v3766_v59 = vpack.c.bf16 %v3747_v53, %v3742_v33 }
 0x44f   : > { %4073 = vmatmul.bf16.vlgmr.msra.gmra.mxu3 %v3765_v60  ;;  %4087 = vmatmul.bf16.vlgmr.msra.gmra.mxu1 %v3766_v59 }
 0x450   : > { %v3652_v20 = vpop.permute.xlu2 %3651 }
 0x451   : > { %v3684_v34 = vsel %vm3106_vm4, %v3591_v4, %v3652_v20 }
 0x452   : > { %v3725_v36 = vsel %vm3717_vm12, %v3684_v34, %v3716_v5 }
 0x453   : > { %3749 = vst [vmem:[#allocation1 + $0x1] ss:$2 sm:$0xff] %v3725_v36 }
 0x457   : > { %v3666_v21 = vpop.permute.xlu0 %3665 }
 0x458   : > { %v3687_v19 = vsel %vm3106_vm4, %v3599_v6, %v3666_v21 }
 0x459   : > { %v3714_v10 = vrot.slane %v3687_v19, 4 }
 0x45b   : > { %v3723_v30 = vsel %vm3717_vm12, %v3683_v11, %v3714_v10 }
 0x45c   : > { %3748 = vst [vmem:[#allocation1] ss:$2 sm:$0xff] %v3723_v30 }
 0x45f   : > { %v3648_v25 = vpop.permute.xlu0 %3647 }
 0x460   : > { %v3682_v14 = vsel %vm3106_vm4, %v3589_v38, %v3648_v25 }
 0x461   : > { %v3721_v24 = vsel %vm3717_vm12, %v3682_v14, %v3712_v51 }
 0x462   : > { %3732 = vst [vmem:[#allocation1 + $0x11] ss:$2 sm:$0xff] %v3721_v24 }
 0x463   : > { %v3752_v56 = vld.sshfl [vmem:[#allocation1] sm:$0xff pattern:$0x75316420]  ;;  %v3753_v12 = vld.sshfl [vmem:[#allocation1 + $0x8] sm:$0xff pattern:$0x75316420] }
 0x469   : > { %v3743_v0 = vld.sshfl [vmem:[#allocation1 + $0x10] sm:$0xff pattern:$0x75316420]  ;;  %v3744_v23 = vld.sshfl [vmem:[#allocation1 + $0x18] sm:$0xff pattern:$0x75316420] }
 0x46a   : > { %3750 = vst [vmem:[#allocation1 + $0x10] ss:$2 sm:$0xff] %v3607_v7  ;;  %v3767_v27 = vpack.c.bf16 %v3752_v56, %v3743_v0  ;;  %v3768_v35 = vpack.c.bf16 %v3753_v12, %v3744_v23 }
 0x46b   : > { %3751 = vst [vmem:[#allocation1 + $0x11] ss:$2 sm:$0xff] %v3608_v42 }
 0x46c   : > { %4101 = vmatmul.bf16.vlgmr.msra.gmra.mxu2 %v3767_v27  ;;  %4115 = vmatmul.bf16.vlgmr.msrb.gmra.mxu3 %v3768_v35 }
 0x472   : > { %v3754_v2 = vld.sshfl [vmem:[#allocation1 + $0x10] sm:$0xff pattern:$0x75316420] }
 0x473   : > { %v3769_v46 = vpack.c.bf16 %v3754_v2, %v3745_v39 }
 0x475   : > { %4618 = vmatmul.msk.bf16.vlgmr.msrb.gmra.mxu1 %vm3106_vm4, %v3769_v46  ;;  %vm4149_vm4 = vcmask 1041408  }
 0x4cc   : > { %v4088_v52 = vpop.f32.mrf.mxu1 }
 0x4d2   : > { %v4074_v45 = vpop.f32.mrf.mxu3 }
 0x4d3   : > { %v4075_v43 = vadd.f32 %v5550_v47, %v4074_v45 }
 0x4d4   : > { %v4090_v48 = vpop.f32.mrf.mxu1 }
 0x4d5   : > { %v4089_v54 = vadd.f32 %v4088_v52, %v4075_v43 }
 0x4da   : > { %v4076_v17 = vpop.f32.mrf.mxu3 }
 0x4db   : > { %v4077_v63 = vadd.f32 %v5550_v47, %v4076_v17 }
 0x4dd   : > { %v4091_v29 = vadd.f32 %v4090_v48, %v4077_v63 }
 0x4ef   : > { %v4102_v8 = vpop.f32.mrf.mxu2  ;;  %v4116_v41 = vpop.f32.mrf.mxu3 }
 0x4f0   : > { %v4103_v32 = vadd.f32 %v4102_v8, %v4089_v54 }
 0x4f2   : > { %v4117_v22 = vadd.f32 %v4116_v41, %v4103_v32  ;;  %v4130_v57 = vpop.f32.mrf.mxu1 }
 0x4f4   : > { %v4131_v58 = vadd.f32 %v4130_v57, %v4117_v22 }
 0x4f6   : > { %v4135_v3 = vmax.f32 %v4131_v58, 0.0 }
 0x4f7   : > { %v4104_v44 = vpop.f32.mrf.mxu2  ;;  %v4118_v26 = vpop.f32.mrf.mxu3 }
 0x4f8   : > { %v4139_v9 = vrot.slane %v4135_v3, 4  ;;  %v4105_v50 = vadd.f32 %v4104_v44, %v4091_v29 }
 0x4fa   : > { %v4143_v61 = vmax.f32 %v4135_v3, %v4139_v9  ;;  %v4119_v33 = vadd.f32 %v4118_v26, %v4105_v50  ;;  %v4132_v62 = vpop.f32.mrf.mxu1 }
 0x4fc   : > { %v4147_v53 = vrot.slane %v4143_v61, 2  ;;  %v4133_v60 = vadd.f32 %v4132_v62, %v4119_v33 }
 0x4fe   : > { %v4150_v59 = vsel %vm4149_vm4, %v4143_v61, %v4147_v53  ;;  %v4152_v1 = vsel %vm4151_vm11, %v4143_v61, %v4147_v53  ;;  %v4136_v18 = vmax.f32 %v4133_v60, 0.0 }
 0x4ff   : > { %v4153_v40 = vrot.slane %v4152_v1, 2  ;;  %v4619_v5 = vrot.slane %v4150_v59, 9 }
 0x500   : > { %v4140_v4 = vrot.slane %v4136_v18, 4 }
 0x501   : > { %v4620_v20 = vrot.slane %v4153_v40, 9  ;;  %v4173_v55 = vmax.f32 %v4150_v59, %v4619_v5 }
 0x502   : > { %v4144_v34 = vmax.f32 %v4136_v18, %v4140_v4 }
 0x503   : > { %v4174_v16 = vmax.f32 %v4153_v40, %v4620_v20  ;;  %v4177_v36 = vpack.c.bf16 %v4173_v55, %v4173_v55 }
 0x504   : > { %v4148_v49 = vrot.slane %v4144_v34, 2 }
 0x505   : > { %v4178_v15 = vpack.c.bf16 %v4174_v16, %v4174_v16  ;;  %v4185_v6 = vrot.slane %v4177_v36, 2 }
 0x506   : > { %v4154_v21 = vsel %vm4149_vm4, %v4144_v34, %v4148_v49  ;;  %v4155_v19 = vsel %vm4151_vm11, %v4144_v34, %v4148_v49 }
 0x507   : > { %v4186_v28 = vrot.slane %v4178_v15, 2  ;;  %v4191_v13 = vsel %vm4149_vm4, %v4177_v36, %v4185_v6  ;;  %v4156_v10 = vrot.slane %v4155_v19, 2  ;;  %v4621_v11 = vrot.slane %v4154_v21, 9 }
 0x508   : > { %4201 = vst [vmem:[#allocation1] ss:$2 sm:$0xff] %v4191_v13 }
 0x509   : > { %v4194_v31 = vsel %vm4149_vm4, %v4178_v15, %v4186_v28  ;;  %v4622_v30 = vrot.slane %v4156_v10, 9  ;;  %v4175_v37 = vmax.f32 %v4154_v21, %v4621_v11 }
 0x50a   : > { %4205 = vst [vmem:[#allocation1 + $0x10] ss:$2 sm:$0xff] %v4194_v31 }
 0x50b   : > { %v4176_v51 = vmax.f32 %v4156_v10, %v4622_v30  ;;  %v4179_v38 = vpack.c.bf16 %v4175_v37, %v4175_v37 }
 0x50d   : > { %v4180_v25 = vpack.c.bf16 %v4176_v51, %v4176_v51  ;;  %v4187_v14 = vrot.slane %v4179_v38, 2 }
 0x50f   : > { %v4188_v24 = vrot.slane %v4180_v25, 2  ;;  %v4197_v7 = vsel %vm4149_vm4, %v4179_v38, %v4187_v14  ;;  %v4202_v0 = vld.sshfl [vmem:[#allocation1] sm:$0xff pattern:$0x75643120] }
 0x510   : > { %4209 = vst [vmem:[#allocation1 + $0x20] ss:$2 sm:$0xff] %v4197_v7  ;;  %v4216_v39 = vunpack.c.l.b16 %v4202_v0 }
 0x511   : > { %v4206_v42 = vld.sshfl [vmem:[#allocation1 + $0x10] sm:$0xff pattern:$0x75643120]  ;;  %v4200_v56 = vsel %vm4149_vm4, %v4180_v25, %v4188_v24 }
 0x512   : > { %4213 = vst [vmem:[#allocation1 + $0x30] ss:$2 sm:$0xff] %v4200_v56  ;;  %v4217_v12 = vunpack.c.l.b16 %v4206_v42 }
 0x514   : > { %v4220_v23 = vrot.slane %v4217_v12, 7 }
 0x516   : > { %v4221_v52 = vsel %vm7311_vm15, %v4220_v23, %v4216_v39 }
 0x517   : > { %v4210_v27 = vld.sshfl [vmem:[#allocation1 + $0x20] sm:$0xff pattern:$0x75643120] }
 0x518   : > { %v4218_v35 = vunpack.c.l.b16 %v4210_v27 }
 0x519   : > { %v4214_v2 = vld.sshfl [vmem:[#allocation1 + $0x30] sm:$0xff pattern:$0x75643120] }
 0x51a   : > { %v4219_v46 = vunpack.c.l.b16 %v4214_v2  ;;  %v4222_v45 = vrot.slane %v4218_v35, 6 }
 0x51c   : > { %v4223_v47 = vsel %vm7312_vm10, %v4222_v45, %v4221_v52  ;;  %v4224_v17 = vrot.slane %v4219_v46, 5 }
 0x51e   : > { %v4225_v43 = vsel %vm2757_vm1, %v4224_v17, %v4223_v47 }
 0x51f   : > { %v4226_v48 = vpack.c.b16 %v4225_v43, %v4225_v43 }
 0x521   : > { %v4227_v54 = vrot.slane %v4226_v48, 2 }
 0x523   : > { %v4230_v8 = vsel %vm4149_vm4, %v4226_v48, %v4227_v54 }
 0x524   : > { %4232 = vst [vmem:[%s276_s20] sm:$0x3] %v4230_v8 }
 0x525 PF: > { %s17_s24 = sadd.s32 1, %s5574_s24  }
 0x526   : > { %p14_p4 = scmp.ge.s32.totalorder %s17_s24, 4  }
 0x528   :  { %16 = sbr.rel (!%p14_p4) target bundleno = 1 (0x1), region = 94 }

</bundles_post_ra>
